<compile_context>
chip_gen: v7x
topology: tpu7x:2x2x1
jax: 0.10.0
libtpu: 0.0.40
codegen_flags: <defaults>
</compile_context>

<pallas_src>
import functools

import jax
import jax.numpy as jnp
from jax.experimental import pallas as pl
from jax.experimental.pallas import tpu as pltpu

_LANE = 128
_PAD_E2 = 1e30  # huge ||e||^2 for padded codebook rows -> never argmin-selected


def _vq_kernel(x_ref, e_ref, e2_ref, q_ref, idx_ref, mind_ref, loss_ref, *,
               block_rows, n_valid, use_bf16_matmul):
    """One grid step handles `block_rows` rows of the flattened input.

    x_ref   : (TN, D)     f32  input rows (rows >= n_valid are zero padding)
    e_ref   : (K_pad, D)  f32  codebook (K padded to a lane multiple)
    e2_ref  : (1, K_pad)  f32  precomputed ||e||^2 (huge on padded rows)
    q_ref   : (TN, D)     f32  quantized rows (nearest codebook vector)
    idx_ref : (1, TN)     i32  encoding indices (lane-dense slab)
    mind_ref: (1, TN)     f32  min squared distances (lane-dense slab)
    loss_ref: (1, 1)      f32  per-tile partial sum of ||quantized - x||^2
                               over valid rows only
    """
    i = pl.program_id(0)

    x = x_ref[...]                                              # (TN, D)
    e = e_ref[...]                                              # (K_pad, D)
    e2 = e2_ref[...]                                            # (1, K_pad)

    # distances = ||x||^2 + ||e||^2 - 2 x e^T      -> (TN, K_pad)
    x2 = jnp.sum(x * x, axis=1, keepdims=True)                  # (TN, 1)
    if use_bf16_matmul:
        # Optional: bf16 MXU path (v6e/v7x run bf16 at full rate).  May flip
        # argmin tie-breaks vs. the f32 torch reference; off by default.
        xe = jnp.dot(x.astype(jnp.bfloat16), e.astype(jnp.bfloat16).T,
                     preferred_element_type=jnp.float32)
    else:
        xe = jnp.dot(x, e.T, preferred_element_type=jnp.float32)
    dist = x2 + e2 - 2.0 * xe                                   # (TN, K_pad)

    # torch.min(distances, dim=1): first occurrence on ties == argmin.
    idx = jnp.argmin(dist, axis=1)                              # (TN,)
    mind = jnp.min(dist, axis=1)                                # (TN,)

    # Gather codebook rows as one-hot @ codebook (stays on the MXU).
    onehot = (jax.lax.broadcasted_iota(jnp.int32, dist.shape, 1)
              == idx[:, None]).astype(jnp.float32)              # (TN, K_pad)
    q = jnp.dot(onehot, e, preferred_element_type=jnp.float32)  # (TN, D)

    q_ref[...] = q
    idx_ref[...] = idx[None, :].astype(jnp.int32)               # lane-dense
    mind_ref[...] = mind[None, :]                               # lane-dense

    # Per-tile partial loss; mask away padded rows (they carry zero inputs but
    # a non-zero nearest code).
    row_ids = (i * block_rows
               + jax.lax.broadcasted_iota(jnp.int32, (block_rows, 1), 0))
    valid = row_ids < n_valid                                   # (TN, 1)
    diff = q - x
    loss_ref[...] = jnp.sum(jnp.where(valid, diff * diff, 0.0))[None, None]


def vector_quantize(inputs, embedding, commitment_cost=0.25, block_rows=256,
                    use_bf16_matmul=False):
    """Forward pass matching VectorQuantizer.forward (non-packed, non-EMA).

    inputs:    (B, T, D) or (B, D) float array
    embedding: (K, D) codebook
    Returns the same output_dict keys as the PyTorch module.
    """
    input_shape = inputs.shape
    K, D = embedding.shape
    assert input_shape[-1] == D
    assert block_rows % _LANE == 0, "block_rows must be a lane multiple (128)"

    flat = inputs.reshape(-1, D).astype(jnp.float32)
    N = flat.shape[0]

    # --- Pad rows to a multiple of block_rows (masked out of the loss). -----
    n_pad_rows = (-N) % block_rows
    flat_p = jnp.pad(flat, ((0, n_pad_rows), (0, 0))) if n_pad_rows else flat
    n_pad_total = N + n_pad_rows
    grid_size = n_pad_total // block_rows

    # --- Pad the codebook K to a lane multiple; hoist ||e||^2. --------------
    emb = embedding.astype(jnp.float32)
    e2 = jnp.sum(emb * emb, axis=1)                             # (K,)
    k_pad = (-K) % _LANE
    if k_pad:
        emb_p = jnp.pad(emb, ((0, k_pad), (0, 0)))
        e2_p = jnp.concatenate(
            [e2, jnp.full((k_pad,), _PAD_E2, jnp.float32)])
    else:
        emb_p, e2_p = emb, e2
    K_pad = K + k_pad
    e2_p = e2_p[None, :]                                        # (1, K_pad)

    kernel = functools.partial(
        _vq_kernel, block_rows=block_rows, n_valid=N,
        use_bf16_matmul=use_bf16_matmul)

    # --- VMEM budget (explicit; v7x has only 64 MiB physical). --------------
    vmem_est = (
        2 * 2 * block_rows * D * 4          # x in + q out, double-buffered
        + 2 * (K_pad * D * 4 + K_pad * 4)   # codebook + e2 (double-buffered)
        + 2 * 2 * block_rows * 4            # idx + mind output slabs
        + 4 * block_rows * K_pad * 4)       # dist / iota / one-hot temporaries
    vmem_limit = min(64 * 1024 * 1024, max(32 * 1024 * 1024, 2 * vmem_est))

    q, idx, mind, loss_part = pl.pallas_call(
        kernel,
        out_shape=(
            jax.ShapeDtypeStruct((n_pad_total, D), jnp.float32),
            jax.ShapeDtypeStruct((grid_size, block_rows), jnp.int32),
            jax.ShapeDtypeStruct((grid_size, block_rows), jnp.float32),
            jax.ShapeDtypeStruct((grid_size, 1), jnp.float32),
        ),
        grid_spec=pltpu.PrefetchScalarGridSpec(
            num_scalar_prefetch=0,
            grid=(grid_size,),
            in_specs=[
                pl.BlockSpec((block_rows, D), lambda i: (i, 0)),
                pl.BlockSpec((K_pad, D), lambda i: (0, 0)),
                pl.BlockSpec((1, K_pad), lambda i: (0, 0)),
            ],
            out_specs=[
                pl.BlockSpec((block_rows, D), lambda i: (i, 0)),
                pl.BlockSpec((1, block_rows), lambda i: (i, 0)),
                pl.BlockSpec((1, block_rows), lambda i: (i, 0)),
                pl.BlockSpec((1, 1), lambda i: (i, 0)),
            ],
        ),
        compiler_params=pltpu.CompilerParams(
            dimension_semantics=("parallel",),   # per-tile outputs -> parallel
            vmem_limit_bytes=vmem_limit),
    )(flat_p, emb_p, e2_p)

    # loss_vq = sum((quantized - x)^2); loss_commit has the identical forward
    # value (they only differ in which operand is detached for gradients).
    loss_sq = jnp.sum(loss_part)
    loss_vq = loss_sq
    loss_commit = loss_sq
    loss = loss_commit * commitment_cost + loss_vq

    # quantized_st = inputs + (quantized - inputs).detach(): forward value is
    # exactly `quantized` (straight-through only changes gradients).
    # TODO(synk): straight-through gradient / PackedSequence / EMA paths are
    # not expressed in this forward-only kernel.
    quantized_st = q[:N].reshape(input_shape)
    encoding_indices = idx.reshape(-1)[:N].reshape(input_shape[:-1])
    min_distances = mind.reshape(-1)[:N].reshape(input_shape[:-1])

    return {
        "quantized": quantized_st,
        "loss": loss,
        "encoding_indices": encoding_indices,
        "min_distances": min_distances,
        "loss_commit": loss_commit,
    }


def _reference(inputs, embedding, commitment_cost):
    """Pure-JAX reference reproducing the PyTorch math, for sanity checking."""
    D = embedding.shape[1]
    shape = inputs.shape
    flat = inputs.reshape(-1, D)
    dist = (jnp.sum(flat**2, axis=1, keepdims=True)
            + jnp.sum(embedding**2, axis=1)
            - 2.0 * flat @ embedding.T)
    idx = jnp.argmin(dist, axis=1)
    mind = jnp.min(dist, axis=1)
    q = embedding[idx].reshape(shape)
    loss_sq = jnp.sum((q - inputs) ** 2)
    return {
        "quantized": q,
        "loss": loss_sq * commitment_cost + loss_sq,
        "encoding_indices": idx.reshape(shape[:-1]),
        "min_distances": mind.reshape(shape[:-1]),
        "loss_commit": loss_sq,
    }


if __name__ == "__main__":
    # Small shapes consistent with the module: B x T x D inputs, K codebook rows.
    B, T, D, K = 2, 8, 32, 64
    commitment_cost = 0.25  # config.comit_coef

    key = jax.random.PRNGKey(0)
    k_in, k_emb = jax.random.split(key)

    # nn.Embedding weight (K, D) with xavier_uniform_ init (deterministic).
    limit = (6.0 / (K + D)) ** 0.5
    embedding = jax.random.uniform(k_emb, (K, D), jnp.float32, -limit, limit)

    inputs = jax.random.normal(k_in, (B, T, D), jnp.float32)

    out = vector_quantize(inputs, embedding, commitment_cost=commitment_cost)
    jax.block_until_ready(out)

    ref = _reference(inputs, embedding, commitment_cost)
    assert jnp.allclose(out["quantized"], ref["quantized"], atol=1e-5)
    assert jnp.array_equal(out["encoding_indices"], ref["encoding_indices"])
    assert jnp.allclose(out["min_distances"], ref["min_distances"], atol=1e-4)
    assert jnp.allclose(out["loss"], ref["loss"], rtol=1e-5)
    assert jnp.allclose(out["loss_commit"], ref["loss_commit"], rtol=1e-5)

    print("KERNEL_OK")
</pallas_src>

<mosaic_0001>
module attributes {stable_mosaic.version = 11 : i64} {
  func.func @_vq_kernel(%arg0: i32, %arg1: memref<256x32xf32, #tpu.memory_space<vmem>>, %arg2: memref<128x32xf32, #tpu.memory_space<vmem>>, %arg3: memref<1x128xf32, #tpu.memory_space<vmem>>, %arg4: memref<256x32xf32, #tpu.memory_space<vmem>>, %arg5: memref<1x256xi32, #tpu.memory_space<vmem>>, %arg6: memref<1x256xf32, #tpu.memory_space<vmem>>, %arg7: memref<1x1xf32, #tpu.memory_space<vmem>>) attributes {dimension_semantics = [#tpu.dimension_semantics<parallel>], iteration_bounds = array<i64: 1>, scalar_prefetch = 0 : i64, scratch_operands = 0 : i64, tpu.core_type = #tpu.core_type<tc>, window_params = [{transform_indices = @transform_0, window_bounds = array<i64: 256, 32>}, {pipeline_mode = #tpu.pipeline_mode<synchronous>, transform_indices = @transform_1, window_bounds = array<i64: 128, 32>}, {pipeline_mode = #tpu.pipeline_mode<synchronous>, transform_indices = @transform_2, window_bounds = array<i64: 1, 128>}, {transform_indices = @transform_3, window_bounds = array<i64: 256, 32>}, {transform_indices = @transform_4, window_bounds = array<i64: 1, 256>}, {transform_indices = @transform_5, window_bounds = array<i64: 1, 256>}, {transform_indices = @transform_6, window_bounds = array<i64: 1, 1>}]} {
    %c0 = arith.constant 0 : index
    %c0_0 = arith.constant 0 : index
    %0 = vector.load %arg1[%c0, %c0_0] : memref<256x32xf32, #tpu.memory_space<vmem>>, vector<256x32xf32>
    %c0_1 = arith.constant 0 : index
    %c0_2 = arith.constant 0 : index
    %1 = vector.load %arg2[%c0_1, %c0_2] : memref<128x32xf32, #tpu.memory_space<vmem>>, vector<128x32xf32>
    %c0_3 = arith.constant 0 : index
    %c0_4 = arith.constant 0 : index
    %2 = vector.load %arg3[%c0_3, %c0_4] : memref<1x128xf32, #tpu.memory_space<vmem>>, vector<1x128xf32>
    %3 = arith.mulf %0, %0 : vector<256x32xf32>
    %cst = arith.constant dense<0.000000e+00> : vector<256xf32>
    %4 = vector.multi_reduction <add>, %3, %cst [1] : vector<256x32xf32> to vector<256xf32>
    %5 = vector.shape_cast %4 : vector<256xf32> to vector<256x1xf32>
    %6 = tpu.transpose %1, [1, 0] : vector<128x32xf32> -> vector<32x128xf32>
    %cst_5 = arith.constant dense<0.000000e+00> : vector<256x128xf32>
    %7 = tpu.matmul %0, %6, %cst_5 {dimension_numbers = #tpu.dot_dimension_numbers<[1], [0], [0], [1], [0, 0, 1, 1], [], []>} : vector<256x32xf32>, vector<32x128xf32>, vector<256x128xf32> -> vector<256x128xf32>
    %8 = vector.broadcast %5 : vector<256x1xf32> to vector<256x128xf32>
    %9 = vector.broadcast %2 : vector<1x128xf32> to vector<256x128xf32>
    %10 = arith.addf %8, %9 : vector<256x128xf32>
    %cst_6 = arith.constant 2.000000e+00 : f32
    %11 = vector.broadcast %cst_6 : f32 to vector<256x128xf32>
    %12 = arith.mulf %11, %7 : vector<256x128xf32>
    %13 = arith.subf %10, %12 : vector<256x128xf32>
    %14 = tpu.reduce_index %13 {axis = 1 : i32, kind = #tpu.reduction_kind<arg_min>} : vector<256x128xf32> -> vector<256xi32>
    %cst_7 = arith.constant dense<0x7F800000> : vector<256xf32>
    %15 = vector.multi_reduction <minimumf>, %13, %cst_7 [1] : vector<256x128xf32> to vector<256xf32>
    %16 = tpu.iota {dimensions = array<i32: 1>} : vector<256x128xi32>
    %17 = vector.shape_cast %14 : vector<256xi32> to vector<256x1xi32>
    %18 = vector.broadcast %17 : vector<256x1xi32> to vector<256x128xi32>
    %19 = arith.cmpi eq, %16, %18 : vector<256x128xi32>
    %20 = arith.extui %19 : vector<256x128xi1> to vector<256x128xi32>
    %21 = arith.sitofp %20 : vector<256x128xi32> to vector<256x128xf32>
    %cst_8 = arith.constant dense<0.000000e+00> : vector<256x32xf32>
    %22 = tpu.matmul %21, %1, %cst_8 {dimension_numbers = #tpu.dot_dimension_numbers<[1], [0], [0], [1], [0, 0, 1, 1], [], []>} : vector<256x128xf32>, vector<128x32xf32>, vector<256x32xf32> -> vector<256x32xf32>
    %c0_9 = arith.constant 0 : index
    %c0_10 = arith.constant 0 : index
    %23 = vector.load %arg4[%c0_9, %c0_10] : memref<256x32xf32, #tpu.memory_space<vmem>>, vector<256x32xf32>
    tpu.vector_store %arg4[%c0_9, %c0_10], %22 {strides = array<i32>} : memref<256x32xf32, #tpu.memory_space<vmem>>, vector<256x32xf32>,
    %24 = vector.shape_cast %14 : vector<256xi32> to vector<1x256xi32>
    %c0_11 = arith.constant 0 : index
    %c0_12 = arith.constant 0 : index
    %25 = vector.load %arg5[%c0_11, %c0_12] : memref<1x256xi32, #tpu.memory_space<vmem>>, vector<1x256xi32>
    tpu.vector_store %arg5[%c0_11, %c0_12], %24 {strides = array<i32>} : memref<1x256xi32, #tpu.memory_space<vmem>>, vector<1x256xi32>,
    %26 = vector.shape_cast %15 : vector<256xf32> to vector<1x256xf32>
    %c0_13 = arith.constant 0 : index
    %c0_14 = arith.constant 0 : index
    %27 = vector.load %arg6[%c0_13, %c0_14] : memref<1x256xf32, #tpu.memory_space<vmem>>, vector<1x256xf32>
    tpu.vector_store %arg6[%c0_13, %c0_14], %26 {strides = array<i32>} : memref<1x256xf32, #tpu.memory_space<vmem>>, vector<1x256xf32>,
    %c256_i32 = arith.constant 256 : i32
    %28 = arith.muli %arg0, %c256_i32 : i32
    %29 = tpu.iota {dimensions = array<i32: 0>} : vector<256x1xi32>
    %30 = vector.broadcast %28 : i32 to vector<256x1xi32>
    %31 = arith.addi %30, %29 : vector<256x1xi32>
    %c16_i32 = arith.constant 16 : i32
    %32 = vector.broadcast %c16_i32 : i32 to vector<256x1xi32>
    %33 = arith.cmpi slt, %31, %32 : vector<256x1xi32>
    %34 = arith.subf %22, %0 : vector<256x32xf32>
    %35 = arith.mulf %34, %34 : vector<256x32xf32>
    %cst_15 = arith.constant 0.000000e+00 : f32
    %36 = vector.shape_cast %33 : vector<256x1xi1> to vector<256x1xi1>
    %37 = vector.broadcast %36 : vector<256x1xi1> to vector<256x32xi1>
    %38 = vector.broadcast %cst_15 : f32 to vector<256x32xf32>
    %39 = arith.select %37, %35, %38 : vector<256x32xi1>, vector<256x32xf32>
    %40 = vector.shape_cast %39 : vector<256x32xf32> to vector<1x256x32xf32>
    %cst_16 = arith.constant dense<0.000000e+00> : vector<1xf32>
    %41 = vector.multi_reduction <add>, %40, %cst_16 [1, 2] : vector<1x256x32xf32> to vector<1xf32>
    %42 = vector.shape_cast %41 : vector<1xf32> to vector<1x1x1xf32>
    %43 = vector.extract %42[0, 0, 0] : f32 from vector<1x1x1xf32>
    %44 = vector.broadcast %43 : f32 to vector<1x1xf32>
    %c0_17 = arith.constant 0 : index
    %c0_18 = arith.constant 0 : index
    %45 = vector.load %arg7[%c0_17, %c0_18] : memref<1x1xf32, #tpu.memory_space<vmem>>, vector<1x1xf32>
    tpu.vector_store %arg7[%c0_17, %c0_18], %44 {strides = array<i32>} : memref<1x1xf32, #tpu.memory_space<vmem>>, vector<1x1xf32>,
    return
  }
  func.func @transform_0(%arg0: i32) -> (i32, i32) {
    %c0_i32 = arith.constant 0 : i32
    %c0_i32_0 = arith.constant 0 : i32
    return %arg0, %c0_i32 : i32, i32
  }
  func.func @transform_1(%arg0: i32) -> (i32, i32) {
    %c0_i32 = arith.constant 0 : i32
    %c0_i32_0 = arith.constant 0 : i32
    %c0_i32_1 = arith.constant 0 : i32
    return %c0_i32, %c0_i32_0 : i32, i32
  }
  func.func @transform_2(%arg0: i32) -> (i32, i32) {
    %c0_i32 = arith.constant 0 : i32
    %c0_i32_0 = arith.constant 0 : i32
    %c0_i32_1 = arith.constant 0 : i32
    return %c0_i32, %c0_i32_0 : i32, i32
  }
  func.func @transform_3(%arg0: i32) -> (i32, i32) {
    %c0_i32 = arith.constant 0 : i32
    %c0_i32_0 = arith.constant 0 : i32
    return %arg0, %c0_i32 : i32, i32
  }
  func.func @transform_4(%arg0: i32) -> (i32, i32) {
    %c0_i32 = arith.constant 0 : i32
    %c0_i32_0 = arith.constant 0 : i32
    return %arg0, %c0_i32 : i32, i32
  }
  func.func @transform_5(%arg0: i32) -> (i32, i32) {
    %c0_i32 = arith.constant 0 : i32
    %c0_i32_0 = arith.constant 0 : i32
    return %arg0, %c0_i32 : i32, i32
  }
  func.func @transform_6(%arg0: i32) -> (i32, i32) {
    %c0_i32 = arith.constant 0 : i32
    %c0_i32_0 = arith.constant 0 : i32
    return %arg0, %c0_i32 : i32, i32
  }
}

</mosaic_0001>

<bundles_post_ra>
// kernel: tpu_custom_call.1
= control target key start
LH: loop header
LB: loop body
LE: loop exit
PB: predicated region body
PF: predicated region fallthrough
CT: control target
= control target key end

     0   :  { %12 = vsyncpa [#allocation3], 0  ;;  %vm101_vm0 = vcmask 261120   ;;  %s10528_s0 = inlined_call_operand.vmem [shape: f32[256,32], index: 0, kind: input, shape index: {}]   ;;  %s10529_s1 = inlined_call_operand.vmem [shape: f32[128,32], index: 1, kind: input, shape index: {}]   ;;  %s10530_s2 = inlined_call_operand.vmem [shape: f32[1,128], index: 2, kind: input, shape index: {}]   ;;  %s10531_s3 = inlined_call_operand.vmem [shape: f32[256,32], index: 3, kind: output, shape index: {0}]   ;;  %s10532_s4 = inlined_call_operand.hbm [shape: s32[1,256], index: 4, kind: output, shape index: {1}]   ;;  %s10533_s5 = inlined_call_operand.hbm [shape: f32[1,256], index: 5, kind: output, shape index: {2}]   ;;  %s10534_s6 = inlined_call_operand.hbm [shape: f32[1,1], index: 6, kind: output, shape index: {3}]  }
   0x1   :  { %v52_v0 = vld [vmem:[%s10529_s1] sm:$0xff]  ;;  %v53_v1 = vld [vmem:[%s10529_s1 + $0x8] sm:$0xff]  ;;  %v54_v2 = vld [vmem:[%s10529_s1 + $0x10] sm:$0xff] }
   0x2   :  { %v7691_v3 = vpack.c.bf16 %v53_v1, %v52_v0  ;;  %vm7905_vm1 = vmpackc.low %vm101_vm0, %vm101_vm0  ;;  %v55_v5 = vld [vmem:[%s10529_s1 + $0x18] sm:$0xff]  ;;  %v56_v7 = vld [vmem:[%s10529_s1 + $0x20] sm:$0xff] }
   0x3   :  { %v7697_v6 = vpack.c.bf16 %v55_v5, %v54_v2  ;;  %v57_v8 = vld [vmem:[%s10529_s1 + $0x28] sm:$0xff]  ;;  %v20_v9 = vld [vmem:[%s10528_s0] sm:$0xff]  ;;  %v7936_v12 = vld [vmem:[%s10528_s0 + $0x10] sm:$0xff] }
   0x4   :  { %7693 = vmatprep.subr.msk.bf16.mxu0 %vm7905_vm1, %v7691_v3  ;;  %7740 = vmatprep.subr.bf16.mxu1 %v7691_v3  ;;  %v7931_v10 = vld [vmem:[%s10528_s0 + $0x8] sm:$0xff]  ;;  %v69_v11 = vmul.f32 %v20_v9, %v20_v9  ;;  %v7941_v13 = vld [vmem:[%s10528_s0 + $0x18] sm:$0xff]  ;;  %v7703_v14 = vpack.c.bf16 %v57_v8, %v56_v7  ;;  %v71_v16 = vmul.f32 %v7936_v12, %v7936_v12  ;;  %v58_v19 = vld [vmem:[%s10529_s1 + $0x30] sm:$0xff] }
   0x5   :  { %7696 = vmatpush3.bf16.xpose.msk.msra.mxu0 %vm7905_vm1, %v7691_v3  ;;  %7742 = vmatpush3.bf16.msra.mxu1 %v7691_v3  ;;  %v70_v15 = vmul.f32 %v7931_v10, %v7931_v10  ;;  %v72_v17 = vmul.f32 %v7941_v13, %v7941_v13  ;;  %v59_v20 = vld [vmem:[%s10529_s1 + $0x38] sm:$0xff]  ;;  %v7959_v21 = vld [vmem:[%s10528_s0 + $0x20] sm:$0xff]  ;;  %v7966_v24 = vld [vmem:[%s10528_s0 + $0x28] sm:$0xff] }
   0x6   :  { %7699 = vmatprep.subr.msk.bf16.mxu0 %vm7905_vm1, %v7697_v6  ;;  %7744 = vmatprep.subr.bf16.mxu1 %v7697_v6  ;;  %v102_v18 = vsel %vm101_vm0, %v69_v11, 0.0  ;;  %v108_v22 = vsel %vm101_vm0, %v71_v16, 0.0  ;;  %v73_v25 = vmul.f32 %v7959_v21, %v7959_v21  ;;  %v74_v27 = vmul.f32 %v7966_v24, %v7966_v24  ;;  %v60_v29 = vld [vmem:[%s10529_s1 + $0x40] sm:$0xff]  ;;  %v61_v30 = vld [vmem:[%s10529_s1 + $0x48] sm:$0xff]  ;;  %v7986_v31 = vld [vmem:[%s10528_s0 + $0x30] sm:$0xff] }
   0x7   :  { %7563 = vmatprep.mubr.msk.f32.mxu0 %vm101_vm0, %v20_v9  ;;  %103 = vadd.xlane.f32.xlu0 %v102_v18  ;;  %v105_v23 = vsel %vm101_vm0, %v70_v15, 0.0  ;;  %v111_v26 = vsel %vm101_vm0, %v72_v17, 0.0  ;;  %v7709_v28 = vpack.c.bf16 %v59_v20, %v58_v19  ;;  %v7991_v32 = vld [vmem:[%s10528_s0 + $0x38] sm:$0xff]  ;;  %v75_v34 = vmul.f32 %v7986_v31, %v7986_v31 }
   0x8   :  { %109 = vadd.xlane.f32.xlu1 %v108_v22  ;;  %v114_v33 = vsel %vm101_vm0, %v73_v25, 0.0  ;;  %v7996_v35 = vpack.c.bf16 %v61_v30, %v60_v29  ;;  %v117_v36 = vsel %vm101_vm0, %v74_v27, 0.0  ;;  %v76_v37 = vmul.f32 %v7991_v32, %v7991_v32 }
   0x9   :  { %7746 = vmatpush3.bf16.msra.mxu1 %v7697_v6 }
   0xa   :  { %7748 = vmatprep.subr.bf16.mxu1 %v7703_v14 }
   0xb   :  { %106 = vadd.xlane.f32.xlu0 %v105_v23 }
   0xc   :  { %112 = vadd.xlane.f32.xlu1 %v111_v26 }
   0xd   :  { %7702 = vmatpush3.bf16.xpose.msk.msra.mxu0 %vm7905_vm1, %v7697_v6  ;;  %7750 = vmatpush3.bf16.msra.mxu1 %v7703_v14 }
   0xe   :  { %7705 = vmatprep.subr.msk.bf16.mxu0 %vm7905_vm1, %v7703_v14  ;;  %7752 = vmatprep.subr.bf16.mxu1 %v7709_v28 }
  0x11   :  { %7754 = vmatpush3.bf16.msra.mxu1 %v7709_v28 }
  0x12   :  { %13 = vsyncpa [#allocation5], 0  ;;  %v62_v38 = vld [vmem:[%s10529_s1 + $0x50] sm:$0xff]  ;;  %v63_v39 = vld [vmem:[%s10529_s1 + $0x58] sm:$0xff]  ;;  %115 = vadd.xlane.f32.xlu0 %v114_v33  ;;  %7756 = vmatprep.subr.bf16.mxu1 %v7996_v35  ;;  %v120_v42 = vsel %vm101_vm0, %v75_v34, 0.0  ;;  %v123_v44 = vsel %vm101_vm0, %v76_v37, 0.0 }
  0x13   :  { %v8010_v40 = vld [vmem:[%s10528_s0 + $0x40] sm:$0xff]  ;;  %v8016_v41 = vld [vmem:[%s10528_s0 + $0x48] sm:$0xff]  ;;  %118 = vadd.xlane.f32.xlu1 %v117_v36  ;;  %v8026_v46 = vpack.c.bf16 %v63_v39, %v62_v38  ;;  %v8040_v49 = vld [vmem:[%s10528_s0 + $0x50] sm:$0xff] }
  0x14   :  { %v77_v43 = vmul.f32 %v8010_v40, %v8010_v40  ;;  %v78_v45 = vmul.f32 %v8016_v41, %v8016_v41  ;;  %v64_v47 = vld [vmem:[%s10529_s1 + $0x60] sm:$0xff]  ;;  %v65_v48 = vld [vmem:[%s10529_s1 + $0x68] sm:$0xff]  ;;  %v8045_v50 = vld [vmem:[%s10528_s0 + $0x58] sm:$0xff]  ;;  %v79_v52 = vmul.f32 %v8040_v49, %v8040_v49 }
  0x15   :  { %7708 = vmatpush3.bf16.xpose.msk.msra.mxu0 %vm7905_vm1, %v7703_v14  ;;  %7758 = vmatpush3.bf16.msra.mxu1 %v7996_v35  ;;  %v8051_v53 = vpack.c.bf16 %v65_v48, %v64_v47  ;;  %v80_v55 = vmul.f32 %v8045_v50, %v8045_v50  ;;  %v66_v56 = vld [vmem:[%s10529_s1 + $0x70] sm:$0xff]  ;;  %v67_v57 = vld [vmem:[%s10529_s1 + $0x78] sm:$0xff]  ;;  %v8066_v58 = vld [vmem:[%s10528_s0 + $0x60] sm:$0xff] }
  0x16   :  { %7711 = vmatprep.subr.msk.bf16.mxu0 %vm7905_vm1, %v7709_v28  ;;  %121 = vadd.xlane.f32.xlu0 %v120_v42  ;;  %v126_v51 = vsel %vm101_vm0, %v77_v43, 0.0  ;;  %v129_v54 = vsel %vm101_vm0, %v78_v45, 0.0  ;;  %v8072_v59 = vld [vmem:[%s10528_s0 + $0x68] sm:$0xff]  ;;  %v132_v60 = vsel %vm101_vm0, %v79_v52, 0.0  ;;  %v81_v61 = vmul.f32 %v8066_v58, %v8066_v58  ;;  %v8091_v1 = vld [vmem:[%s10528_s0 + $0x70] sm:$0xff]  ;;  %v8096_v2 = vld [vmem:[%s10528_s0 + $0x78] sm:$0xff] }
  0x17   :  { %124 = vadd.xlane.f32.xlu1 %v123_v44  ;;  %7760 = vmatprep.subr.bf16.mxu1 %v8026_v46  ;;  %v135_v62 = vsel %vm101_vm0, %v80_v55, 0.0  ;;  %v82_v63 = vmul.f32 %v8072_v59, %v8072_v59  ;;  %v8082_v0 = vpack.c.bf16 %v67_v57, %v66_v56  ;;  %v83_v5 = vmul.f32 %v8091_v1, %v8091_v1  ;;  %v8109_v8 = vld [vmem:[%s10528_s0 + $0x80] sm:$0xff]  ;;  %v8114_v9 = vld [vmem:[%s10528_s0 + $0x88] sm:$0xff]  ;;  %v38_v17 = vld [vmem:[%s10528_s0 + $0x90] sm:$0xff] }
  0x18   :  { %v138_v3 = vsel %vm101_vm0, %v81_v61, 0.0  ;;  %v84_v7 = vmul.f32 %v8096_v2, %v8096_v2  ;;  %v85_v14 = vmul.f32 %v8109_v8, %v8109_v8  ;;  %v86_v16 = vmul.f32 %v8114_v9, %v8114_v9  ;;  %v39_v18 = vld [vmem:[%s10528_s0 + $0x98] sm:$0xff]  ;;  %v40_v25 = vld [vmem:[%s10528_s0 + $0xa0] sm:$0xff]  ;;  %v41_v26 = vld [vmem:[%s10528_s0 + $0xa8] sm:$0xff] }
  0x19   :  { %7762 = vmatpush3.bf16.msra.mxu1 %v8026_v46  ;;  %v141_v6 = vsel %vm101_vm0, %v82_v63, 0.0  ;;  %v144_v11 = vsel %vm101_vm0, %v83_v5, 0.0  ;;  %v87_v20 = vmul.f32 %v38_v17, %v38_v17  ;;  %v88_v23 = vmul.f32 %v39_v18, %v39_v18  ;;  %v42_v33 = vld [vmem:[%s10528_s0 + $0xb0] sm:$0xff]  ;;  %v43_v34 = vld [vmem:[%s10528_s0 + $0xb8] sm:$0xff]  ;;  %v44_v39 = vld [vmem:[%s10528_s0 + $0xc0] sm:$0xff] }
  0x1a   :  { %127 = vadd.xlane.f32.xlu0 %v126_v51  ;;  %7764 = vmatprep.subr.bf16.mxu1 %v8051_v53  ;;  %v147_v15 = vsel %vm101_vm0, %v84_v7, 0.0  ;;  %v150_v19 = vsel %vm101_vm0, %v85_v14, 0.0  ;;  %v153_v22 = vsel %vm101_vm0, %v86_v16, 0.0  ;;  %v90_v30 = vmul.f32 %v41_v26, %v41_v26  ;;  %v45_v42 = vld [vmem:[%s10528_s0 + $0xc8] sm:$0xff]  ;;  %v46_v4 = vld [vmem:[%s10528_s0 + $0xd0] sm:$0xff] }
  0x1b   :  { %130 = vadd.xlane.f32.xlu1 %v129_v54  ;;  %v156_v27 = vsel %vm101_vm0, %v87_v20, 0.0  ;;  %v159_v29 = vsel %vm101_vm0, %v88_v23, 0.0  ;;  %v91_v36 = vmul.f32 %v42_v33, %v42_v33  ;;  %v92_v38 = vmul.f32 %v43_v34, %v43_v34 }
  0x1c   :  { %v165_v37 = vsel %vm101_vm0, %v90_v30, 0.0  ;;  %v93_v44 = vmul.f32 %v44_v39, %v44_v39  ;;  %v95_v56 = vmul.f32 %v46_v4, %v46_v4 }
  0x1d   :  { %7714 = vmatpush3.bf16.xpose.msk.msra.mxu0 %vm7905_vm1, %v7709_v28  ;;  %7766 = vmatpush3.bf16.msra.mxu1 %v8051_v53  ;;  %v89_v28 = vmul.f32 %v40_v25, %v40_v25  ;;  %v168_v43 = vsel %vm101_vm0, %v91_v36, 0.0  ;;  %v171_v45 = vsel %vm101_vm0, %v92_v38, 0.0 }
  0x1e   :  { %7717 = vmatprep.subr.msk.bf16.mxu0 %vm7905_vm1, %v7996_v35  ;;  %133 = vadd.xlane.f32.xlu0 %v132_v60  ;;  %v174_v47 = vsel %vm101_vm0, %v93_v44, 0.0 }
  0x1f   :  { %136 = vadd.xlane.f32.xlu1 %v135_v62  ;;  %7768 = vmatprep.subr.bf16.mxu1 %v8082_v0  ;;  %v180_v62 = vsel %vm101_vm0, %v95_v56, 0.0 }
  0x21   :  { %7770 = vmatpush3.bf16.msra.mxu1 %v8082_v0 }
  0x22   :  { %139 = vadd.xlane.f32.xlu0 %v138_v3 }
  0x23   :  { %142 = vadd.xlane.f32.xlu1 %v141_v6 }
  0x25   :  { %7720 = vmatpush3.bf16.xpose.msk.msra.mxu0 %vm7905_vm1, %v7996_v35  ;;  %v162_v35 = vsel %vm101_vm0, %v89_v28, 0.0 }
  0x26   :  { %7723 = vmatprep.subr.msk.bf16.mxu0 %vm7905_vm1, %v8026_v46  ;;  %145 = vadd.xlane.f32.xlu0 %v144_v11 }
  0x27   :  { %148 = vadd.xlane.f32.xlu1 %v147_v15 }
  0x2a   :  { %151 = vadd.xlane.f32.xlu0 %v150_v19 }
  0x2b   :  { %154 = vadd.xlane.f32.xlu1 %v153_v22 }
  0x2d   :  { %7726 = vmatpush3.bf16.xpose.msk.msra.mxu0 %vm7905_vm1, %v8026_v46  ;;  %v94_v46 = vmul.f32 %v45_v42, %v45_v42 }
  0x2e   :  { %7729 = vmatprep.subr.msk.bf16.mxu0 %vm7905_vm1, %v8051_v53  ;;  %157 = vadd.xlane.f32.xlu0 %v156_v27 }
  0x2f   :  { %160 = vadd.xlane.f32.xlu1 %v159_v29  ;;  %v177_v48 = vsel %vm101_vm0, %v94_v46, 0.0 }
  0x32   :  { %163 = vadd.xlane.f32.xlu0 %v162_v35 }
  0x33   :  { %166 = vadd.xlane.f32.xlu1 %v165_v37 }
  0x35   :  { %7732 = vmatpush3.bf16.xpose.msk.msra.mxu0 %vm7905_vm1, %v8051_v53 }
  0x36   :  { %7735 = vmatprep.subr.msk.bf16.mxu0 %vm7905_vm1, %v8082_v0  ;;  %169 = vadd.xlane.f32.xlu0 %v168_v43 }
  0x37   :  { %172 = vadd.xlane.f32.xlu1 %v171_v45 }
  0x3a   :  { %175 = vadd.xlane.f32.xlu0 %v174_v47 }
  0x3b   :  { %178 = vadd.xlane.f32.xlu1 %v177_v48 }
  0x3d   :  { %7738 = vmatpush3.bf16.xpose.msk.msra.mxu0 %vm7905_vm1, %v8082_v0 }
  0x44   :  { %7564 = vmatmul.mubr.msk.f32.vlgmr.msra.gmra.mrb[0].mxu0 %vm101_vm0, %v7931_v10  ;;  %v47_v10 = vld [vmem:[%s10528_s0 + $0xd8] sm:$0xff] }
  0x45   :  { %7566 = vmatprep.mubr.msk.f32.mxu0 %vm101_vm0, %v7936_v12  ;;  %v48_v12 = vld [vmem:[%s10528_s0 + $0xe0] sm:$0xff]  ;;  %v96_v54 = vmul.f32 %v47_v10, %v47_v10 }
  0x46   :  { %v97_v63 = vmul.f32 %v48_v12, %v48_v12 }
  0x47   :  { %v183_v60 = vsel %vm101_vm0, %v96_v54, 0.0 }
  0x48   :  { %7567 = vmatmul.mubr.msk.f32.gmra.mrb[2].mxu0 %vm101_vm0, %v7941_v13  ;;  %v49_v13 = vld [vmem:[%s10528_s0 + $0xe8] sm:$0xff]  ;;  %v186_v6 = vsel %vm101_vm0, %v97_v63, 0.0 }
  0x49   :  { %7569 = vmatprep.mubr.msk.f32.mxu0 %vm101_vm0, %v7959_v21  ;;  %v50_v21 = vld [vmem:[%s10528_s0 + $0xf0] sm:$0xff]  ;;  %v98_v61 = vmul.f32 %v49_v13, %v49_v13 }
  0x4a   :  { %v99_v7 = vmul.f32 %v50_v21, %v50_v21 }
  0x4b   :  { %v189_v3 = vsel %vm101_vm0, %v98_v61, 0.0 }
  0x4c   :  { %7570 = vmatmul.mubr.msk.f32.gmra.mrb[4].mxu0 %vm101_vm0, %v7966_v24  ;;  %v51_v24 = vld [vmem:[%s10528_s0 + $0xf8] sm:$0xff]  ;;  %v192_v15 = vsel %vm101_vm0, %v99_v7, 0.0 }
  0x4d   :  { %7572 = vmatprep.mubr.msk.f32.mxu0 %vm101_vm0, %v7986_v31  ;;  %v100_v5 = vmul.f32 %v51_v24, %v51_v24 }
  0x4f   :  { %v195_v11 = vsel %vm101_vm0, %v100_v5, 0.0 }
  0x50   :  { %7573 = vmatmul.mubr.msk.f32.gmra.mrb[6].mxu0 %vm101_vm0, %v7991_v32 }
  0x51   :  { %7575 = vmatprep.mubr.msk.f32.mxu0 %vm101_vm0, %v8010_v40  ;;  %v8246_v40 = vld [vmem:[%s10530_s2] ss:$0 sm:$0xff] }
  0x54   :  { %7576 = vmatmul.mubr.msk.f32.gmra.mrb[8].mxu0 %vm101_vm0, %v8016_v41 }
  0x55   :  { %7578 = vmatprep.mubr.msk.f32.mxu0 %vm101_vm0, %v8040_v49 }
  0x58   :  { %7579 = vmatmul.mubr.msk.f32.gmra.mrb[10].mxu0 %vm101_vm0, %v8045_v50 }
  0x59   :  { %7581 = vmatprep.mubr.msk.f32.mxu0 %vm101_vm0, %v8066_v58 }
  0x5c   :  { %7582 = vmatmul.mubr.msk.f32.gmra.mrb[12].mxu0 %vm101_vm0, %v8072_v59 }
  0x5d   :  { %7584 = vmatprep.mubr.msk.f32.mxu0 %vm101_vm0, %v8091_v1 }
  0x60   :  { %7585 = vmatmul.mubr.msk.f32.gmra.mrb[14].mxu0 %vm101_vm0, %v8096_v2 }
  0x61   :  { %7587 = vmatprep.mubr.msk.f32.mxu0 %vm101_vm0, %v8109_v8 }
  0x64   :  { %7588 = vmatmul.mubr.msk.f32.gmra.mrb[16].mxu0 %vm101_vm0, %v8114_v9 }
  0x65   :  { %7590 = vmatprep.mubr.msk.f32.mxu0 %vm101_vm0, %v38_v17 }
  0x68   :  { %7591 = vmatmul.mubr.msk.f32.gmra.mrb[18].mxu0 %vm101_vm0, %v39_v18 }
  0x69   :  { %7593 = vmatprep.mubr.msk.f32.mxu0 %vm101_vm0, %v40_v25 }
  0x6c   :  { %7594 = vmatmul.mubr.msk.f32.gmra.mrb[20].mxu0 %vm101_vm0, %v41_v26 }
  0x6d   :  { %7596 = vmatprep.mubr.msk.f32.mxu0 %vm101_vm0, %v42_v33 }
  0x70   :  { %7597 = vmatmul.mubr.msk.f32.gmra.mrb[22].mxu0 %vm101_vm0, %v43_v34 }
  0x71   :  { %7599 = vmatprep.mubr.msk.f32.mxu0 %vm101_vm0, %v44_v39 }
  0x74   :  { %7600 = vmatmul.mubr.msk.f32.gmra.mrb[24].mxu0 %vm101_vm0, %v45_v42 }
  0x75   :  { %7602 = vmatprep.mubr.msk.f32.mxu0 %vm101_vm0, %v46_v4 }
  0x78   :  { %7603 = vmatmul.mubr.msk.f32.gmra.mrb[26].mxu0 %vm101_vm0, %v47_v10 }
  0x79   :  { %7605 = vmatprep.mubr.msk.f32.mxu0 %vm101_vm0, %v48_v12 }
  0x7c   :  { %7606 = vmatmul.mubr.msk.f32.gmra.mrb[28].mxu0 %vm101_vm0, %v49_v13 }
  0x7d   :  { %7608 = vmatprep.mubr.msk.f32.mxu0 %vm101_vm0, %v50_v21 }
  0x80   :  { %7609 = vmatmul.mubr.msk.f32.gmra.mrb[30].mxu0 %vm101_vm0, %v51_v24 }
  0x94   :  { %v104_v31 = vpop.xlane.xlu0 %103 }
  0x95   :  { %v573_v52 = vadd.f32 %v8246_v40, %v104_v31  ;;  %v110_v0 = vpop.xlane.xlu1 %109 }
  0x96   :  { %v575_v20 = vadd.f32 %v8246_v40, %v110_v0 }
  0x98   :  { %v107_v32 = vpop.xlane.xlu0 %106 }
  0x99   :  { %v574_v41 = vadd.f32 %v8246_v40, %v107_v32  ;;  %v113_v14 = vpop.xlane.xlu1 %112 }
  0x9a   :  { %v576_v18 = vadd.f32 %v8246_v40, %v113_v14 }
  0x9f   :  { %v116_v29 = vpop.xlane.xlu0 %115 }
  0xa0   :  { %v119_v28 = vpop.xlane.xlu1 %118  ;;  %v577_v37 = vadd.f32 %v8246_v40, %v116_v29 }
  0xa1   :  { %v578_v34 = vadd.f32 %v8246_v40, %v119_v28 }
  0xa3   :  { %v122_v38 = vpop.xlane.xlu0 %121 }
  0xa4   :  { %v125_v39 = vpop.xlane.xlu1 %124  ;;  %v579_v21 = vadd.f32 %v8246_v40, %v122_v38 }
  0xa5   :  { %v580_v10 = vadd.f32 %v8246_v40, %v125_v39 }
  0xa7   :  { %v128_v46 = vpop.xlane.xlu0 %127 }
  0xa8   :  { %v131_v47 = vpop.xlane.xlu1 %130 }
  0xab   :  { %v134_v24 = vpop.xlane.xlu0 %133 }
  0xac   :  { %v137_v31 = vpop.xlane.xlu1 %136  ;;  %v583_v7 = vadd.f32 %v8246_v40, %v134_v24 }
  0xaf   :  { %v140_v54 = vpop.xlane.xlu0 %139 }
  0xb3   :  { %v146_v63 = vpop.xlane.xlu0 %145 }
 0x117   :  { %v7565_v49 = vpop.f32.mrb[0].mxu0 }
 0x118   :  { %v606_v50 = vmul.f32 2.0, %v7565_v49  ;;  %v408_v51 = vpop.f32.mrb[1].mxu0 }
 0x119   :  { %v605_v53 = vmul.f32 2.0, %v408_v51 }
 0x11a   :  { %v638_v55 = vsub.f32 %v574_v41, %v606_v50 }
 0x11b   :  { %v637_v57 = vsub.f32 %v573_v52, %v605_v53  ;;  %v7568_v58 = vpop.f32.mrb[2].mxu0  ;;  %v582_v53 = vadd.f32 %v8246_v40, %v131_v47 }
 0x11c   :  { %671 = vmin.index.xlane.f32.xlu1 %v638_v55  ;;  %v418_v59 = vpop.f32.mrb[3].mxu0  ;;  %v608_v17 = vmul.f32 2.0, %v7568_v58  ;;  %v143_v58 = vpop.xlane.xlu1 %142 }
 0x11d   :  { %669 = vmin.index.xlane.f32.xlu0 %v637_v57  ;;  %v607_v22 = vmul.f32 2.0, %v418_v59  ;;  %v586_v14 = vadd.f32 %v8246_v40, %v143_v58 }
 0x11e   :  { %v640_v25 = vsub.f32 %v576_v18, %v608_v17 }
 0x11f   :  { %v7571_v1 = vpop.f32.mrb[4].mxu0  ;;  %v639_v27 = vsub.f32 %v575_v20, %v607_v22 }
 0x120   :  { %184 = vadd.xlane.f32.xlu1 %v183_v60  ;;  %v428_v2 = vpop.f32.mrb[5].mxu0  ;;  %v610_v33 = vmul.f32 2.0, %v7571_v1  ;;  %v149_v0 = vpop.xlane.xlu1 %148 }
 0x121   :  { %181 = vadd.xlane.f32.xlu0 %v180_v62  ;;  %v609_v36 = vmul.f32 2.0, %v428_v2 }
 0x122   :  { %v642_v43 = vsub.f32 %v578_v34, %v610_v33 }
 0x123   :  { %v7574_v8 = vpop.f32.mrb[6].mxu0  ;;  %v641_v45 = vsub.f32 %v577_v37, %v609_v36 }
 0x124   :  { %190 = vadd.xlane.f32.xlu1 %v189_v3  ;;  %v438_v9 = vpop.f32.mrb[7].mxu0  ;;  %v612_v4 = vmul.f32 2.0, %v7574_v8  ;;  %v584_v3 = vadd.f32 %v8246_v40, %v137_v31  ;;  %v155_v8 = vpop.xlane.xlu1 %154 }
 0x125   :  { %187 = vadd.xlane.f32.xlu0 %v186_v6  ;;  %v611_v13 = vmul.f32 2.0, %v438_v9  ;;  %v590_v38 = vadd.f32 %v8246_v40, %v155_v8 }
 0x126   :  { %v644_v41 = vsub.f32 %v580_v10, %v612_v4 }
 0x127   :  { %v7577_v16 = vpop.f32.mrb[8].mxu0  ;;  %v643_v50 = vsub.f32 %v579_v21, %v611_v13 }
 0x128   :  { %196 = vadd.xlane.f32.xlu1 %v195_v11  ;;  %v448_v19 = vpop.f32.mrb[9].mxu0  ;;  %v614_v52 = vmul.f32 2.0, %v7577_v16  ;;  %v152_v16 = vpop.xlane.xlu0 %151 }
 0x129   :  { %193 = vadd.xlane.f32.xlu0 %v192_v15  ;;  %v613_v56 = vmul.f32 2.0, %v448_v19  ;;  %v585_v19 = vadd.f32 %v8246_v40, %v140_v54  ;;  %v161_v22 = vpop.xlane.xlu1 %160 }
 0x12a   :  { %v646_v60 = vsub.f32 %v582_v53, %v614_v52  ;;  %v592_v4 = vadd.f32 %v8246_v40, %v161_v22 }
 0x12b   :  { %v7580_v23 = vpop.f32.mrb[10].mxu0 }
 0x12c   :  { %735 = vmin.xlane.f32.xlu1 %v638_v55  ;;  %v458_v26 = vpop.f32.mrb[11].mxu0  ;;  %v616_v2 = vmul.f32 2.0, %v7580_v23  ;;  %v158_v34 = vpop.xlane.xlu0 %157 }
 0x12d   :  { %733 = vmin.xlane.f32.xlu0 %v637_v57  ;;  %v581_v57 = vadd.f32 %v8246_v40, %v128_v46  ;;  %v615_v6 = vmul.f32 2.0, %v458_v26  ;;  %v588_v26 = vadd.f32 %v8246_v40, %v149_v0 }
 0x12e   :  { %v8295_v15 = vsub.f32 %v584_v3, %v616_v2 }
 0x12f   :  { %v7583_v30 = vpop.f32.mrb[12].mxu0  ;;  %v645_v62 = vsub.f32 %v581_v57, %v613_v56  ;;  %v8301_v20 = vsub.f32 %v583_v7, %v615_v6  ;;  %v7853_v6 = vmov 0   ;;  %v7854_v7 = vmov 1966171168  }
 0x130   :  { %675 = vmin.index.xlane.f32.xlu1 %v640_v25  ;;  %v8259_v35 = vpop.f32.mrb[13].mxu0  ;;  %v618_v11 = vmul.f32 2.0, %v7583_v30  ;;  %v587_v30 = vadd.f32 %v8246_v40, %v146_v63  ;;  %v164_v46 = vpop.xlane.xlu0 %163  ;;  %7780 = vset.pattern.permute.xlu0 %v7853_v6  ;;  %v2181_v8 = vunpack.c.l.s4 %v7854_v7 }
 0x131   :  { %673 = vmin.index.xlane.f32.xlu0 %v639_v27  ;;  %v617_v18 = vmul.f32 2.0, %v8259_v35  ;;  %v593_v52 = vadd.f32 %v8246_v40, %v164_v46  ;;  %7779 = vset.pattern.permute.xlu1 %v7853_v6 }
 0x133   :  { %v8262_v42 = vpop.f32.mrb[14].mxu0  ;;  %v8315_v33 = vsub.f32 %v585_v19, %v617_v18 }
 0x134   :  { %739 = vmin.xlane.f32.xlu1 %v640_v25  ;;  %v8264_v44 = vpop.f32.mrb[15].mxu0  ;;  %v620_v25 = vmul.f32 2.0, %v8262_v42 }
 0x135   :  { %737 = vmin.xlane.f32.xlu0 %v639_v27  ;;  %v8308_v27 = vsub.f32 %v586_v14, %v618_v11  ;;  %v619_v29 = vmul.f32 2.0, %v8264_v44  ;;  %v2182_v14 = vunpack.c.0.s8 %v2181_v8 }
 0x136   :  { %v8321_v37 = vsub.f32 %v588_v26, %v620_v25 }
 0x137   :  { %v8266_v48 = vpop.f32.mrb[16].mxu0  ;;  %v8329_v44 = vsub.f32 %v587_v30, %v619_v29 }
 0x138   :  { %679 = vmin.index.xlane.f32.xlu1 %v642_v43  ;;  %v8269_v12 = vpop.f32.mrb[17].mxu0  ;;  %v622_v36 = vmul.f32 2.0, %v8266_v48 }
 0x139   :  { %677 = vmin.index.xlane.f32.xlu0 %v641_v45  ;;  %v621_v42 = vmul.f32 2.0, %v8269_v12  ;;  %v591_v12 = vadd.f32 %v8246_v40, %v158_v34 }
 0x13a   :  { %v8333_v48 = vsub.f32 %v590_v38, %v622_v36 }
 0x13b   :  { %v8272_v32 = vpop.f32.mrb[18].mxu0 }
 0x13c   :  { %743 = vmin.xlane.f32.xlu1 %v642_v43  ;;  %v8274_v49 = vpop.f32.mrb[19].mxu0  ;;  %v589_v43 = vadd.f32 %v8246_v40, %v152_v16  ;;  %v624_v47 = vmul.f32 2.0, %v8272_v32 }
 0x13d   :  { %741 = vmin.xlane.f32.xlu0 %v641_v45  ;;  %v167_v45 = vpop.xlane.xlu1 %166  ;;  %v623_v10 = vmul.f32 2.0, %v8274_v49 }
 0x13e   :  { %v8339_v13 = vsub.f32 %v589_v43, %v621_v42  ;;  %v594_v31 = vadd.f32 %v8246_v40, %v167_v45  ;;  %v8344_v32 = vsub.f32 %v592_v4, %v624_v47 }
 0x13f   :  { %v8276_v51 = vpop.f32.mrb[20].mxu0 }
 0x140   :  { %683 = vmin.index.xlane.f32.xlu1 %v644_v41  ;;  %v8279_v55 = vpop.f32.mrb[21].mxu0  ;;  %v626_v24 = vmul.f32 2.0, %v8276_v51 }
 0x141   :  { %681 = vmin.index.xlane.f32.xlu0 %v643_v50  ;;  %v173_v21 = vpop.xlane.xlu1 %172  ;;  %v625_v49 = vmul.f32 2.0, %v8279_v55 }
 0x142   :  { %v596_v54 = vadd.f32 %v8246_v40, %v173_v21  ;;  %v8354_v51 = vsub.f32 %v594_v31, %v626_v24 }
 0x143   :  { %v8282_v59 = vpop.f32.mrb[22].mxu0  ;;  %v8359_v58 = vsub.f32 %v593_v52, %v625_v49 }
 0x144   :  { %747 = vmin.xlane.f32.xlu1 %v644_v41  ;;  %v8284_v61 = vpop.f32.mrb[23].mxu0  ;;  %v170_v41 = vpop.xlane.xlu0 %169  ;;  %v628_v53 = vmul.f32 2.0, %v8282_v59 }
 0x145   :  { %745 = vmin.xlane.f32.xlu0 %v643_v50  ;;  %v8347_v50 = vsub.f32 %v591_v12, %v623_v10  ;;  %v627_v56 = vmul.f32 2.0, %v8284_v61  ;;  %v595_v57 = vadd.f32 %v8246_v40, %v170_v41 }
 0x146   :  { %v8364_v63 = vsub.f32 %v596_v54, %v628_v53 }
 0x147   :  { %v8286_v1 = vpop.f32.mrb[24].mxu0  ;;  %v8369_v2 = vsub.f32 %v595_v57, %v627_v56 }
 0x148   :  { %687 = vmin.index.xlane.f32.xlu1 %v646_v60  ;;  %v8289_v5 = vpop.f32.mrb[25].mxu0  ;;  %v176_v55 = vpop.xlane.xlu0 %175 }
 0x149   :  { %685 = vmin.index.xlane.f32.xlu0 %v645_v62  ;;  %v629_v0 = vmul.f32 2.0, %v8289_v5  ;;  %v597_v61 = vadd.f32 %v8246_v40, %v176_v55  ;;  %v10535_v5 = vlaneseq }
 0x14b   :  { %v8292_v9 = vpop.f32.mrb[26].mxu0  ;;  %v8380_v11 = vshrl.u32 %v10535_v5, 7  ;;  %v8383_v16 = vand.u32 127, %v10535_v5 }
 0x14c   :  { %751 = vmin.xlane.f32.xlu1 %v646_v60  ;;  %v8297_v17 = vpop.f32.mrb[27].mxu0  ;;  %v179_v60 = vpop.xlane.xlu1 %178  ;;  %v632_v42 = vmul.f32 2.0, %v8292_v9 }
 0x14d   :  { %749 = vmin.xlane.f32.xlu0 %v645_v62  ;;  %v630_v62 = vmul.f32 2.0, %v8286_v1  ;;  %v598_v59 = vadd.f32 %v8246_v40, %v179_v60  ;;  %v8375_v1 = vsub.f32 %v597_v61, %v629_v0  ;;  %v8386_v18 = vsub.s32 0, %v8380_v11 }
 0x14e   :  { %v8389_v19 = vsub.s32 1, %v8380_v11  ;;  %v8392_v22 = vsub.s32 2, %v8380_v11  ;;  %v8395_v25 = vsub.s32 3, %v8380_v11  ;;  %v8398_v26 = vsub.s32 4, %v8380_v11 }
 0x14f   :  { %v8303_v23 = vpop.f32.mrb[28].mxu0  ;;  %v8372_v3 = vsub.f32 %v598_v59, %v630_v62  ;;  %v8401_v29 = vsub.s32 5, %v8380_v11  ;;  %v8404_v30 = vsub.s32 6, %v8380_v11  ;;  %v8407_v34 = vsub.s32 7, %v8380_v11 }
 0x150   :  { %691 = vmin.index.xlane.f32.xlu1 %v8295_v15  ;;  %v8310_v28 = vpop.f32.mrb[29].mxu0  ;;  %v8410_v36 = vsub.s32 %v2182_v14, %v8380_v11  ;;  %v631_v43 = vmul.f32 2.0, %v8297_v17  ;;  %v634_v45 = vmul.f32 2.0, %v8303_v23  ;;  %v7855_v23 = vmov 1.0  }
 0x151   :  { %689 = vmin.index.xlane.f32.xlu0 %v8301_v20  ;;  %v633_v46 = vmul.f32 2.0, %v8310_v28 }
 0x153   :  { %v8317_v35 = vpop.f32.mrb[30].mxu0 }
 0x154   :  { %695 = vmin.index.xlane.f32.xlu1 %v8308_v27  ;;  %v8324_v39 = vpop.f32.mrb[31].mxu0 }
 0x155   :  { %693 = vmin.index.xlane.f32.xlu0 %v8315_v33 }
 0x158   :  { %699 = vmin.index.xlane.f32.xlu1 %v8321_v37 }
 0x159   :  { %697 = vmin.index.xlane.f32.xlu0 %v8329_v44 }
 0x15c   :  { %703 = vmin.index.xlane.f32.xlu1 %v8333_v48 }
 0x15d   :  { %701 = vmin.index.xlane.f32.xlu0 %v8339_v13 }
 0x160   :  { %707 = vmin.index.xlane.f32.xlu1 %v8344_v32 }
 0x161   :  { %705 = vmin.index.xlane.f32.xlu0 %v8347_v50 }
 0x164   :  { %711 = vmin.index.xlane.f32.xlu1 %v8354_v51 }
 0x165   :  { %709 = vmin.index.xlane.f32.xlu0 %v8359_v58 }
 0x168   :  { %715 = vmin.index.xlane.f32.xlu1 %v8364_v63 }
 0x169   :  { %713 = vmin.index.xlane.f32.xlu0 %v8369_v2 }
 0x16c   :  { %719 = vmin.index.xlane.f32.xlu1 %v8372_v3 }
 0x16d   :  { %717 = vmin.index.xlane.f32.xlu0 %v8375_v1 }
 0x1a9   :  { %v672_v38 = vpop.xlane.xlu1 %671 }
 0x1aa   :  { %v670_v47 = vpop.xlane.xlu0 %669  ;;  %vm800_vm2 = vcmp.eq.s32.totalorder %v8383_v16, %v672_v38  ;;  %v1187_v4 = vrot.slane %v672_v38, %v8386_v18  ;;  %v1191_v10 = vrot.slane %v672_v38, %v8389_v19  ;;  %v1195_v12 = vrot.slane %v672_v38, %v8392_v22 }
 0x1ab   :  { %vm799_vm3 = vcmp.eq.s32.totalorder %v8383_v16, %v670_v47  ;;  %v1199_v21 = vrot.slane %v672_v38, %v8395_v25  ;;  %v1203_v9 = vrot.slane %v672_v38, %v8398_v26  ;;  %v1207_v17 = vrot.slane %v672_v38, %v8401_v29 }
 0x1ac   :  { %7643 = vmatprep.mubr.msk.f32.mxu1 %vm799_vm3, %v7855_v23  ;;  %v1211_v28 = vrot.slane %v672_v38, %v8404_v30  ;;  %v1215_v24 = vrot.slane %v672_v38, %v8407_v34  ;;  %v2225_v31 = vcombine.low %v1187_v4, %v1191_v10  ;;  %v1155_v41 = vrot.slane %v670_v47, %v8386_v18 }
 0x1ad   :  { %v185_v49 = vpop.xlane.xlu1 %184  ;;  %7644 = vmatmul.mubr.msk.f32.vlgmr.msra.gmra.mrb[0].mxu1 %vm800_vm2, %v7855_v23  ;;  %v2226_v52 = vcombine.low %v1195_v12, %v1199_v21  ;;  %v2227_v53 = vcombine.low %v1203_v9, %v1207_v17  ;;  %v1159_v54 = vrot.slane %v670_v47, %v8389_v19  ;;  %v1163_v56 = vrot.slane %v670_v47, %v8392_v22 }
 0x1ae   :  { %v600_v57 = vadd.f32 %v8246_v40, %v185_v49  ;;  %v182_v60 = vpop.xlane.xlu0 %181  ;;  %v2228_v55 = vcombine.low %v1211_v28, %v1215_v24  ;;  %v2235_v62 = vrot.slane %v2225_v31, %v8410_v36  ;;  %v1167_v59 = vrot.slane %v670_v47, %v8395_v25 }
 0x1af   :  { %v599_v0 = vadd.f32 %v8246_v40, %v182_v60  ;;  %v2242_v61 = vrot.slane %v2226_v52, %v8410_v36  ;;  %v2249_v6 = vrot.slane %v2227_v53, %v8410_v36  ;;  %v1171_v7 = vrot.slane %v670_v47, %v8398_v26 }
 0x1b0   :  { %v8438_v8 = vsub.f32 %v600_v57, %v632_v42  ;;  %v2256_v14 = vrot.slane %v2228_v55, %v8410_v36  ;;  %v1175_v38 = vrot.slane %v670_v47, %v8401_v29  ;;  %v1179_v4 = vrot.slane %v670_v47, %v8404_v30 }
 0x1b1   :  { %v191_v10 = vpop.xlane.xlu1 %190  ;;  %v8443_v12 = vsub.f32 %v599_v0, %v631_v43  ;;  %v2257_v21 = vcombine.low %v2235_v62, %v2242_v61  ;;  %v1183_v9 = vrot.slane %v670_v47, %v8407_v34  ;;  %v2176_v17 = vcombine.low %v1155_v41, %v1159_v54 }
 0x1b2   :  { %v602_v28 = vadd.f32 %v8246_v40, %v191_v10  ;;  %723 = vmin.index.xlane.f32.xlu1 %v8438_v8  ;;  %v188_v24 = vpop.xlane.xlu0 %187  ;;  %v2258_v42 = vcombine.low %v2249_v6, %v2256_v14  ;;  %v2177_v31 = vcombine.low %v1163_v56, %v1167_v59  ;;  %v2178_v49 = vcombine.low %v1171_v7, %v1175_v38 }
 0x1b3   :  { %v601_v52 = vadd.f32 %v8246_v40, %v188_v24  ;;  %721 = vmin.index.xlane.f32.xlu0 %v8443_v12  ;;  %v636_v53 = vmul.f32 2.0, %v8317_v35  ;;  %v2179_v43 = vcombine.low %v1179_v4, %v1183_v9  ;;  %v2186_v57 = vrot.slane %v2176_v17, %v8410_v36 }
 0x1b4   :  { %v635_v47 = vmul.f32 2.0, %v8324_v39  ;;  %v8453_v41 = vsub.f32 %v602_v28, %v634_v45  ;;  %v2193_v54 = vrot.slane %v2177_v31, %v8410_v36  ;;  %v2200_v60 = vrot.slane %v2178_v49, %v8410_v36 }
 0x1b5   :  { %v197_v55 = vpop.xlane.xlu1 %196  ;;  %v8457_v56 = vsub.f32 %v601_v52, %v633_v46  ;;  %v2265_v62 = vrot.slane %v2257_v21, %v8410_v36  ;;  %v2272_v59 = vrot.slane %v2258_v42, %v8410_v36  ;;  %v2207_v35 = vrot.slane %v2179_v43, %v8410_v36 }
 0x1b6   :  { %v604_v0 = vadd.f32 %v8246_v40, %v197_v55  ;;  %727 = vmin.index.xlane.f32.xlu1 %v8453_v41  ;;  %v194_v39 = vpop.xlane.xlu0 %193  ;;  %v8464_v45 = vcombine.low %v2186_v57, %v2193_v54 }
 0x1b7   :  { %v603_v61 = vadd.f32 %v8246_v40, %v194_v39  ;;  %725 = vmin.index.xlane.f32.xlu0 %v8457_v56  ;;  %v8468_v6 = vcombine.low %v2200_v60, %v2207_v35  ;;  %v8474_v38 = vcombine.low %v2265_v62, %v2272_v59 }
 0x1b8   :  { %v8470_v46 = vsub.f32 %v604_v0, %v636_v53  ;;  %v2216_v4 = vrot.slane %v8464_v45, %v8410_v36 }
 0x1b9   :  { %v736_v7 = vpop.xlane.xlu1 %735  ;;  %v8472_v14 = vsub.f32 %v603_v61, %v635_v47  ;;  %v2223_v10 = vrot.slane %v8468_v6, %v8410_v36 }
 0x1ba   :  { %731 = vmin.index.xlane.f32.xlu1 %v8470_v46  ;;  %v734_v40 = vpop.xlane.xlu0 %733  ;;  %v4115_v21 = vrot.slane %v736_v7, %v8386_v18  ;;  %v4119_v9 = vrot.slane %v736_v7, %v8389_v19  ;;  %v4123_v17 = vrot.slane %v736_v7, %v8392_v22  ;;  %v4127_v28 = vrot.slane %v736_v7, %v8395_v25 }
 0x1bb   :  { %729 = vmin.index.xlane.f32.xlu0 %v8472_v14  ;;  %v4083_v24 = vrot.slane %v734_v40, %v8386_v18  ;;  %v4087_v42 = vrot.slane %v734_v40, %v8389_v19  ;;  %v4091_v31 = vrot.slane %v734_v40, %v8392_v22  ;;  %v4095_v49 = vrot.slane %v734_v40, %v8395_v25 }
 0x1bc   :  { %v4099_v52 = vrot.slane %v734_v40, %v8398_v26  ;;  %v4103_v53 = vrot.slane %v734_v40, %v8401_v29  ;;  %v4107_v43 = vrot.slane %v734_v40, %v8404_v30  ;;  %v4111_v57 = vrot.slane %v734_v40, %v8407_v34 }
 0x1bd   :  { %v5104_v47 = vcombine.low %v4083_v24, %v4087_v42  ;;  %v5105_v54 = vcombine.low %v4091_v31, %v4095_v49  ;;  %v4131_v60 = vrot.slane %v736_v7, %v8398_v26  ;;  %v4135_v55 = vrot.slane %v736_v7, %v8401_v29  ;;  %v676_v42 = vpop.xlane.xlu1 %675 }
 0x1be   :  { %755 = vmin.xlane.f32.xlu1 %v8295_v15  ;;  %v5106_v62 = vcombine.low %v4099_v52, %v4103_v53  ;;  %v5107_v59 = vcombine.low %v4107_v43, %v4111_v57  ;;  %v4139_v35 = vrot.slane %v736_v7, %v8404_v30  ;;  %v4143_v0 = vrot.slane %v736_v7, %v8407_v34  ;;  %v8502_v31 = vpop.xlane.xlu0 %673 }
 0x1bf   :  { %753 = vmin.xlane.f32.xlu0 %v8301_v20  ;;  %v5114_v39 = vrot.slane %v5104_v47, %v8410_v36  ;;  %v5121_v61 = vrot.slane %v5105_v54, %v8410_v36  ;;  %v5153_v40 = vcombine.low %v4115_v21, %v4119_v9  ;;  %v5154_v24 = vcombine.low %v4123_v17, %v4127_v28 }
 0x1c0   :  { %v5128_v49 = vrot.slane %v5106_v62, %v8410_v36  ;;  %v5135_v15 = vrot.slane %v5107_v59, %v8410_v36  ;;  %v5155_v52 = vcombine.low %v4131_v60, %v4135_v55  ;;  %v5156_v53 = vcombine.low %v4139_v35, %v4143_v0 }
 0x1c1   :  { %v5136_v43 = vcombine.low %v5114_v39, %v5121_v61  ;;  %v5163_v7 = vrot.slane %v5153_v40, %v8410_v36  ;;  %v5170_v20 = vrot.slane %v5154_v24, %v8410_v36  ;;  %vm801_vm4 = vcmp.eq.s32.totalorder %v8383_v16, %v8502_v31 }
 0x1c2   :  { %759 = vmin.xlane.f32.xlu1 %v8308_v27  ;;  %v5137_v21 = vcombine.low %v5128_v49, %v5135_v15  ;;  %v5177_v9 = vrot.slane %v5155_v52, %v8410_v36  ;;  %v5184_v17 = vrot.slane %v5156_v53, %v8410_v36  ;;  %7646 = vmatprep.mubr.msk.f32.mxu1 %vm801_vm4, %v7855_v23 }
 0x1c3   :  { %757 = vmin.xlane.f32.xlu0 %v8315_v33  ;;  %v5144_v28 = vrot.slane %v5136_v43, %v8410_v36  ;;  %v5185_v57 = vcombine.low %v5163_v7, %v5170_v20  ;;  %v1251_v47 = vrot.slane %v676_v42, %v8386_v18  ;;  %v1255_v54 = vrot.slane %v676_v42, %v8389_v19  ;;  %v740_v7 = vpop.xlane.xlu1 %739 }
 0x1c4   :  { %v5151_v60 = vrot.slane %v5137_v21, %v8410_v36  ;;  %v5186_v55 = vcombine.low %v5177_v9, %v5184_v17  ;;  %v1259_v27 = vrot.slane %v676_v42, %v8392_v22  ;;  %v1263_v62 = vrot.slane %v676_v42, %v8395_v25  ;;  %v8561_v17 = vpop.xlane.xlu0 %737 }
 0x1c5   :  { %v5193_v59 = vrot.slane %v5185_v57, %v8410_v36  ;;  %v1267_v35 = vrot.slane %v676_v42, %v8398_v26  ;;  %v1271_v33 = vrot.slane %v676_v42, %v8401_v29  ;;  %v1275_v0 = vrot.slane %v676_v42, %v8404_v30 }
 0x1c6   :  { %763 = vmin.xlane.f32.xlu1 %v8321_v37  ;;  %v8526_v39 = vcombine.low %v5144_v28, %v5151_v60  ;;  %v5200_v61 = vrot.slane %v5186_v55, %v8410_v36  ;;  %v1279_v40 = vrot.slane %v676_v42, %v8407_v34  ;;  %v2323_v24 = vcombine.low %v1251_v47, %v1255_v54 }
 0x1c7   :  { %761 = vmin.xlane.f32.xlu0 %v8329_v44  ;;  %v2324_v49 = vcombine.low %v1259_v27, %v1263_v62  ;;  %v2325_v15 = vcombine.low %v1267_v35, %v1271_v33  ;;  %vm802_vm5 = vcmp.eq.s32.totalorder %v8383_v16, %v676_v42  ;;  %v8538_v37 = vcombine.low %v2216_v4, %v2223_v10 }
 0x1c8   :  { %v8540_v52 = vcombine.low %v5193_v59, %v5200_v61  ;;  %v2326_v53 = vcombine.low %v1275_v0, %v1279_v40  ;;  %v2333_v43 = vrot.slane %v2323_v24, %v8410_v36  ;;  %7647 = vmatmul.mubr.msk.f32.gmra.mrb[2].mxu1 %vm802_vm5, %v7855_v23  ;;  %v1219_v44 = vrot.slane %v8502_v31, %v8386_v18  ;;  %v680_v40 = vpop.xlane.xlu1 %679 }
 0x1c9   :  { %v2340_v42 = vrot.slane %v2324_v49, %v8410_v36  ;;  %v2347_v6 = vrot.slane %v2325_v15, %v8410_v36  ;;  %v1223_v45 = vrot.slane %v8502_v31, %v8389_v19  ;;  %v1227_v4 = vrot.slane %v8502_v31, %v8392_v22 }
 0x1ca   :  { %767 = vmin.xlane.f32.xlu1 %v8333_v48  ;;  %v2354_v10 = vrot.slane %v2326_v53, %v8410_v36  ;;  %v1231_v20 = vrot.slane %v8502_v31, %v8395_v25  ;;  %v1235_v21 = vrot.slane %v8502_v31, %v8398_v26  ;;  %v1239_v9 = vrot.slane %v8502_v31, %v8401_v29 }
 0x1cb   :  { %765 = vmin.xlane.f32.xlu0 %v8339_v13  ;;  %v2355_v28 = vcombine.low %v2333_v43, %v2340_v42  ;;  %v1243_v57 = vrot.slane %v8502_v31, %v8404_v30  ;;  %v1247_v48 = vrot.slane %v8502_v31, %v8407_v34  ;;  %v2274_v47 = vcombine.low %v1219_v44, %v1223_v45 }
 0x1cc   :  { %v2356_v54 = vcombine.low %v2347_v6, %v2354_v10  ;;  %v2275_v60 = vcombine.low %v1227_v4, %v1231_v20  ;;  %v2276_v55 = vcombine.low %v1235_v21, %v1239_v9  ;;  %v4179_v27 = vrot.slane %v740_v7, %v8386_v18  ;;  %v8585_v6 = vpop.xlane.xlu0 %677 }
 0x1cd   :  { %v2363_v62 = vrot.slane %v2355_v28, %v8410_v36  ;;  %v2277_v59 = vcombine.low %v1243_v57, %v1247_v48  ;;  %v2284_v13 = vrot.slane %v2274_v47, %v8410_v36  ;;  %v4183_v35 = vrot.slane %v740_v7, %v8389_v19 }
 0x1ce   :  { %771 = vmin.xlane.f32.xlu1 %v8344_v32  ;;  %v2370_v33 = vrot.slane %v2356_v54, %v8410_v36  ;;  %v2291_v0 = vrot.slane %v2275_v60, %v8410_v36  ;;  %v2298_v31 = vrot.slane %v2276_v55, %v8410_v36  ;;  %v4187_v61 = vrot.slane %v740_v7, %v8392_v22 }
 0x1cf   :  { %769 = vmin.xlane.f32.xlu0 %v8347_v50  ;;  %v2305_v24 = vrot.slane %v2277_v59, %v8410_v36  ;;  %v4191_v49 = vrot.slane %v740_v7, %v8395_v25  ;;  %v4195_v15 = vrot.slane %v740_v7, %v8398_v26  ;;  %v4199_v53 = vrot.slane %v740_v7, %v8401_v29 }
 0x1d0   :  { %v8581_v32 = vcombine.low %v2363_v62, %v2370_v33  ;;  %v2306_v43 = vcombine.low %v2284_v13, %v2291_v0  ;;  %v4203_v44 = vrot.slane %v740_v7, %v8404_v30  ;;  %v4207_v42 = vrot.slane %v740_v7, %v8407_v34 }
 0x1d1   :  { %v2307_v45 = vcombine.low %v2298_v31, %v2305_v24  ;;  %v5251_v50 = vcombine.low %v4179_v27, %v4183_v35  ;;  %v5252_v4 = vcombine.low %v4187_v61, %v4191_v49  ;;  %v5253_v10 = vcombine.low %v4195_v15, %v4199_v53 }
 0x1d2   :  { %775 = vmin.xlane.f32.xlu1 %v8354_v51  ;;  %v2314_v20 = vrot.slane %v2306_v43, %v8410_v36  ;;  %v5254_v21 = vcombine.low %v4203_v44, %v4207_v42  ;;  %vm803_vm6 = vcmp.eq.s32.totalorder %v8383_v16, %v8585_v6  ;;  %v1315_v9 = vrot.slane %v680_v40, %v8386_v18 }
 0x1d3   :  { %773 = vmin.xlane.f32.xlu0 %v8359_v58  ;;  %v2321_v7 = vrot.slane %v2307_v45, %v8410_v36  ;;  %v5261_v28 = vrot.slane %v5251_v50, %v8410_v36  ;;  %v5268_v57 = vrot.slane %v5252_v4, %v8410_v36  ;;  %v5275_v48 = vrot.slane %v5253_v10, %v8410_v36 }
 0x1d4   :  { %v5282_v51 = vrot.slane %v5254_v21, %v8410_v36  ;;  %7649 = vmatprep.mubr.msk.f32.mxu1 %vm803_vm6, %v7855_v23  ;;  %v1319_v47 = vrot.slane %v680_v40, %v8389_v19  ;;  %v1323_v54 = vrot.slane %v680_v40, %v8392_v22  ;;  %v1327_v60 = vrot.slane %v680_v40, %v8395_v25 }
 0x1d5   :  { %v8602_v55 = vcombine.low %v2314_v20, %v2321_v7  ;;  %v5283_v58 = vcombine.low %v5261_v28, %v5268_v57  ;;  %v1331_v27 = vrot.slane %v680_v40, %v8398_v26  ;;  %v1335_v62 = vrot.slane %v680_v40, %v8401_v29 }
 0x1d6   :  { %779 = vmin.xlane.f32.xlu1 %v8364_v63  ;;  %v5284_v59 = vcombine.low %v5275_v48, %v5282_v51  ;;  %v1339_v13 = vrot.slane %v680_v40, %v8404_v30  ;;  %v1343_v35 = vrot.slane %v680_v40, %v8407_v34  ;;  %v2421_v33 = vcombine.low %v1315_v9, %v1319_v47 }
 0x1d7   :  { %777 = vmin.xlane.f32.xlu0 %v8369_v2  ;;  %v5291_v0 = vrot.slane %v5283_v58, %v8410_v36  ;;  %v2422_v31 = vcombine.low %v1323_v54, %v1327_v60  ;;  %v2423_v61 = vcombine.low %v1331_v27, %v1335_v62  ;;  %vm804_vm7 = vcmp.eq.s32.totalorder %v8383_v16, %v680_v40  ;;  %v744_v58 = vpop.xlane.xlu1 %743 }
 0x1d8   :  { %v5298_v24 = vrot.slane %v5284_v59, %v8410_v36  ;;  %v2424_v49 = vcombine.low %v1339_v13, %v1343_v35  ;;  %v2431_v15 = vrot.slane %v2421_v33, %v8410_v36  ;;  %7650 = vmatmul.mubr.msk.f32.gmra.mrb[4].mxu1 %vm804_vm7, %v7855_v23  ;;  %v4147_v63 = vrot.slane %v8561_v17, %v8386_v18  ;;  %v8656_v13 = vpop.xlane.xlu0 %741 }
 0x1d9   :  { %v2438_v53 = vrot.slane %v2422_v31, %v8410_v36  ;;  %v2445_v2 = vrot.slane %v2423_v61, %v8410_v36  ;;  %v4151_v43 = vrot.slane %v8561_v17, %v8389_v19  ;;  %v4155_v40 = vrot.slane %v8561_v17, %v8392_v22 }
 0x1da   :  { %783 = vmin.xlane.f32.xlu1 %v8372_v3  ;;  %v8624_v44 = vcombine.low %v5291_v0, %v5298_v24  ;;  %v2452_v42 = vrot.slane %v2424_v49, %v8410_v36  ;;  %v4159_v45 = vrot.slane %v8561_v17, %v8395_v25  ;;  %v4163_v50 = vrot.slane %v8561_v17, %v8398_v26 }
 0x1db   :  { %781 = vmin.xlane.f32.xlu0 %v8375_v1  ;;  %v2453_v4 = vcombine.low %v2431_v15, %v2438_v53  ;;  %v4167_v10 = vrot.slane %v8561_v17, %v8401_v29  ;;  %v4171_v20 = vrot.slane %v8561_v17, %v8404_v30  ;;  %v4175_v3 = vrot.slane %v8561_v17, %v8407_v34 }
 0x1dc   :  { %v2454_v21 = vcombine.low %v2445_v2, %v2452_v42  ;;  %v5202_v9 = vcombine.low %v4147_v63, %v4151_v43  ;;  %v5203_v7 = vcombine.low %v4155_v40, %v4159_v45  ;;  %v1283_v28 = vrot.slane %v8585_v6, %v8386_v18 }
 0x1dd   :  { %v2461_v57 = vrot.slane %v2453_v4, %v8410_v36  ;;  %v5204_v48 = vcombine.low %v4163_v50, %v4167_v10  ;;  %v5205_v1 = vcombine.low %v4171_v20, %v4175_v3  ;;  %v1287_v51 = vrot.slane %v8585_v6, %v8389_v19  ;;  %v684_v10 = vpop.xlane.xlu1 %683 }
 0x1de   :  { %787 = vmin.xlane.f32.xlu1 %v8438_v8  ;;  %v2468_v47 = vrot.slane %v2454_v21, %v8410_v36  ;;  %v5212_v54 = vrot.slane %v5202_v9, %v8410_v36  ;;  %v5219_v17 = vrot.slane %v5203_v7, %v8410_v36  ;;  %v1291_v60 = vrot.slane %v8585_v6, %v8392_v22  ;;  %v8683_v9 = vpop.xlane.xlu0 %681 }
 0x1df   :  { %785 = vmin.xlane.f32.xlu0 %v8443_v12  ;;  %v5226_v27 = vrot.slane %v5204_v48, %v8410_v36  ;;  %v5233_v62 = vrot.slane %v5205_v1, %v8410_v36  ;;  %v1295_v59 = vrot.slane %v8585_v6, %v8395_v25  ;;  %v1299_v8 = vrot.slane %v8585_v6, %v8398_v26 }
 0x1e0   :  { %v8658_v35 = vcombine.low %v2461_v57, %v2468_v47  ;;  %v5234_v33 = vcombine.low %v5212_v54, %v5219_v17  ;;  %v1303_v0 = vrot.slane %v8585_v6, %v8401_v29  ;;  %v1307_v12 = vrot.slane %v8585_v6, %v8404_v30 }
 0x1e1   :  { %v5235_v31 = vcombine.low %v5226_v27, %v5233_v62  ;;  %v1311_v61 = vrot.slane %v8585_v6, %v8407_v34  ;;  %v2372_v24 = vcombine.low %v1283_v28, %v1287_v51  ;;  %v2373_v49 = vcombine.low %v1291_v60, %v1295_v59 }
 0x1e2   :  { %791 = vmin.xlane.f32.xlu1 %v8453_v41  ;;  %v5242_v15 = vrot.slane %v5234_v33, %v8410_v36  ;;  %v2374_v63 = vcombine.low %v1299_v8, %v1303_v0  ;;  %v4243_v53 = vrot.slane %v744_v58, %v8386_v18  ;;  %v4247_v2 = vrot.slane %v744_v58, %v8389_v19 }
 0x1e3   :  { %789 = vmin.xlane.f32.xlu0 %v8457_v56  ;;  %v5249_v43 = vrot.slane %v5235_v31, %v8410_v36  ;;  %v2375_v40 = vcombine.low %v1307_v12, %v1311_v61  ;;  %v2382_v42 = vrot.slane %v2372_v24, %v8410_v36  ;;  %v2389_v6 = vrot.slane %v2373_v49, %v8410_v36 }
 0x1e4   :  { %v2396_v45 = vrot.slane %v2374_v63, %v8410_v36  ;;  %v4251_v41 = vrot.slane %v744_v58, %v8392_v22  ;;  %v4255_v50 = vrot.slane %v744_v58, %v8395_v25  ;;  %v4259_v4 = vrot.slane %v744_v58, %v8398_v26 }
 0x1e5   :  { %v8678_v20 = vcombine.low %v5242_v15, %v5249_v43  ;;  %v2403_v56 = vrot.slane %v2375_v40, %v8410_v36  ;;  %v2404_v3 = vcombine.low %v2382_v42, %v2389_v6  ;;  %v4263_v21 = vrot.slane %v744_v58, %v8401_v29 }
 0x1e6   :  { %795 = vmin.xlane.f32.xlu1 %v8470_v46  ;;  %v4267_v7 = vrot.slane %v744_v58, %v8404_v30  ;;  %v4271_v28 = vrot.slane %v744_v58, %v8407_v34  ;;  %v5349_v57 = vcombine.low %v4243_v53, %v4247_v2  ;;  %v5350_v48 = vcombine.low %v4251_v41, %v4255_v50 }
 0x1e7   :  { %793 = vmin.xlane.f32.xlu0 %v8472_v14  ;;  %v2405_v1 = vcombine.low %v2396_v45, %v2403_v56  ;;  %v2412_v51 = vrot.slane %v2404_v3, %v8410_v36  ;;  %v5351_v47 = vcombine.low %v4259_v4, %v4263_v21  ;;  %vm805_vm8 = vcmp.eq.s32.totalorder %v8383_v16, %v8683_v9 }
 0x1e8   :  { %v5352_v54 = vcombine.low %v4267_v7, %v4271_v28  ;;  %v5359_v46 = vrot.slane %v5349_v57, %v8410_v36  ;;  %v5366_v17 = vrot.slane %v5350_v48, %v8410_v36  ;;  %7652 = vmatprep.mubr.msk.f32.mxu1 %vm805_vm8, %v7855_v23  ;;  %v1379_v60 = vrot.slane %v684_v10, %v8386_v18 }
 0x1e9   :  { %v2419_v58 = vrot.slane %v2405_v1, %v8410_v36  ;;  %v5373_v14 = vrot.slane %v5351_v47, %v8410_v36  ;;  %v1383_v27 = vrot.slane %v684_v10, %v8389_v19  ;;  %v1387_v62 = vrot.slane %v684_v10, %v8392_v22 }
 0x1ea   :  { %v5380_v59 = vrot.slane %v5352_v54, %v8410_v36  ;;  %v5381_v8 = vcombine.low %v5359_v46, %v5366_v17  ;;  %v1391_v33 = vrot.slane %v684_v10, %v8395_v25  ;;  %v1395_v0 = vrot.slane %v684_v10, %v8398_v26 }
 0x1eb   :  { %v8702_v12 = vcombine.low %v2412_v51, %v2419_v58  ;;  %v1399_v31 = vrot.slane %v684_v10, %v8401_v29  ;;  %v1403_v61 = vrot.slane %v684_v10, %v8404_v30  ;;  %v1407_v24 = vrot.slane %v684_v10, %v8407_v34 }
 0x1ec   :  { %v5382_v49 = vcombine.low %v5373_v14, %v5380_v59  ;;  %v5389_v15 = vrot.slane %v5381_v8, %v8410_v36  ;;  %v2519_v63 = vcombine.low %v1379_v60, %v1383_v27  ;;  %v2520_v53 = vcombine.low %v1387_v62, %v1391_v33  ;;  %v8740_v62 = vpop.xlane.xlu0 %745  ;;  %v748_v59 = vpop.xlane.xlu1 %747 }
 0x1ed   :  { %v2521_v2 = vcombine.low %v1395_v0, %v1399_v31  ;;  %v2522_v43 = vcombine.low %v1403_v61, %v1407_v24  ;;  %vm806_vm9 = vcmp.eq.s32.totalorder %v8383_v16, %v684_v10  ;;  %v4211_v40 = vrot.slane %v8656_v13, %v8386_v18 }
 0x1ee   :  { %v5396_v42 = vrot.slane %v5382_v49, %v8410_v36  ;;  %v2529_v6 = vrot.slane %v2519_v63, %v8410_v36  ;;  %v2536_v45 = vrot.slane %v2520_v53, %v8410_v36  ;;  %7653 = vmatmul.mubr.msk.f32.gmra.mrb[6].mxu1 %vm806_vm9, %v7855_v23  ;;  %v4215_v41 = vrot.slane %v8656_v13, %v8389_v19 }
 0x1ef   :  { %v2543_v50 = vrot.slane %v2521_v2, %v8410_v36  ;;  %v2550_v4 = vrot.slane %v2522_v43, %v8410_v36  ;;  %v4219_v10 = vrot.slane %v8656_v13, %v8392_v22  ;;  %v4223_v56 = vrot.slane %v8656_v13, %v8395_v25 }
 0x1f0   :  { %v8723_v3 = vcombine.low %v5389_v15, %v5396_v42  ;;  %v2551_v21 = vcombine.low %v2529_v6, %v2536_v45  ;;  %v4227_v7 = vrot.slane %v8656_v13, %v8398_v26  ;;  %v4231_v28 = vrot.slane %v8656_v13, %v8401_v29 }
 0x1f1   :  { %v2552_v57 = vcombine.low %v2543_v50, %v2550_v4  ;;  %v4235_v48 = vrot.slane %v8656_v13, %v8404_v30  ;;  %v4239_v1 = vrot.slane %v8656_v13, %v8407_v34  ;;  %v5300_v51 = vcombine.low %v4211_v40, %v4215_v41 }
 0x1f2   :  { %v2559_v47 = vrot.slane %v2551_v21, %v8410_v36  ;;  %v5301_v54 = vcombine.low %v4219_v10, %v4223_v56  ;;  %v5302_v46 = vcombine.low %v4227_v7, %v4231_v28  ;;  %v1347_v17 = vrot.slane %v8683_v9, %v8386_v18  ;;  %v686_v21 = vpop.xlane.xlu0 %685 }
 0x1f3   :  { %v2566_v60 = vrot.slane %v2552_v57, %v8410_v36  ;;  %v5303_v58 = vcombine.low %v4235_v48, %v4239_v1  ;;  %v5310_v14 = vrot.slane %v5300_v51, %v8410_v36  ;;  %v1351_v27 = vrot.slane %v8683_v9, %v8389_v19 }
 0x1f4   :  { %v5317_v13 = vrot.slane %v5301_v54, %v8410_v36  ;;  %v5324_v8 = vrot.slane %v5302_v46, %v8410_v36  ;;  %v1355_v33 = vrot.slane %v8683_v9, %v8392_v22  ;;  %v1359_v0 = vrot.slane %v8683_v9, %v8395_v25 }
 0x1f5   :  { %v8748_v31 = vcombine.low %v2559_v47, %v2566_v60  ;;  %v5331_v61 = vrot.slane %v5303_v58, %v8410_v36  ;;  %v1363_v24 = vrot.slane %v8683_v9, %v8398_v26  ;;  %v1367_v49 = vrot.slane %v8683_v9, %v8401_v29 }
 0x1f6   :  { %v5332_v15 = vcombine.low %v5310_v14, %v5317_v13  ;;  %v1371_v63 = vrot.slane %v8683_v9, %v8404_v30  ;;  %v1375_v53 = vrot.slane %v8683_v9, %v8407_v34  ;;  %v2470_v2 = vcombine.low %v1347_v17, %v1351_v27 }
 0x1f7   :  { %3748 = vperm.xlu1 %7779, %v8474_v38   ;;  %v5333_v43 = vcombine.low %v5324_v8, %v5331_v61  ;;  %v2471_v40 = vcombine.low %v1355_v33, %v1359_v0  ;;  %v2472_v42 = vcombine.low %v1363_v24, %v1367_v49  ;;  %v4307_v6 = vrot.slane %v748_v59, %v8386_v18  ;;  %v8791_v49 = vpop.xlane.xlu1 %687 }
 0x1f8   :  { %v5340_v45 = vrot.slane %v5332_v15, %v8410_v36  ;;  %v2473_v41 = vcombine.low %v1371_v63, %v1375_v53  ;;  %v2480_v50 = vrot.slane %v2470_v2, %v8410_v36  ;;  %v4311_v4 = vrot.slane %v748_v59, %v8389_v19 }
 0x1f9   :  { %v5347_v10 = vrot.slane %v5333_v43, %v8410_v36  ;;  %v2487_v56 = vrot.slane %v2471_v40, %v8410_v36  ;;  %v2494_v9 = vrot.slane %v2472_v42, %v8410_v36  ;;  %v4315_v38 = vrot.slane %v748_v59, %v8392_v22 }
 0x1fa   :  { %v2501_v7 = vrot.slane %v2473_v41, %v8410_v36  ;;  %v4319_v28 = vrot.slane %v748_v59, %v8395_v25  ;;  %v4323_v57 = vrot.slane %v748_v59, %v8398_v26  ;;  %v4327_v48 = vrot.slane %v748_v59, %v8401_v29 }
 0x1fb   :  { %6673 = vperm.xlu1 %7779, %v8526_v39   ;;  %v8773_v1 = vcombine.low %v5340_v45, %v5347_v10  ;;  %v2502_v51 = vcombine.low %v2480_v50, %v2487_v56  ;;  %v4331_v47 = vrot.slane %v748_v59, %v8404_v30  ;;  %v4335_v54 = vrot.slane %v748_v59, %v8407_v34 }
 0x1fc   :  { %v2503_v46 = vcombine.low %v2494_v9, %v2501_v7  ;;  %v5447_v17 = vcombine.low %v4307_v6, %v4311_v4  ;;  %v5448_v60 = vcombine.low %v4315_v38, %v4319_v28  ;;  %v5449_v58 = vcombine.low %v4323_v57, %v4327_v48  ;;  %v8823_v48 = vpop.xlane.xlu1 %751 }
 0x1fd   :  { %6676 = vperm.xlu0 %7780, %v8540_v52   ;;  %v2510_v14 = vrot.slane %v2502_v51, %v8410_v36  ;;  %v5450_v27 = vcombine.low %v4331_v47, %v4335_v54  ;;  %vm807_vm10 = vcmp.eq.s32.totalorder %v8383_v16, %v686_v21  ;;  %v1411_v39 = vrot.slane %v686_v21, %v8386_v18 }
 0x1fe   :  { %v2517_v13 = vrot.slane %v2503_v46, %v8410_v36  ;;  %v5457_v8 = vrot.slane %v5447_v17, %v8410_v36  ;;  %v5464_v33 = vrot.slane %v5448_v60, %v8410_v36  ;;  %v5471_v59 = vrot.slane %v5449_v58, %v8410_v36  ;;  %7655 = vmatprep.mubr.msk.f32.mxu1 %vm807_vm10, %v7855_v23 }
 0x1ff   :  { %3754 = vperm.xlu1 %7779, %v8581_v32   ;;  %v5478_v52 = vrot.slane %v5450_v27, %v8410_v36  ;;  %v1415_v0 = vrot.slane %v686_v21, %v8389_v19  ;;  %v1419_v61 = vrot.slane %v686_v21, %v8392_v22  ;;  %v1423_v24 = vrot.slane %v686_v21, %v8395_v25  ;;  %v8798_v32 = vpop.xlane.xlu0 %749 }
 0x200   :  { %v8793_v15 = vcombine.low %v2510_v14, %v2517_v13  ;;  %v5479_v63 = vcombine.low %v5457_v8, %v5464_v33  ;;  %v1427_v53 = vrot.slane %v686_v21, %v8398_v26  ;;  %v1431_v2 = vrot.slane %v686_v21, %v8401_v29 }
 0x201   :  { %3745 = vperm.xlu0 %7780, %v8538_v37   ;;  %v5480_v43 = vcombine.low %v5471_v59, %v5478_v52  ;;  %v1435_v40 = vrot.slane %v686_v21, %v8404_v30  ;;  %v1439_v42 = vrot.slane %v686_v21, %v8407_v34  ;;  %v2568_v6 = vcombine.low %v1411_v39, %v1415_v0 }
 0x202   :  { %v5487_v45 = vrot.slane %v5479_v63, %v8410_v36  ;;  %v2569_v41 = vcombine.low %v1419_v61, %v1423_v24  ;;  %v2570_v50 = vcombine.low %v1427_v53, %v1431_v2  ;;  %vm808_vm11 = vcmp.eq.s32.totalorder %v8383_v16, %v8791_v49  ;;  %v8857_v2 = vpop.xlane.xlu1 %691 }
 0x203   :  { %3751 = vperm.xlu1 %7779, %v8602_v55   ;;  %v5494_v4 = vrot.slane %v5480_v43, %v8410_v36  ;;  %v2571_v37 = vcombine.low %v1435_v40, %v1439_v42  ;;  %v2578_v10 = vrot.slane %v2568_v6, %v8410_v36  ;;  %7656 = vmatmul.mubr.msk.f32.gmra.mrb[8].mxu1 %vm808_vm11, %v7855_v23  ;;  %v8832_v46 = vpop.xlane.xlu0 %689 }
 0x204   :  { %v2585_v56 = vrot.slane %v2569_v41, %v8410_v36  ;;  %v2592_v9 = vrot.slane %v2570_v50, %v8410_v36  ;;  %v4275_v38 = vrot.slane %v8740_v62, %v8386_v18  ;;  %v4279_v21 = vrot.slane %v8740_v62, %v8389_v19 }
 0x205   :  { %6682 = vperm.xlu0 %7780, %v8624_v44   ;;  %v8816_v55 = vcombine.low %v5487_v45, %v5494_v4  ;;  %v2599_v7 = vrot.slane %v2571_v37, %v8410_v36  ;;  %v4283_v28 = vrot.slane %v8740_v62, %v8392_v22  ;;  %v4287_v57 = vrot.slane %v8740_v62, %v8395_v25 }
 0x206   :  { %v2600_v51 = vcombine.low %v2578_v10, %v2585_v56  ;;  %v4291_v47 = vrot.slane %v8740_v62, %v8398_v26  ;;  %v4295_v54 = vrot.slane %v8740_v62, %v8401_v29  ;;  %v4299_v44 = vrot.slane %v8740_v62, %v8404_v30 }
 0x207   :  { %3760 = vperm.xlu1 %7779, %v8658_v35   ;;  %v2601_v17 = vcombine.low %v2592_v9, %v2599_v7  ;;  %v4303_v60 = vrot.slane %v8740_v62, %v8407_v34  ;;  %v5398_v58 = vcombine.low %v4275_v38, %v4279_v21  ;;  %v5399_v14 = vcombine.low %v4283_v28, %v4287_v57 }
 0x208   :  { %v2608_v27 = vrot.slane %v2600_v51, %v8410_v36  ;;  %v5400_v39 = vcombine.low %v4291_v47, %v4295_v54  ;;  %vm809_vm12 = vcmp.eq.s32.totalorder %v8383_v16, %v8832_v46  ;;  %v4339_v13 = vrot.slane %v8798_v32, %v8386_v18  ;;  %v8891_v54 = vpop.xlane.xlu0 %693 }
 0x209   :  { %6679 = vperm.xlu0 %7780, %v8678_v20   ;;  %v2615_v35 = vrot.slane %v2601_v17, %v8410_v36  ;;  %v5401_v8 = vcombine.low %v4299_v44, %v4303_v60  ;;  %v5408_v33 = vrot.slane %v5398_v58, %v8410_v36  ;;  %v5415_v62 = vrot.slane %v5399_v14, %v8410_v36 }
 0x20a   :  { %v5422_v59 = vrot.slane %v5400_v39, %v8410_v36  ;;  %7658 = vmatprep.mubr.msk.f32.mxu1 %vm809_vm12, %v7855_v23  ;;  %v4343_v52 = vrot.slane %v8798_v32, %v8389_v19  ;;  %v4347_v0 = vrot.slane %v8798_v32, %v8392_v22  ;;  %v4351_v20 = vrot.slane %v8798_v32, %v8395_v25 }
 0x20b   :  { %3757 = vperm.xlu1 %7779, %v8702_v12   ;;  %v2616_v61 = vcombine.low %v2608_v27, %v2615_v35  ;;  %v5429_v24 = vrot.slane %v5401_v8, %v8410_v36  ;;  %v5430_v63 = vcombine.low %v5408_v33, %v5415_v62  ;;  %v4355_v53 = vrot.slane %v8798_v32, %v8398_v26 }
 0x20c   :  { %v4359_v43 = vrot.slane %v8798_v32, %v8401_v29  ;;  %v4363_v40 = vrot.slane %v8798_v32, %v8404_v30  ;;  %v4367_v42 = vrot.slane %v8798_v32, %v8407_v34  ;;  %v5496_v6 = vcombine.low %v4339_v13, %v4343_v52 }
 0x20d   :  { %6688 = vperm.xlu0 %7780, %v8723_v3   ;;  %v5431_v12 = vcombine.low %v5422_v59, %v5429_v24  ;;  %v5438_v45 = vrot.slane %v5430_v63, %v8410_v36  ;;  %v5497_v41 = vcombine.low %v4347_v0, %v4351_v20  ;;  %vm810_vm13 = vcmp.eq.s32.totalorder %v8383_v16, %v8857_v2  ;;  %v8916_v24 = vpop.xlane.xlu1 %695 }
 0x20e   :  { %v5498_v50 = vcombine.low %v4355_v53, %v4359_v43  ;;  %v5499_v4 = vcombine.low %v4363_v40, %v4367_v42  ;;  %v5506_v37 = vrot.slane %v5496_v6, %v8410_v36  ;;  %7659 = vmatmul.mubr.msk.f32.gmra.mrb[10].mxu1 %vm810_vm13, %v7855_v23  ;;  %v1443_v10 = vrot.slane %v8791_v49, %v8386_v18 }
 0x20f   :  { %3766 = vperm.xlu1 %7779, %v8748_v31   ;;  %v5445_v3 = vrot.slane %v5431_v12, %v8410_v36  ;;  %v5513_v32 = vrot.slane %v5497_v41, %v8410_v36  ;;  %v1447_v56 = vrot.slane %v8791_v49, %v8389_v19  ;;  %v1451_v9 = vrot.slane %v8791_v49, %v8392_v22 }
 0x210   :  { %v5520_v38 = vrot.slane %v5498_v50, %v8410_v36  ;;  %v5527_v21 = vrot.slane %v5499_v4, %v8410_v36  ;;  %v1455_v7 = vrot.slane %v8791_v49, %v8395_v25  ;;  %v1459_v31 = vrot.slane %v8791_v49, %v8398_v26 }
 0x211   :  { %6685 = vperm.xlu0 %7780, %v8773_v1   ;;  %v5446_v28 = vcombine.low %v5438_v45, %v5445_v3  ;;  %v5528_v57 = vcombine.low %v5506_v37, %v5513_v32  ;;  %v1463_v51 = vrot.slane %v8791_v49, %v8401_v29  ;;  %v1467_v47 = vrot.slane %v8791_v49, %v8404_v30 }
 0x212   :  { %v5529_v44 = vcombine.low %v5520_v38, %v5527_v21  ;;  %v1471_v17 = vrot.slane %v8791_v49, %v8407_v34  ;;  %v2617_v60 = vcombine.low %v1443_v10, %v1447_v56  ;;  %v2618_v58 = vcombine.low %v1451_v9, %v1455_v7  ;;  %v8945_v7 = vpop.xlane.xlu0 %697 }
 0x213   :  { %3763 = vperm.xlu1 %7779, %v8793_v15   ;;  %v5536_v1 = vrot.slane %v5528_v57, %v8410_v36  ;;  %v2619_v14 = vcombine.low %v1459_v31, %v1463_v51  ;;  %vm811_vm14 = vcmp.eq.s32.totalorder %v8383_v16, %v8891_v54  ;;  %v1475_v27 = vrot.slane %v8832_v46, %v8386_v18 }
 0x214   :  { %v5543_v39 = vrot.slane %v5529_v44, %v8410_v36  ;;  %v2620_v13 = vcombine.low %v1467_v47, %v1471_v17  ;;  %v2627_v35 = vrot.slane %v2617_v60, %v8410_v36  ;;  %v2634_v49 = vrot.slane %v2618_v58, %v8410_v36  ;;  %7661 = vmatprep.mubr.msk.f32.mxu1 %vm811_vm14, %v7855_v23 }
 0x215   :  { %6694 = vperm.xlu0 %7780, %v8816_v55   ;;  %v2641_v15 = vrot.slane %v2619_v14, %v8410_v36  ;;  %v1479_v8 = vrot.slane %v8832_v46, %v8389_v19  ;;  %v1483_v33 = vrot.slane %v8832_v46, %v8392_v22  ;;  %v1487_v62 = vrot.slane %v8832_v46, %v8395_v25 }
 0x216   :  { %v5544_v59 = vcombine.low %v5536_v1, %v5543_v39  ;;  %v2648_v52 = vrot.slane %v2620_v13, %v8410_v36  ;;  %v2649_v0 = vcombine.low %v2627_v35, %v2634_v49  ;;  %v1491_v20 = vrot.slane %v8832_v46, %v8398_v26  ;;  %v8965_v35 = vpop.xlane.xlu1 %699 }
 0x217   :  { %3769 = vperm.xlu1 %7779, %v2616_v61   ;;  %v1495_v55 = vrot.slane %v8832_v46, %v8401_v29  ;;  %v1499_v63 = vrot.slane %v8832_v46, %v8404_v30  ;;  %v1503_v53 = vrot.slane %v8832_v46, %v8407_v34  ;;  %v2666_v43 = vcombine.low %v1475_v27, %v1479_v8 }
 0x218   :  { %v2650_v40 = vcombine.low %v2641_v15, %v2648_v52  ;;  %v2657_v42 = vrot.slane %v2649_v0, %v8410_v36  ;;  %v2667_v6 = vcombine.low %v1483_v33, %v1487_v62  ;;  %vm812_vm15 = vcmp.eq.s32.totalorder %v8383_v16, %v8916_v24 }
 0x219   :  { %6691 = vperm.xlu0 %7780, %v5446_v28   ;;  %v2668_v12 = vcombine.low %v1491_v20, %v1495_v55  ;;  %v2669_v61 = vcombine.low %v1499_v63, %v1503_v53  ;;  %v2676_v45 = vrot.slane %v2666_v43, %v8410_v36  ;;  %7662 = vmatmul.mubr.msk.f32.gmra.mrb[12].mxu1 %vm812_vm15, %v7855_v23 }
 0x21a   :  { %v2664_v41 = vrot.slane %v2650_v40, %v8410_v36  ;;  %v2683_v50 = vrot.slane %v2667_v6, %v8410_v36  ;;  %v1507_v46 = vrot.slane %v8857_v2, %v8386_v18  ;;  %v1511_v4 = vrot.slane %v8857_v2, %v8389_v19 }
 0x21b   :  { %6697 = vperm.xlu1 %7779, %v5544_v59   ;;  %v2690_v37 = vrot.slane %v2668_v12, %v8410_v36  ;;  %v2697_v10 = vrot.slane %v2669_v61, %v8410_v36  ;;  %v1515_v3 = vrot.slane %v8857_v2, %v8392_v22  ;;  %v1519_v32 = vrot.slane %v8857_v2, %v8395_v25  ;;  %v8985_v12 = vpop.xlane.xlu1 %703 }
 0x21c   :  { %v2665_v56 = vcombine.low %v2657_v42, %v2664_v41  ;;  %v2698_v9 = vcombine.low %v2676_v45, %v2683_v50  ;;  %v1523_v38 = vrot.slane %v8857_v2, %v8398_v26  ;;  %v1527_v21 = vrot.slane %v8857_v2, %v8401_v29  ;;  %v8991_v41 = vpop.xlane.xlu0 %701 }
 0x21d   :  { %v2699_v31 = vcombine.low %v2690_v37, %v2697_v10  ;;  %v1531_v28 = vrot.slane %v8857_v2, %v8404_v30  ;;  %v1535_v57 = vrot.slane %v8857_v2, %v8407_v34  ;;  %v2715_v51 = vcombine.low %v1507_v46, %v1511_v4 }
 0x21e   :  { %3772 = vperm.xlu0 %7780, %v2665_v56   ;;  %v2706_v47 = vrot.slane %v2698_v9, %v8410_v36  ;;  %v2716_v44 = vcombine.low %v1515_v3, %v1519_v32  ;;  %v2717_v17 = vcombine.low %v1523_v38, %v1527_v21  ;;  %vm813_vm1 = vcmp.eq.s32.totalorder %v8383_v16, %v8945_v7 }
 0x21f   :  { %v2713_v60 = vrot.slane %v2699_v31, %v8410_v36  ;;  %v2718_v58 = vcombine.low %v1531_v28, %v1535_v57  ;;  %v2725_v1 = vrot.slane %v2715_v51, %v8410_v36  ;;  %7664 = vmatprep.mubr.msk.f32.mxu1 %vm813_vm1, %v7855_v23  ;;  %v1539_v14 = vrot.slane %v8891_v54, %v8386_v18 }
 0x220   :  { %v2732_v2 = vrot.slane %v2716_v44, %v8410_v36  ;;  %v2739_v27 = vrot.slane %v2717_v17, %v8410_v36  ;;  %v1543_v39 = vrot.slane %v8891_v54, %v8389_v19  ;;  %v1547_v13 = vrot.slane %v8891_v54, %v8392_v22 }
 0x221   :  { %v2714_v49 = vcombine.low %v2706_v47, %v2713_v60  ;;  %v2746_v15 = vrot.slane %v2718_v58, %v8410_v36  ;;  %v1551_v8 = vrot.slane %v8891_v54, %v8395_v25  ;;  %v1555_v33 = vrot.slane %v8891_v54, %v8398_v26  ;;  %v9010_v47 = vpop.xlane.xlu1 %707 }
 0x222   :  { %v2747_v62 = vcombine.low %v2725_v1, %v2732_v2  ;;  %v1559_v59 = vrot.slane %v8891_v54, %v8401_v29  ;;  %v1563_v52 = vrot.slane %v8891_v54, %v8404_v30  ;;  %v1567_v0 = vrot.slane %v8891_v54, %v8407_v34 }
 0x223   :  { %3775 = vperm.xlu1 %7779, %v2714_v49   ;;  %v2748_v20 = vcombine.low %v2739_v27, %v2746_v15  ;;  %v2764_v55 = vcombine.low %v1539_v14, %v1543_v39  ;;  %v2765_v63 = vcombine.low %v1547_v13, %v1551_v8  ;;  %vm814_vm2 = vcmp.eq.s32.totalorder %v8383_v16, %v8965_v35  ;;  %v9023_v27 = vpop.xlane.xlu0 %705 }
 0x224   :  { %v2755_v53 = vrot.slane %v2747_v62, %v8410_v36  ;;  %v2766_v43 = vcombine.low %v1555_v33, %v1559_v59  ;;  %v2767_v40 = vcombine.low %v1563_v52, %v1567_v0  ;;  %7665 = vmatmul.mubr.msk.f32.gmra.mrb[14].mxu1 %vm814_vm2, %v7855_v23  ;;  %v1571_v42 = vrot.slane %v8916_v24, %v8386_v18 }
 0x225   :  { %v2762_v6 = vrot.slane %v2748_v20, %v8410_v36  ;;  %v2774_v54 = vrot.slane %v2764_v55, %v8410_v36  ;;  %v2781_v61 = vrot.slane %v2765_v63, %v8410_v36  ;;  %v1575_v45 = vrot.slane %v8916_v24, %v8389_v19 }
 0x226   :  { %v2788_v50 = vrot.slane %v2766_v43, %v8410_v36  ;;  %v2795_v46 = vrot.slane %v2767_v40, %v8410_v36  ;;  %v1579_v4 = vrot.slane %v8916_v24, %v8392_v22  ;;  %v1583_v37 = vrot.slane %v8916_v24, %v8395_v25  ;;  %v9042_v40 = vpop.xlane.xlu1 %711 }
 0x227   :  { %v2763_v10 = vcombine.low %v2755_v53, %v2762_v6  ;;  %v2796_v3 = vcombine.low %v2774_v54, %v2781_v61  ;;  %v1587_v32 = vrot.slane %v8916_v24, %v8398_v26  ;;  %v1591_v56 = vrot.slane %v8916_v24, %v8401_v29  ;;  %v9049_v61 = vpop.xlane.xlu0 %709 }
 0x228   :  { %v2797_v9 = vcombine.low %v2788_v50, %v2795_v46  ;;  %v1595_v38 = vrot.slane %v8916_v24, %v8404_v30  ;;  %v1599_v21 = vrot.slane %v8916_v24, %v8407_v34  ;;  %v2813_v31 = vcombine.low %v1571_v42, %v1575_v45 }
 0x229   :  { %3778 = vperm.xlu0 %7780, %v2763_v10   ;;  %v2804_v28 = vrot.slane %v2796_v3, %v8410_v36  ;;  %v2814_v57 = vcombine.low %v1579_v4, %v1583_v37  ;;  %v2815_v51 = vcombine.low %v1587_v32, %v1591_v56  ;;  %vm815_vm3 = vcmp.eq.s32.totalorder %v8383_v16, %v8991_v41 }
 0x22a   :  { %v2811_v44 = vrot.slane %v2797_v9, %v8410_v36  ;;  %v2816_v17 = vcombine.low %v1595_v38, %v1599_v21  ;;  %v2823_v60 = vrot.slane %v2813_v31, %v8410_v36  ;;  %7667 = vmatprep.mubr.msk.f32.mxu1 %vm815_vm3, %v7855_v23  ;;  %v1603_v24 = vrot.slane %v8945_v7, %v8386_v18 }
 0x22b   :  { %v2830_v58 = vrot.slane %v2814_v57, %v8410_v36  ;;  %v2837_v1 = vrot.slane %v2815_v51, %v8410_v36  ;;  %v1607_v14 = vrot.slane %v8945_v7, %v8389_v19  ;;  %v1611_v2 = vrot.slane %v8945_v7, %v8392_v22 }
 0x22c   :  { %v2812_v39 = vcombine.low %v2804_v28, %v2811_v44  ;;  %v2844_v13 = vrot.slane %v2816_v17, %v8410_v36  ;;  %v1615_v49 = vrot.slane %v8945_v7, %v8395_v25  ;;  %v1619_v15 = vrot.slane %v8945_v7, %v8398_v26 }
 0x22d   :  { %v2845_v8 = vcombine.low %v2823_v60, %v2830_v58  ;;  %v1623_v33 = vrot.slane %v8945_v7, %v8401_v29  ;;  %v1627_v62 = vrot.slane %v8945_v7, %v8404_v30  ;;  %v1631_v59 = vrot.slane %v8945_v7, %v8407_v34 }
 0x22e   :  { %3781 = vperm.xlu1 %7779, %v2812_v39   ;;  %v2846_v52 = vcombine.low %v2837_v1, %v2844_v13  ;;  %v2862_v0 = vcombine.low %v1603_v24, %v1607_v14  ;;  %v2863_v20 = vcombine.low %v1611_v2, %v1615_v49  ;;  %vm816_vm4 = vcmp.eq.s32.totalorder %v8383_v16, %v8985_v12  ;;  %v9081_v2 = vpop.xlane.xlu0 %713 }
 0x22f   :  { %v2853_v55 = vrot.slane %v2845_v8, %v8410_v36  ;;  %v2864_v63 = vcombine.low %v1619_v15, %v1623_v33  ;;  %v2865_v53 = vcombine.low %v1627_v62, %v1631_v59  ;;  %7668 = vmatmul.mubr.msk.f32.gmra.mrb[16].mxu1 %vm816_vm4, %v7855_v23  ;;  %v1635_v43 = vrot.slane %v8965_v35, %v8386_v18 }
 0x230   :  { %v2860_v7 = vrot.slane %v2846_v52, %v8410_v36  ;;  %v2872_v42 = vrot.slane %v2862_v0, %v8410_v36  ;;  %v2879_v6 = vrot.slane %v2863_v20, %v8410_v36  ;;  %v1639_v54 = vrot.slane %v8965_v35, %v8389_v19 }
 0x231   :  { %v2886_v45 = vrot.slane %v2864_v63, %v8410_v36  ;;  %v2893_v50 = vrot.slane %v2865_v53, %v8410_v36  ;;  %v1643_v46 = vrot.slane %v8965_v35, %v8392_v22  ;;  %v1647_v4 = vrot.slane %v8965_v35, %v8395_v25 }
 0x232   :  { %v2861_v37 = vcombine.low %v2853_v55, %v2860_v7  ;;  %v2894_v10 = vcombine.low %v2872_v42, %v2879_v6  ;;  %v1651_v3 = vrot.slane %v8965_v35, %v8398_v26  ;;  %v1655_v32 = vrot.slane %v8965_v35, %v8401_v29 }
 0x233   :  { %v2895_v56 = vcombine.low %v2886_v45, %v2893_v50  ;;  %v1659_v9 = vrot.slane %v8965_v35, %v8404_v30  ;;  %v1663_v38 = vrot.slane %v8965_v35, %v8407_v34  ;;  %v2911_v21 = vcombine.low %v1635_v43, %v1639_v54  ;;  %v9073_v35 = vpop.xlane.xlu1 %715 }
 0x234   :  { %3784 = vperm.xlu0 %7780, %v2861_v37   ;;  %v2902_v31 = vrot.slane %v2894_v10, %v8410_v36  ;;  %v2912_v28 = vcombine.low %v1643_v46, %v1647_v4  ;;  %v2913_v57 = vcombine.low %v1651_v3, %v1655_v32  ;;  %vm817_vm5 = vcmp.eq.s32.totalorder %v8383_v16, %v9023_v27  ;;  %v9113_v37 = vpop.xlane.xlu0 %717 }
 0x235   :  { %v2909_v51 = vrot.slane %v2895_v56, %v8410_v36  ;;  %v2914_v44 = vcombine.low %v1659_v9, %v1663_v38  ;;  %v2921_v17 = vrot.slane %v2911_v21, %v8410_v36  ;;  %7670 = vmatprep.mubr.msk.f32.mxu1 %vm817_vm5, %v7855_v23  ;;  %v1667_v60 = vrot.slane %v8991_v41, %v8386_v18 }
 0x236   :  { %v2928_v24 = vrot.slane %v2912_v28, %v8410_v36  ;;  %v2935_v58 = vrot.slane %v2913_v57, %v8410_v36  ;;  %v1671_v1 = vrot.slane %v8991_v41, %v8389_v19  ;;  %v1675_v14 = vrot.slane %v8991_v41, %v8392_v22 }
 0x237   :  { %v2910_v39 = vcombine.low %v2902_v31, %v2909_v51  ;;  %v2942_v13 = vrot.slane %v2914_v44, %v8410_v36  ;;  %v1679_v49 = vrot.slane %v8991_v41, %v8395_v25  ;;  %v1683_v15 = vrot.slane %v8991_v41, %v8398_v26  ;;  %v9105_v54 = vpop.xlane.xlu1 %719 }
 0x238   :  { %v2943_v8 = vcombine.low %v2921_v17, %v2928_v24  ;;  %v1687_v33 = vrot.slane %v8991_v41, %v8401_v29  ;;  %v1691_v62 = vrot.slane %v8991_v41, %v8404_v30  ;;  %v1695_v59 = vrot.slane %v8991_v41, %v8407_v34 }
 0x239   :  { %3787 = vperm.xlu1 %7779, %v2910_v39   ;;  %v2944_v52 = vcombine.low %v2935_v58, %v2942_v13  ;;  %v2960_v0 = vcombine.low %v1667_v60, %v1671_v1  ;;  %v2961_v20 = vcombine.low %v1675_v14, %v1679_v49  ;;  %vm818_vm6 = vcmp.eq.s32.totalorder %v8383_v16, %v9010_v47 }
 0x23a   :  { %v2951_v55 = vrot.slane %v2943_v8, %v8410_v36  ;;  %v2962_v63 = vcombine.low %v1683_v15, %v1687_v33  ;;  %v2963_v53 = vcombine.low %v1691_v62, %v1695_v59  ;;  %7671 = vmatmul.mubr.msk.f32.gmra.mrb[18].mxu1 %vm818_vm6, %v7855_v23  ;;  %v1699_v43 = vrot.slane %v8985_v12, %v8386_v18 }
 0x23b   :  { %v2958_v7 = vrot.slane %v2944_v52, %v8410_v36  ;;  %v2970_v41 = vrot.slane %v2960_v0, %v8410_v36  ;;  %v2977_v42 = vrot.slane %v2961_v20, %v8410_v36  ;;  %v1703_v6 = vrot.slane %v8985_v12, %v8389_v19 }
 0x23c   :  { %v2984_v45 = vrot.slane %v2962_v63, %v8410_v36  ;;  %v2991_v50 = vrot.slane %v2963_v53, %v8410_v36  ;;  %v1707_v46 = vrot.slane %v8985_v12, %v8392_v22  ;;  %v1711_v4 = vrot.slane %v8985_v12, %v8395_v25 }
 0x23d   :  { %v2959_v10 = vcombine.low %v2951_v55, %v2958_v7  ;;  %v2992_v3 = vcombine.low %v2970_v41, %v2977_v42  ;;  %v1715_v32 = vrot.slane %v8985_v12, %v8398_v26  ;;  %v1719_v56 = vrot.slane %v8985_v12, %v8401_v29 }
 0x23e   :  { %v2993_v9 = vcombine.low %v2984_v45, %v2991_v50  ;;  %v1723_v38 = vrot.slane %v8985_v12, %v8404_v30  ;;  %v1727_v21 = vrot.slane %v8985_v12, %v8407_v34  ;;  %v3009_v31 = vcombine.low %v1699_v43, %v1703_v6 }
 0x23f   :  { %3790 = vperm.xlu0 %7780, %v2959_v10   ;;  %v3000_v28 = vrot.slane %v2992_v3, %v8410_v36  ;;  %v3010_v57 = vcombine.low %v1707_v46, %v1711_v4  ;;  %v3011_v51 = vcombine.low %v1715_v32, %v1719_v56  ;;  %vm819_vm7 = vcmp.eq.s32.totalorder %v8383_v16, %v9049_v61  ;;  %v9126_v44 = vpop.xlane.xlu1 %723 }
 0x240   :  { %v3007_v17 = vrot.slane %v2993_v9, %v8410_v36  ;;  %v3012_v60 = vcombine.low %v1723_v38, %v1727_v21  ;;  %v3019_v24 = vrot.slane %v3009_v31, %v8410_v36  ;;  %7673 = vmatprep.mubr.msk.f32.mxu1 %vm819_vm7, %v7855_v23  ;;  %v1731_v12 = vrot.slane %v9023_v27, %v8386_v18  ;;  %v9133_v58 = vpop.xlane.xlu0 %721 }
 0x241   :  { %v3026_v1 = vrot.slane %v3010_v57, %v8410_v36  ;;  %v3033_v14 = vrot.slane %v3011_v51, %v8410_v36  ;;  %v1735_v39 = vrot.slane %v9023_v27, %v8389_v19  ;;  %v1739_v13 = vrot.slane %v9023_v27, %v8392_v22 }
 0x242   :  { %v3008_v49 = vcombine.low %v3000_v28, %v3007_v17  ;;  %v3040_v15 = vrot.slane %v3012_v60, %v8410_v36  ;;  %v1743_v8 = vrot.slane %v9023_v27, %v8395_v25  ;;  %v1747_v33 = vrot.slane %v9023_v27, %v8398_v26 }
 0x243   :  { %v3041_v62 = vcombine.low %v3019_v24, %v3026_v1  ;;  %v1751_v59 = vrot.slane %v9023_v27, %v8401_v29  ;;  %v1755_v52 = vrot.slane %v9023_v27, %v8404_v30  ;;  %v1759_v0 = vrot.slane %v9023_v27, %v8407_v34  ;;  %v9152_v20 = vpop.xlane.xlu1 %727 }
 0x244   :  { %3793 = vperm.xlu1 %7779, %v3008_v49   ;;  %v3042_v55 = vcombine.low %v3033_v14, %v3040_v15  ;;  %v3058_v63 = vcombine.low %v1731_v12, %v1735_v39  ;;  %v3059_v53 = vcombine.low %v1739_v13, %v1743_v8  ;;  %vm820_vm8 = vcmp.eq.s32.totalorder %v8383_v16, %v9042_v40  ;;  %v9156_v43 = vpop.xlane.xlu0 %725 }
 0x245   :  { %v3049_v7 = vrot.slane %v3041_v62, %v8410_v36  ;;  %v3060_v41 = vcombine.low %v1747_v33, %v1751_v59  ;;  %v3061_v42 = vcombine.low %v1755_v52, %v1759_v0  ;;  %7674 = vmatmul.mubr.msk.f32.gmra.mrb[20].mxu1 %vm820_vm8, %v7855_v23  ;;  %vm821_vm9 = vcmp.eq.s32.totalorder %v8383_v16, %v9081_v2 }
 0x246   :  { %v3056_v27 = vrot.slane %v3042_v55, %v8410_v36  ;;  %v3068_v6 = vrot.slane %v3058_v63, %v8410_v36  ;;  %v3075_v45 = vrot.slane %v3059_v53, %v8410_v36  ;;  %7676 = vmatprep.mubr.msk.f32.mxu1 %vm821_vm9, %v7855_v23  ;;  %vm822_vm10 = vcmp.eq.s32.totalorder %v8383_v16, %v9073_v35 }
 0x247   :  { %v3082_v50 = vrot.slane %v3060_v41, %v8410_v36  ;;  %v3089_v46 = vrot.slane %v3061_v42, %v8410_v36  ;;  %vm823_vm11 = vcmp.eq.s32.totalorder %v8383_v16, %v9113_v37  ;;  %v9172_v4 = vpop.xlane.xlu1 %731  ;;  %v9177_v56 = vadd.s32 4294967288, %v8383_v16 }
 0x248   :  { %v3057_v10 = vcombine.low %v3049_v7, %v3056_v27  ;;  %v3090_v3 = vcombine.low %v3068_v6, %v3075_v45  ;;  %v9174_v32 = vpop.xlane.xlu0 %729  ;;  %vm824_vm12 = vcmp.eq.s32.totalorder %v8383_v16, %v9105_v54  ;;  %vm825_vm13 = vcmp.eq.s32.totalorder %v8383_v16, %v9133_v58 }
 0x249   :  { %v3091_v9 = vcombine.low %v3082_v50, %v3089_v46  ;;  %7677 = vmatmul.mubr.msk.f32.gmra.mrb[22].mxu1 %vm822_vm10, %v7855_v23  ;;  %vm826_vm14 = vcmp.eq.s32.totalorder %v8383_v16, %v9126_v44  ;;  %vm827_vm15 = vcmp.eq.s32.totalorder %v8383_v16, %v9156_v43  ;;  %v1763_v21 = vrot.slane %v9010_v47, %v8386_v18 }
 0x24a   :  { %3796 = vperm.xlu0 %7780, %v3057_v10   ;;  %v3098_v38 = vrot.slane %v3090_v3, %v8410_v36  ;;  %7679 = vmatprep.mubr.msk.f32.mxu1 %vm823_vm11, %v7855_v23  ;;  %v9193_v31 = vadd.s32 4294967272, %v8383_v16  ;;  %vm829_vm1 = vcmp.eq.s32.totalorder %v8383_v16, %v9174_v32  ;;  %v1767_v51 = vrot.slane %v9010_v47, %v8389_v19 }
 0x24b   :  { %v3105_v28 = vrot.slane %v3091_v9, %v8410_v36  ;;  %v9198_v57 = vpop.xlane.xlu1 %755  ;;  %v1771_v17 = vrot.slane %v9010_v47, %v8392_v22  ;;  %v1775_v60 = vrot.slane %v9010_v47, %v8395_v25  ;;  %vm828_vm2 = vcmp.eq.s32.totalorder %v8383_v16, %v9152_v20 }
 0x24c   :  { %v9208_v24 = vpop.xlane.xlu0 %753  ;;  %v1779_v12 = vrot.slane %v9010_v47, %v8398_v26  ;;  %v1783_v1 = vrot.slane %v9010_v47, %v8401_v29  ;;  %v1787_v14 = vrot.slane %v9010_v47, %v8404_v30  ;;  %v1791_v39 = vrot.slane %v9010_v47, %v8407_v34 }
 0x24d   :  { %v3106_v13 = vcombine.low %v3098_v38, %v3105_v28  ;;  %7680 = vmatmul.mubr.msk.f32.gmra.mrb[24].mxu1 %vm824_vm12, %v7855_v23  ;;  %v3107_v49 = vcombine.low %v1763_v21, %v1767_v51  ;;  %v3108_v15 = vcombine.low %v1771_v17, %v1775_v60  ;;  %v1795_v8 = vrot.slane %v9049_v61, %v8386_v18 }
 0x24e   :  { %7682 = vmatprep.mubr.msk.f32.mxu1 %vm825_vm13, %v7855_v23  ;;  %v3109_v33 = vcombine.low %v1779_v12, %v1783_v1  ;;  %v3110_v62 = vcombine.low %v1787_v14, %v1791_v39  ;;  %v1799_v47 = vrot.slane %v9049_v61, %v8389_v19  ;;  %v1803_v59 = vrot.slane %v9049_v61, %v8392_v22 }
 0x24f   :  { %3799 = vperm.xlu1 %7779, %v3106_v13   ;;  %v9232_v52 = vpop.xlane.xlu1 %759  ;;  %v3117_v0 = vrot.slane %v3107_v49, %v8410_v36  ;;  %v3124_v55 = vrot.slane %v3108_v15, %v8410_v36  ;;  %v1807_v63 = vrot.slane %v9049_v61, %v8395_v25  ;;  %v1811_v53 = vrot.slane %v9049_v61, %v8398_v26 }
 0x250   :  { %vm830_vm3 = vcmp.eq.s32.totalorder %v8383_v16, %v9172_v4  ;;  %v9242_v7 = vpop.xlane.xlu0 %757  ;;  %v3131_v41 = vrot.slane %v3109_v33, %v8410_v36  ;;  %v3138_v42 = vrot.slane %v3110_v62, %v8410_v36  ;;  %v1815_v27 = vrot.slane %v9049_v61, %v8401_v29 }
 0x251   :  { %v1819_v6 = vrot.slane %v9049_v61, %v8404_v30  ;;  %7683 = vmatmul.mubr.msk.f32.gmra.mrb[26].mxu1 %vm826_vm14, %v7855_v23  ;;  %v3139_v45 = vcombine.low %v3117_v0, %v3124_v55  ;;  %v1823_v50 = vrot.slane %v9049_v61, %v8407_v34  ;;  %v3156_v46 = vcombine.low %v1795_v8, %v1799_v47 }
 0x252   :  { %v3157_v10 = vcombine.low %v1803_v59, %v1807_v63  ;;  %7685 = vmatprep.mubr.msk.f32.mxu1 %vm827_vm15, %v7855_v23  ;;  %v3140_v3 = vcombine.low %v3131_v41, %v3138_v42  ;;  %v3158_v9 = vcombine.low %v1811_v53, %v1815_v27  ;;  %v1859_v38 = vrot.slane %v9081_v2, %v8386_v18 }
 0x253   :  { %v1863_v21 = vrot.slane %v9081_v2, %v8389_v19  ;;  %v9264_v28 = vpop.xlane.xlu1 %763  ;;  %v3147_v51 = vrot.slane %v3139_v45, %v8410_v36  ;;  %v3159_v61 = vcombine.low %v1819_v6, %v1823_v50  ;;  %v3166_v17 = vrot.slane %v3156_v46, %v8410_v36 }
 0x254   :  { %10540 = vst [vmem:[#allocation9_spill] sm:$0xff] %v9264_v28  ;;  %v3173_v60 = vrot.slane %v3157_v10, %v8410_v36  ;;  %v9269_v12 = vpop.xlane.xlu0 %761  ;;  %v3154_v1 = vrot.slane %v3140_v3, %v8410_v36  ;;  %v3180_v14 = vrot.slane %v3158_v9, %v8410_v36  ;;  %v1867_v39 = vrot.slane %v9081_v2, %v8392_v22 }
 0x255   :  { %10541 = vst [vmem:[#allocation10_spill] sm:$0xff] %v9269_v12  ;;  %v1871_v13 = vrot.slane %v9081_v2, %v8395_v25  ;;  %7686 = vmatmul.mubr.msk.f32.gmra.mrb[28].mxu1 %vm828_vm2, %v7855_v23  ;;  %v3187_v49 = vrot.slane %v3159_v61, %v8410_v36  ;;  %v1875_v8 = vrot.slane %v9081_v2, %v8398_v26  ;;  %vm3849_vm4 = vcmask 130112  }
 0x256   :  { %v9282_v15 = vcombine.low %v3166_v17, %v3173_v60  ;;  %v1879_v33 = vrot.slane %v9081_v2, %v8401_v29  ;;  %7688 = vmatprep.mubr.msk.f32.mxu1 %vm829_vm1, %v7855_v23  ;;  %v9292_v62 = vcombine.low %v3147_v51, %v3154_v1  ;;  %v9298_v0 = vcombine.low %v1859_v38, %v1863_v21 }
 0x257   :  { %v768_v55 = vpop.xlane.xlu1 %767  ;;  %v9300_v63 = vcombine.low %v3180_v14, %v3187_v49  ;;  %v9304_v41 = vcombine.low %v1867_v39, %v1871_v13  ;;  %vm3856_vm5 = vcmask 195712   ;;  %vm3863_vm6 = vcmask 261312  }
 0x258   :  { %v9306_v42 = vcombine.low %v1875_v8, %v1879_v33  ;;  %v766_v27 = vpop.xlane.xlu0 %765  ;;  %v4627_v6 = vrot.slane %v768_v55, %v8386_v18  ;;  %v4631_v45 = vrot.slane %v768_v55, %v8389_v19  ;;  %v4635_v50 = vrot.slane %v768_v55, %v8392_v22 }
 0x259   :  { %v4639_v46 = vrot.slane %v768_v55, %v8395_v25  ;;  %7689 = vmatmul.mubr.msk.f32.gmra.mrb[30].mxu1 %vm830_vm3, %v7855_v23  ;;  %v4643_v10 = vrot.slane %v768_v55, %v8398_v26  ;;  %v4647_v3 = vrot.slane %v768_v55, %v8401_v29  ;;  %v4651_v9 = vrot.slane %v768_v55, %v8404_v30 }
 0x25a   :  { %v4655_v38 = vrot.slane %v768_v55, %v8407_v34  ;;  %v5937_v21 = vcombine.low %v4627_v6, %v4631_v45  ;;  %v4595_v61 = vrot.slane %v766_v27, %v8386_v18  ;;  %v4599_v17 = vrot.slane %v766_v27, %v8389_v19 }
 0x25b   :  { %v5938_v51 = vcombine.low %v4635_v50, %v4639_v46  ;;  %v9322_v60 = vpop.xlane.xlu1 %771  ;;  %v5939_v1 = vcombine.low %v4643_v10, %v4647_v3  ;;  %v4603_v23 = vrot.slane %v766_v27, %v8392_v22  ;;  %v4607_v39 = vrot.slane %v766_v27, %v8395_v25 }
 0x25c   :  { %v5940_v14 = vcombine.low %v4651_v9, %v4655_v38  ;;  %v9326_v13 = vpop.xlane.xlu0 %769  ;;  %v5947_v49 = vrot.slane %v5937_v21, %v8410_v36  ;;  %v4611_v33 = vrot.slane %v766_v27, %v8398_v26  ;;  %v4615_v55 = vrot.slane %v766_v27, %v8401_v29 }
 0x25d   :  { %v5954_v8 = vrot.slane %v5938_v51, %v8410_v36  ;;  %v5961_v6 = vrot.slane %v5939_v1, %v8410_v36  ;;  %v4619_v50 = vrot.slane %v766_v27, %v8404_v30  ;;  %v4623_v46 = vrot.slane %v766_v27, %v8407_v34 }
 0x25e   :  { %v5968_v45 = vrot.slane %v5940_v14, %v8410_v36  ;;  %v5888_v3 = vcombine.low %v4595_v61, %v4599_v17  ;;  %v5889_v9 = vcombine.low %v4603_v23, %v4607_v39  ;;  %v5890_v38 = vcombine.low %v4611_v33, %v4615_v55 }
 0x25f   :  { %v5969_v10 = vcombine.low %v5947_v49, %v5954_v8  ;;  %v776_v5 = vpop.xlane.xlu1 %775  ;;  %v5891_v47 = vcombine.low %v4619_v50, %v4623_v46  ;;  %v3203_v51 = vrot.slane %v9300_v63, %v8410_v36  ;;  %v4691_v59 = vrot.slane %v9322_v60, %v8386_v18 }
 0x260   :  { %v5970_v21 = vcombine.low %v5961_v6, %v5968_v45  ;;  %v5898_v14 = vrot.slane %v5888_v3, %v8410_v36  ;;  %v5905_v53 = vrot.slane %v5889_v9, %v8410_v36  ;;  %v5912_v27 = vrot.slane %v5890_v38, %v8410_v36  ;;  %v9348_v63 = vpop.xlane.xlu0 %773 }
 0x261   :  { %v5977_v1 = vrot.slane %v5969_v10, %v8410_v36  ;;  %v5919_v17 = vrot.slane %v5891_v47, %v8410_v36  ;;  %v4755_v23 = vrot.slane %v776_v5, %v8386_v18  ;;  %v4759_v39 = vrot.slane %v776_v5, %v8389_v19 }
 0x262   :  { %v5984_v61 = vrot.slane %v5970_v21, %v8410_v36  ;;  %v5920_v49 = vcombine.low %v5898_v14, %v5905_v53  ;;  %v4763_v8 = vrot.slane %v776_v5, %v8392_v22  ;;  %v4767_v33 = vrot.slane %v776_v5, %v8395_v25 }
 0x263   :  { %v4771_v55 = vrot.slane %v776_v5, %v8398_v26  ;;  %v9353_v6 = vpop.xlane.xlu1 %779  ;;  %v5921_v50 = vcombine.low %v5912_v27, %v5919_v17  ;;  %v4775_v46 = vrot.slane %v776_v5, %v8401_v29  ;;  %v4779_v47 = vrot.slane %v776_v5, %v8404_v30 }
 0x264   :  { %v5985_v45 = vcombine.low %v5977_v1, %v5984_v61  ;;  %v5928_v10 = vrot.slane %v5920_v49, %v8410_v36  ;;  %v4783_v3 = vrot.slane %v776_v5, %v8407_v34  ;;  %v6133_v9 = vcombine.low %v4755_v23, %v4759_v39 }
 0x265   :  { %v6134_v53 = vcombine.low %v4763_v8, %v4767_v33  ;;  %v5935_v38 = vrot.slane %v5921_v50, %v8410_v36  ;;  %v6135_v21 = vcombine.low %v4771_v55, %v4775_v46  ;;  %v10542_v14 = vrot.slane %v9282_v15, %v8410_v36  ;;  %v9378_v8 = vpop.xlane.xlu0 %777 }
 0x266   :  { %6724 = vperm.xlu0 %7780, %v5985_v45   ;;  %v4695_v1 = vrot.slane %v9322_v60, %v8389_v19  ;;  %v6136_v27 = vcombine.low %v4779_v47, %v4783_v3  ;;  %v6143_v61 = vrot.slane %v6133_v9, %v8410_v36  ;;  %v4699_v5 = vrot.slane %v9322_v60, %v8392_v22 }
 0x267   :  { %v9363_v28 = vcombine.low %v10542_v14, %v3203_v51  ;;  %v6150_v17 = vrot.slane %v6134_v53, %v8410_v36  ;;  %v9371_v23 = vpop.xlane.xlu1 %783  ;;  %v5936_v39 = vcombine.low %v5928_v10, %v5935_v38  ;;  %v6157_v49 = vrot.slane %v6135_v21, %v8410_v36 }
 0x268   :  { %v4703_v15 = vrot.slane %v9322_v60, %v8395_v25  ;;  %v4707_v51 = vrot.slane %v9322_v60, %v8398_v26  ;;  %v6164_v33 = vrot.slane %v6136_v27, %v8410_v36  ;;  %v4711_v45 = vrot.slane %v9322_v60, %v8401_v29 }
 0x269   :  { %v6165_v55 = vcombine.low %v6143_v61, %v6150_v17  ;;  %v4715_v50 = vrot.slane %v9322_v60, %v8404_v30  ;;  %v4719_v46 = vrot.slane %v9322_v60, %v8407_v34  ;;  %v6035_v47 = vcombine.low %v4691_v59, %v4695_v1 }
 0x26a   :  { %6721 = vperm.xlu0 %7780, %v5936_v39   ;;  %v6036_v10 = vcombine.low %v4699_v5, %v4703_v15  ;;  %v10543_v3 = vrot.slane %v9081_v2, %v8407_v34  ;;  %v10544_v9 = vrot.slane %v9081_v2, %v8404_v30  ;;  %v6166_v38 = vcombine.low %v6157_v49, %v6164_v33 }
 0x26b   :  { %v6173_v21 = vrot.slane %v6165_v55, %v8410_v36  ;;  %v6037_v14 = vcombine.low %v4707_v51, %v4711_v45  ;;  %v3264_v27 = vrot.slane %v9298_v0, %v8410_v36  ;;  %v9396_v61 = vpop.xlane.xlu1 %787  ;;  %v6038_v17 = vcombine.low %v4715_v50, %v4719_v46  ;;  %v9411_v55 = vpop.xlane.xlu0 %781 }
 0x26c   :  { %v3257_v53 = vcombine.low %v10544_v9, %v10543_v3  ;;  %v6045_v59 = vrot.slane %v6035_v47, %v8410_v36  ;;  %v6052_v60 = vrot.slane %v6036_v10, %v8410_v36  ;;  %v3271_v1 = vrot.slane %v9304_v41, %v8410_v36 }
 0x26d   :  { %v6180_v2 = vrot.slane %v6166_v38, %v8410_v36  ;;  %v6059_v5 = vrot.slane %v6037_v14, %v8410_v36  ;;  %v3278_v39 = vrot.slane %v9306_v42, %v8410_v36  ;;  %v6066_v0 = vrot.slane %v6038_v17, %v8410_v36 }
 0x26e   :  { %v3285_v49 = vrot.slane %v3257_v53, %v8410_v36  ;;  %3802 = vperm.xlu0 %7780, %v9292_v62   ;;  %v6067_v15 = vcombine.low %v6045_v59, %v6052_v60  ;;  %v3286_v51 = vcombine.low %v3264_v27, %v3271_v1  ;;  %v4659_v33 = vrot.slane %v9326_v13, %v8386_v18 }
 0x26f   :  { %v6181_v41 = vcombine.low %v6173_v21, %v6180_v2  ;;  %v4663_v50 = vrot.slane %v9326_v13, %v8389_v19  ;;  %v4667_v42 = vrot.slane %v9326_v13, %v8392_v22  ;;  %v9417_v46 = vpop.xlane.xlu1 %791  ;;  %v6068_v62 = vcombine.low %v6059_v5, %v6066_v0 }
 0x270   :  { %v3287_v45 = vcombine.low %v3278_v39, %v3285_v49  ;;  %v6075_v47 = vrot.slane %v6067_v15, %v8410_v36  ;;  %v3294_v10 = vrot.slane %v3286_v51, %v8410_v36  ;;  %v4671_v3 = vrot.slane %v9326_v13, %v8395_v25 }
 0x271   :  { %6736 = vperm.xlu1 %7779, %v6181_v41   ;;  %v4675_v53 = vrot.slane %v9326_v13, %v8398_v26  ;;  %v4679_v38 = vrot.slane %v9326_v13, %v8401_v29  ;;  %v4683_v21 = vrot.slane %v9326_v13, %v8404_v30  ;;  %v6082_v14 = vrot.slane %v6068_v62, %v8410_v36 }
 0x272   :  { %v3301_v9 = vrot.slane %v3287_v45, %v8410_v36  ;;  %v4687_v27 = vrot.slane %v9326_v13, %v8407_v34  ;;  %v5986_v17 = vcombine.low %v4659_v33, %v4663_v50  ;;  %v5987_v59 = vcombine.low %v4667_v42, %v4671_v3  ;;  %v9443_v13 = vpop.xlane.xlu0 %785 }
 0x273   :  { %v5988_v1 = vcombine.low %v4675_v53, %v4679_v38  ;;  %v9435_v2 = vsub.s32 %v9177_v56, %v8380_v11  ;;  %v1923_v5 = vrot.slane %v9113_v37, %v8386_v18  ;;  %v6083_v39 = vcombine.low %v6075_v47, %v6082_v14  ;;  %v9439_v49 = vpop.xlane.xlu1 %795 }
 0x274   :  { %v3302_v60 = vcombine.low %v3294_v10, %v3301_v9  ;;  %v5989_v0 = vcombine.low %v4683_v21, %v4687_v27  ;;  %v5996_v15 = vrot.slane %v5986_v17, %v8410_v36  ;;  %v6003_v51 = vrot.slane %v5987_v59, %v8410_v36 }
 0x275   :  { %3805 = vperm.xlu1 %7779, %v9363_v28   ;;  %v6010_v33 = vrot.slane %v5988_v1, %v8410_v36  ;;  %v1927_v56 = vrot.slane %v9113_v37, %v8389_v19  ;;  %v1931_v41 = vrot.slane %v9113_v37, %v8392_v22  ;;  %v1935_v45 = vrot.slane %v9113_v37, %v8395_v25 }
 0x276   :  { %6730 = vperm.xlu0 %7780, %v6083_v39   ;;  %v6017_v50 = vrot.slane %v5989_v0, %v8410_v36  ;;  %v6018_v42 = vcombine.low %v5996_v15, %v6003_v51  ;;  %v1939_v62 = vrot.slane %v9113_v37, %v8398_v26  ;;  %v1943_v28 = vrot.slane %v9113_v37, %v8401_v29  ;;  %v9477_v51 = vpop.xlane.xlu0 %789 }
 0x277   :  { %v1947_v47 = vrot.slane %v9113_v37, %v8404_v30  ;;  %v1951_v10 = vrot.slane %v9113_v37, %v8407_v34  ;;  %v3352_v3 = vcombine.low %v1923_v5, %v1927_v56  ;;  %v3353_v9 = vcombine.low %v1931_v41, %v1935_v45  ;;  %v9463_v21 = vpop.permute.xlu1 %3748 }
 0x278   :  { %v6019_v53 = vcombine.low %v6010_v33, %v6017_v50  ;;  %v6026_v38 = vrot.slane %v6018_v42, %v8410_v36  ;;  %v3354_v14 = vcombine.low %v1939_v62, %v1943_v28  ;;  %v1827_v27 = vrot.slane %v9042_v40, %v8386_v18 }
 0x279   :  { %3811 = vperm.xlu1 %7779, %v3302_v60   ;;  %v3355_v59 = vcombine.low %v1947_v47, %v1951_v10  ;;  %v3362_v1 = vrot.slane %v3352_v3, %v8410_v36  ;;  %v3369_v37 = vrot.slane %v3353_v9, %v8410_v36  ;;  %v1831_v0 = vrot.slane %v9042_v40, %v8389_v19 }
 0x27a   :  { %v6033_v5 = vrot.slane %v6019_v53, %v8410_v36  ;;  %v3376_v39 = vrot.slane %v3354_v14, %v8410_v36  ;;  %v1835_v15 = vrot.slane %v9042_v40, %v8392_v22  ;;  %v1839_v56 = vrot.slane %v9042_v40, %v8395_v25 }
 0x27b   :  { %v3383_v60 = vrot.slane %v3355_v59, %v8410_v36  ;;  %v3384_v33 = vcombine.low %v3362_v1, %v3369_v37  ;;  %v1843_v41 = vrot.slane %v9042_v40, %v8398_v26  ;;  %v1847_v50 = vrot.slane %v9042_v40, %v8401_v29  ;;  %v9491_v9 = vpop.permute.xlu1 %6673 }
 0x27c   :  { %v6034_v45 = vcombine.low %v6026_v38, %v6033_v5  ;;  %v1851_v42 = vrot.slane %v9042_v40, %v8404_v30  ;;  %v1855_v62 = vrot.slane %v9042_v40, %v8407_v34  ;;  %v3205_v10 = vcombine.low %v1827_v27, %v1831_v0 }
 0x27d   :  { %v3385_v28 = vcombine.low %v3376_v39, %v3383_v60  ;;  %v3392_v47 = vrot.slane %v3384_v33, %v8410_v36  ;;  %v3206_v3 = vcombine.low %v1835_v15, %v1839_v56  ;;  %v3207_v53 = vcombine.low %v1843_v41, %v1847_v50  ;;  %v9510_v60 = vpop.xlane.xlu0 %793 }
 0x27e   :  { %6727 = vperm.xlu0 %7780, %v6034_v45   ;;  %v3208_v14 = vcombine.low %v1851_v42, %v1855_v62  ;;  %v9495_v38 = vsub.s32 %v8383_v16, %v8380_v11  ;;  %v1987_v59 = vrot.slane %v9133_v58, %v8386_v18  ;;  %v3215_v40 = vrot.slane %v3205_v10, %v8410_v36 }
 0x27f   :  { %v3399_v1 = vrot.slane %v3385_v28, %v8410_v36  ;;  %v3222_v37 = vrot.slane %v3206_v3, %v8410_v36  ;;  %v1991_v27 = vrot.slane %v9133_v58, %v8389_v19  ;;  %v3229_v5 = vrot.slane %v3207_v53, %v8410_v36 }
 0x280   :  { %v3236_v39 = vrot.slane %v3208_v14, %v8410_v36  ;;  %v6771_v0 = vrot.slane %v9491_v9, %v9495_v38  ;;  %v1995_v15 = vrot.slane %v9133_v58, %v8392_v22  ;;  %v1999_v41 = vrot.slane %v9133_v58, %v8395_v25  ;;  %v7645_v50 = vpop.f32.mrb[0].mxu1 }
 0x281   :  { %v3400_v33 = vcombine.low %v3392_v47, %v3399_v1  ;;  %v3237_v56 = vcombine.low %v3215_v40, %v3222_v37  ;;  %v2003_v45 = vrot.slane %v9133_v58, %v8398_v26  ;;  %v2007_v62 = vrot.slane %v9133_v58, %v8401_v29  ;;  %1121 = vst.msk [vmem:[%s10531_s3 + $0x8] sm:$0xff] %vm101_vm0, %v7645_v50  ;;  %v9526_v47 = vpop.f32.mrb[1].mxu1 }
 0x282   :  { %v3238_v42 = vcombine.low %v3229_v5, %v3236_v39  ;;  %v2011_v28 = vrot.slane %v9133_v58, %v8404_v30  ;;  %v2015_v10 = vrot.slane %v9133_v58, %v8407_v34  ;;  %v3450_v9 = vcombine.low %v1987_v59, %v1991_v27  ;;  %1120 = vst.msk [vmem:[%s10531_s3] sm:$0xff] %vm101_vm0, %v9526_v47 }
 0x283   :  { %3817 = vperm.xlu1 %7779, %v3400_v33   ;;  %v3245_v3 = vrot.slane %v3237_v56, %v8410_v36  ;;  %v3451_v53 = vcombine.low %v1995_v15, %v1999_v41  ;;  %v4723_v14 = vrot.slane %v9348_v63, %v8386_v18  ;;  %v3452_v1 = vcombine.low %v2003_v45, %v2007_v62  ;;  %v6677_v15 = vpop.permute.xlu0 %6676 }
 0x284   :  { %v3252_v58 = vrot.slane %v3238_v42, %v8410_v36  ;;  %v3453_v40 = vcombine.low %v2011_v28, %v2015_v10  ;;  %v4727_v37 = vrot.slane %v9348_v63, %v8389_v19  ;;  %v3460_v5 = vrot.slane %v3450_v9, %v8410_v36 }
 0x285   :  { %v3467_v59 = vrot.slane %v3451_v53, %v8410_v36  ;;  %v4731_v27 = vrot.slane %v9348_v63, %v8392_v22  ;;  %v4735_v39 = vrot.slane %v9348_v63, %v8395_v25  ;;  %v3474_v56 = vrot.slane %v3452_v1, %v8410_v36 }
 0x286   :  { %v3253_v33 = vcombine.low %v3245_v3, %v3252_v58  ;;  %v3481_v41 = vrot.slane %v3453_v40, %v8410_v36  ;;  %v4739_v45 = vrot.slane %v9348_v63, %v8398_v26  ;;  %v4743_v62 = vrot.slane %v9348_v63, %v8401_v29 }
 0x287   :  { %v3482_v42 = vcombine.low %v3460_v5, %v3467_v59  ;;  %v4747_v28 = vrot.slane %v9348_v63, %v8404_v30  ;;  %v4751_v10 = vrot.slane %v9348_v63, %v8407_v34  ;;  %v6084_v3 = vcombine.low %v4723_v14, %v4727_v37  ;;  %v9567_v14 = vpop.permute.xlu1 %3754 }
 0x288   :  { %3808 = vperm.xlu0 %7780, %v3253_v33   ;;  %v3483_v9 = vcombine.low %v3474_v56, %v3481_v41  ;;  %v6085_v53 = vcombine.low %v4731_v27, %v4735_v39  ;;  %v6775_v58 = vrot.slane %v6677_v15, %v9435_v2  ;;  %v6086_v40 = vcombine.low %v4739_v45, %v4743_v62 }
 0x289   :  { %v3490_v1 = vrot.slane %v3482_v42, %v8410_v36  ;;  %v6087_v17 = vcombine.low %v4747_v28, %v4751_v10  ;;  %v9559_v5 = vsub.s32 %v9193_v31, %v8380_v11  ;;  %v6094_v12 = vrot.slane %v6084_v3, %v8410_v36  ;;  %v7781_v31 = vld [vmem:[%s10528_s0 + $0x8] sm:$0xff] }
 0x28a   :  { %v3497_v59 = vrot.slane %v3483_v9, %v8410_v36  ;;  %v6101_v63 = vrot.slane %v6085_v53, %v8410_v36  ;;  %v9565_v33 = vsel %vm3849_vm4, %v6775_v58, %v6771_v0  ;;  %v6108_v37 = vrot.slane %v6086_v40, %v8410_v36 }
 0x28b   :  { %v6115_v27 = vrot.slane %v6087_v17, %v8410_v36  ;;  %v7043_v15 = vsub.f32 %v7645_v50, %v7781_v31  ;;  %v2051_v0 = vrot.slane %v9156_v43, %v8386_v18  ;;  %v2055_v45 = vrot.slane %v9156_v43, %v8389_v19 }
 0x28c   :  { %v3498_v56 = vcombine.low %v3490_v1, %v3497_v59  ;;  %v6116_v41 = vcombine.low %v6094_v12, %v6101_v63  ;;  %v2059_v17 = vrot.slane %v9156_v43, %v8392_v22  ;;  %v2063_v28 = vrot.slane %v9156_v43, %v8395_v25 }
 0x28d   :  { %v6117_v42 = vcombine.low %v6108_v37, %v6115_v27  ;;  %v7075_v62 = vmul.f32 %v7043_v15, %v7043_v15  ;;  %v2067_v12 = vrot.slane %v9156_v43, %v8398_v26  ;;  %v2071_v50 = vrot.slane %v9156_v43, %v8401_v29 }
 0x28e   :  { %3823 = vperm.xlu1 %7779, %v3498_v56   ;;  %v6124_v10 = vrot.slane %v6116_v41, %v8410_v36  ;;  %v2075_v9 = vrot.slane %v9156_v43, %v8404_v30  ;;  %v2079_v58 = vrot.slane %v9156_v43, %v8407_v34  ;;  %v3548_v1 = vcombine.low %v2051_v0, %v2055_v45  ;;  %v3746_v41 = vpop.permute.xlu0 %3745 }
 0x28f   :  { %v6131_v3 = vrot.slane %v6117_v42, %v8410_v36  ;;  %v9593_v53 = vsel %vm101_vm0, %v7075_v62, 0.0  ;;  %v3549_v40 = vcombine.low %v2059_v17, %v2063_v28  ;;  %v3550_v59 = vcombine.low %v2067_v12, %v2071_v50 }
 0x290   :  { %v1891_v63 = vrot.slane %v9073_v35, %v8386_v18  ;;  %v1895_v37 = vrot.slane %v9073_v35, %v8389_v19  ;;  %v3551_v31 = vcombine.low %v2075_v9, %v2079_v58  ;;  %v3558_v15 = vrot.slane %v3548_v1, %v8410_v36 }
 0x291   :  { %v6132_v27 = vcombine.low %v6124_v10, %v6131_v3  ;;  %v1899_v56 = vrot.slane %v9073_v35, %v8392_v22  ;;  %v3565_v42 = vrot.slane %v3549_v40, %v8410_v36  ;;  %v3572_v43 = vrot.slane %v3550_v59, %v8410_v36  ;;  %v7782_v59 = vld [vmem:[%s10528_s0] sm:$0xff] }
 0x292   :  { %v1903_v0 = vrot.slane %v9073_v35, %v8395_v25  ;;  %v1907_v45 = vrot.slane %v9073_v35, %v8398_v26  ;;  %v3579_v62 = vrot.slane %v3551_v31, %v8410_v36  ;;  %v1911_v17 = vrot.slane %v9073_v35, %v8401_v29 }
 0x293   :  { %6733 = vperm.xlu0 %7780, %v6132_v27   ;;  %v1915_v28 = vrot.slane %v9073_v35, %v8404_v30  ;;  %v1919_v10 = vrot.slane %v9073_v35, %v8407_v34  ;;  %v3580_v12 = vcombine.low %v3558_v15, %v3565_v42  ;;  %v3303_v50 = vcombine.low %v1891_v63, %v1895_v37 }
 0x294   :  { %v3304_v9 = vcombine.low %v1899_v56, %v1903_v0  ;;  %v3843_v3 = vrot.slane %v3746_v41, %v9495_v38  ;;  %v3581_v58 = vcombine.low %v3572_v43, %v3579_v62  ;;  %v3305_v1 = vcombine.low %v1907_v45, %v1911_v17  ;;  %v3752_v17 = vpop.permute.xlu1 %3751 }
 0x295   :  { %v3306_v40 = vcombine.low %v1915_v28, %v1919_v10  ;;  %v7042_v27 = vsub.f32 %v9526_v47, %v7782_v59  ;;  %v3588_v31 = vrot.slane %v3580_v12, %v8410_v36  ;;  %v3313_v39 = vrot.slane %v3303_v50, %v8410_v36 }
 0x296   :  { %v3320_v35 = vrot.slane %v3304_v9, %v8410_v36  ;;  %v10545_v63 = vrot.slane %v9463_v21, %v9435_v2  ;;  %v3595_v15 = vrot.slane %v3581_v58, %v8410_v36  ;;  %v3327_v56 = vrot.slane %v3305_v1, %v8410_v36 }
 0x297   :  { %v3334_v41 = vrot.slane %v3306_v40, %v8410_v36  ;;  %v7074_v42 = vmul.f32 %v7042_v27, %v7042_v27  ;;  %v3851_v47 = vadd.s32 4294967280, %v8383_v16  ;;  %v2115_v0 = vrot.slane %v9174_v32, %v8386_v18 }
 0x298   :  { %v3850_v37 = vsel %vm3849_vm4, %v10545_v63, %v3843_v3  ;;  %v3335_v43 = vcombine.low %v3313_v39, %v3320_v35  ;;  %v3596_v45 = vcombine.low %v3588_v31, %v3595_v15  ;;  %v2119_v28 = vrot.slane %v9174_v32, %v8389_v19 }
 0x299   :  { %v3336_v62 = vcombine.low %v3327_v56, %v3334_v41  ;;  %v9636_v21 = vsel %vm101_vm0, %v7074_v42, 0.0  ;;  %v9642_v12 = vsub.s32 %v3851_v47, %v8380_v11  ;;  %v2123_v39 = vrot.slane %v9174_v32, %v8392_v22 }
 0x29a   :  { %v3343_v10 = vrot.slane %v3335_v43, %v8410_v36  ;;  %v2127_v50 = vrot.slane %v9174_v32, %v8395_v25  ;;  %3829 = vperm.xlu1 %7779, %v3596_v45   ;;  %v2131_v3 = vrot.slane %v9174_v32, %v8398_v26  ;;  %v2135_v58 = vrot.slane %v9174_v32, %v8401_v29 }
 0x29b   :  { %v3350_v9 = vrot.slane %v3336_v62, %v8410_v36  ;;  %v2139_v1 = vrot.slane %v9174_v32, %v8404_v30  ;;  %v3855_v40 = vrot.slane %v3752_v17, %v9642_v12  ;;  %v2143_v59 = vrot.slane %v9174_v32, %v8407_v34  ;;  %v9674_v17 = vpop.permute.xlu0 %6682 }
 0x29c   :  { %v3646_v27 = vcombine.low %v2115_v0, %v2119_v28  ;;  %v3647_v31 = vcombine.low %v2123_v39, %v2127_v50  ;;  %v3648_v63 = vcombine.low %v2131_v3, %v2135_v58  ;;  %v4819_v15 = vrot.slane %v9353_v6, %v8386_v18 }
 0x29d   :  { %v3351_v35 = vcombine.low %v3343_v10, %v3350_v9  ;;  %v4823_v56 = vrot.slane %v9353_v6, %v8389_v19  ;;  %v9663_v41 = vsel %vm3856_vm5, %v3855_v40, %v3850_v37  ;;  %v3649_v42 = vcombine.low %v2139_v1, %v2143_v59 }
 0x29e   :  { %v3656_v43 = vrot.slane %v3646_v27, %v8410_v36  ;;  %v3663_v47 = vrot.slane %v3647_v31, %v8410_v36  ;;  %v3670_v32 = vrot.slane %v3648_v63, %v8410_v36  ;;  %v4827_v0 = vrot.slane %v9353_v6, %v8392_v22 }
 0x29f   :  { %3814 = vperm.xlu0 %7780, %v3351_v35   ;;  %v4831_v45 = vrot.slane %v9353_v6, %v8395_v25  ;;  %v4835_v62 = vrot.slane %v9353_v6, %v8398_v26  ;;  %v3677_v37 = vrot.slane %v3649_v42, %v8410_v36  ;;  %v4839_v10 = vrot.slane %v9353_v6, %v8401_v29 }
 0x2a0   :  { %v3678_v28 = vcombine.low %v3656_v43, %v3663_v47  ;;  %v4843_v39 = vrot.slane %v9353_v6, %v8404_v30  ;;  %v4847_v50 = vrot.slane %v9353_v6, %v8407_v34  ;;  %v6231_v9 = vcombine.low %v4819_v15, %v4823_v56  ;;  %v9696_v43 = vpop.permute.xlu1 %3760 }
 0x2a1   :  { %v6232_v3 = vcombine.low %v4827_v0, %v4831_v45  ;;  %v6785_v58 = vrot.slane %v9674_v17, %v9559_v5  ;;  %v3679_v1 = vcombine.low %v3670_v32, %v3677_v37  ;;  %v6233_v59 = vcombine.low %v4835_v62, %v4839_v10  ;;  %v6680_v37 = vpop.permute.xlu0 %6679 }
 0x2a2   :  { %v3686_v40 = vrot.slane %v3678_v28, %v8410_v36  ;;  %v3872_v27 = vadd.s32 4294967256, %v8383_v16  ;;  %v6234_v31 = vcombine.low %v4843_v39, %v4847_v50  ;;  %v6241_v35 = vrot.slane %v6231_v9, %v8410_v36 }
 0x2a3   :  { %v6248_v63 = vrot.slane %v6232_v3, %v8410_v36  ;;  %v4787_v42 = vrot.slane %v9378_v8, %v8386_v18  ;;  %v3693_v6 = vrot.slane %v3679_v1, %v8410_v36  ;;  %v6255_v15 = vrot.slane %v6233_v59, %v8410_v36 }
 0x2a4   :  { %v9694_v56 = vsub.s32 %v3872_v27, %v8380_v11  ;;  %v4791_v47 = vrot.slane %v9378_v8, %v8389_v19  ;;  %v6262_v32 = vrot.slane %v6234_v31, %v8410_v36  ;;  %v4795_v45 = vrot.slane %v9378_v8, %v8392_v22 }
 0x2a5   :  { %v6263_v0 = vcombine.low %v6241_v35, %v6248_v63  ;;  %v4799_v62 = vrot.slane %v9378_v8, %v8395_v25  ;;  %v3694_v28 = vcombine.low %v3686_v40, %v3693_v6  ;;  %v4803_v39 = vrot.slane %v9378_v8, %v8398_v26 }
 0x2a6   :  { %v4807_v50 = vrot.slane %v9378_v8, %v8401_v29  ;;  %v6264_v9 = vcombine.low %v6255_v15, %v6262_v32  ;;  %v4811_v1 = vrot.slane %v9378_v8, %v8404_v30  ;;  %v4815_v59 = vrot.slane %v9378_v8, %v8407_v34 }
 0x2a7   :  { %v6271_v3 = vrot.slane %v6263_v0, %v8410_v36  ;;  %3835 = vperm.xlu1 %7779, %v3694_v28   ;;  %v6182_v40 = vcombine.low %v4787_v42, %v4791_v47  ;;  %v6183_v27 = vcombine.low %v4795_v45, %v4799_v62  ;;  %v6780_v35 = vrot.slane %v6680_v37, %v9642_v12  ;;  %v3758_v42 = vpop.permute.xlu1 %3757  ;;  %v7648_v47 = vpop.f32.mrb[2].mxu1 }
 0x2a8   :  { %v6184_v31 = vcombine.low %v4803_v39, %v4807_v50  ;;  %v6278_v63 = vrot.slane %v6264_v9, %v8410_v36  ;;  %v6185_v6 = vcombine.low %v4811_v1, %v4815_v59  ;;  %v3865_v15 = vadd.s32 4294967264, %v8383_v16  ;;  %1123 = vst.msk [vmem:[%s10531_s3 + $0x18] sm:$0xff] %vm101_vm0, %v7648_v47  ;;  %v971_v28 = vpop.f32.mrb[3].mxu1 }
 0x2a9   :  { %v6192_v32 = vrot.slane %v6182_v40, %v8410_v36  ;;  %v6199_v0 = vrot.slane %v6183_v27, %v8410_v36  ;;  %v6781_v8 = vsel %vm3856_vm5, %v6780_v35, %v9565_v33  ;;  %vm3870_vm7 = vcmask 326912   ;;  %1122 = vst.msk [vmem:[%s10531_s3 + $0x10] sm:$0xff] %vm101_vm0, %v971_v28  ;;  %v9750_v27 = vpop.permute.xlu0 %6688 }
 0x2aa   :  { %v6206_v10 = vrot.slane %v6184_v31, %v8410_v36  ;;  %v6279_v45 = vcombine.low %v6271_v3, %v6278_v63  ;;  %v6213_v62 = vrot.slane %v6185_v6, %v8410_v36  ;;  %v9726_v37 = vsub.s32 %v3865_v15, %v8380_v11 }
 0x2ab   :  { %v6214_v39 = vcombine.low %v6192_v32, %v6199_v0  ;;  %v10546_v33 = vrot.slane %v9567_v14, %v9559_v5  ;;  %v1955_v9 = vrot.slane %v9105_v54, %v8386_v18  ;;  %v1959_v3 = vrot.slane %v9105_v54, %v8389_v19  ;;  %v7651_v1 = vpop.f32.mrb[4].mxu1 }
 0x2ac   :  { %6742 = vperm.xlu0 %7780, %v6279_v45   ;;  %v6215_v59 = vcombine.low %v6206_v10, %v6213_v62  ;;  %v3869_v40 = vrot.slane %v3758_v42, %v9726_v37  ;;  %v1963_v14 = vrot.slane %v9105_v54, %v8392_v22  ;;  %1125 = vst.msk [vmem:[%s10531_s3 + $0x28] sm:$0xff] %vm101_vm0, %v7651_v1  ;;  %v981_v31 = vpop.f32.mrb[5].mxu1  ;;  %v3886_v28 = vadd.s32 4294967240, %v8383_v16 }
 0x2ad   :  { %v3864_v50 = vsel %vm3863_vm6, %v10546_v33, %v9663_v41  ;;  %v1967_v41 = vrot.slane %v9105_v54, %v8395_v25  ;;  %v6222_v35 = vrot.slane %v6214_v39, %v8410_v36  ;;  %v1971_v10 = vrot.slane %v9105_v54, %v8398_v26  ;;  %1124 = vst.msk [vmem:[%s10531_s3 + $0x20] sm:$0xff] %vm101_vm0, %v981_v31 }
 0x2ae   :  { %v1975_v63 = vrot.slane %v9105_v54, %v8401_v29  ;;  %v1979_v6 = vrot.slane %v9105_v54, %v8404_v30  ;;  %v6229_v15 = vrot.slane %v6215_v59, %v8410_v36  ;;  %v3871_v32 = vsel %vm3870_vm7, %v3869_v40, %v3864_v50 }
 0x2af   :  { %v1983_v0 = vrot.slane %v9105_v54, %v8407_v34  ;;  %v3401_v42 = vcombine.low %v1955_v9, %v1959_v3  ;;  %v3402_v47 = vcombine.low %v1963_v14, %v1967_v41  ;;  %v4851_v59 = vrot.slane %v9411_v55, %v8386_v18  ;;  %v9782_v9 = vpop.permute.xlu1 %3766 }
 0x2b0   :  { %v3403_v45 = vcombine.low %v1971_v10, %v1975_v63  ;;  %v6230_v39 = vcombine.low %v6222_v35, %v6229_v15  ;;  %v9780_v54 = vsub.s32 %v3886_v28, %v8380_v11  ;;  %v4855_v3 = vrot.slane %v9411_v55, %v8389_v19  ;;  %v6686_v10 = vpop.permute.xlu0 %6685 }
 0x2b1   :  { %v3404_v33 = vcombine.low %v1979_v6, %v1983_v0  ;;  %v3411_v1 = vrot.slane %v3401_v42, %v8410_v36  ;;  %v3418_v50 = vrot.slane %v3402_v47, %v8410_v36  ;;  %v4859_v41 = vrot.slane %v9411_v55, %v8392_v22 }
 0x2b2   :  { %v3425_v40 = vrot.slane %v3403_v45, %v8410_v36  ;;  %6739 = vperm.xlu0 %7780, %v6230_v39   ;;  %v4863_v31 = vrot.slane %v9411_v55, %v8395_v25  ;;  %v4867_v35 = vrot.slane %v9411_v55, %v8398_v26  ;;  %v3890_v6 = vrot.slane %v9782_v9, %v9780_v54 }
 0x2b3   :  { %v3432_v14 = vrot.slane %v3404_v33, %v8410_v36  ;;  %v3433_v63 = vcombine.low %v3411_v1, %v3418_v50  ;;  %v4871_v15 = vrot.slane %v9411_v55, %v8401_v29  ;;  %v4875_v0 = vrot.slane %v9411_v55, %v8404_v30  ;;  %v3764_v17 = vpop.permute.xlu1 %3763 }
 0x2b4   :  { %v4879_v47 = vrot.slane %v9411_v55, %v8407_v34  ;;  %v6280_v45 = vcombine.low %v4851_v59, %v4855_v3  ;;  %v6281_v28 = vcombine.low %v4859_v41, %v4863_v31  ;;  %v6786_v1 = vsel %vm3863_vm6, %v6785_v58, %v6781_v8 }
 0x2b5   :  { %v3434_v42 = vcombine.low %v3425_v40, %v3432_v14  ;;  %v3441_v39 = vrot.slane %v3433_v63, %v8410_v36  ;;  %v6282_v33 = vcombine.low %v4867_v35, %v4871_v15  ;;  %v6790_v50 = vrot.slane %v6686_v10, %v9726_v37 }
 0x2b6   :  { %v6283_v62 = vcombine.low %v4875_v0, %v4879_v47  ;;  %v6290_v40 = vrot.slane %v6280_v45, %v8410_v36  ;;  %v6297_v14 = vrot.slane %v6281_v28, %v8410_v36  ;;  %vm3877_vm8 = vcmask 392512  }
 0x2b7   :  { %v3448_v9 = vrot.slane %v3434_v42, %v8410_v36  ;;  %v6304_v55 = vrot.slane %v6282_v33, %v8410_v36  ;;  %v9812_v59 = vsel %vm3870_vm7, %v6790_v50, %v6786_v1  ;;  %v3879_v3 = vadd.s32 4294967248, %v8383_v16 }
 0x2b8   :  { %v6311_v58 = vrot.slane %v6283_v62, %v8410_v36  ;;  %v6312_v8 = vcombine.low %v6290_v40, %v6297_v14  ;;  %vm3884_vm9 = vcmask 458112   ;;  %v10547_v35 = vrot.slane %v9696_v43, %v9694_v56 }
 0x2b9   :  { %v3449_v41 = vcombine.low %v3441_v39, %v3448_v9  ;;  %v9817_v31 = vsub.s32 %v3879_v3, %v8380_v11  ;;  %v2019_v63 = vrot.slane %v9126_v44, %v8386_v18  ;;  %v2023_v15 = vrot.slane %v9126_v44, %v8389_v19  ;;  %v6695_v39 = vpop.permute.xlu0 %6694  ;;  %v3770_v3 = vpop.permute.xlu1 %3769 }
 0x2ba   :  { %v3878_v10 = vsel %vm3877_vm8, %v10547_v35, %v3871_v32  ;;  %v6313_v0 = vcombine.low %v6304_v55, %v6311_v58  ;;  %v6320_v62 = vrot.slane %v6312_v8, %v8410_v36  ;;  %v2027_v42 = vrot.slane %v9126_v44, %v8392_v22 }
 0x2bb   :  { %3820 = vperm.xlu0 %7780, %v3449_v41   ;;  %v2031_v47 = vrot.slane %v9126_v44, %v8395_v25  ;;  %v3883_v43 = vrot.slane %v3764_v17, %v9817_v31  ;;  %v2035_v32 = vrot.slane %v9126_v44, %v8398_v26  ;;  %v2039_v45 = vrot.slane %v9126_v44, %v8401_v29 }
 0x2bc   :  { %v2043_v28 = vrot.slane %v9126_v44, %v8404_v30  ;;  %v6327_v33 = vrot.slane %v6313_v0, %v8410_v36  ;;  %v2047_v1 = vrot.slane %v9126_v44, %v8407_v34  ;;  %v3499_v50 = vcombine.low %v2019_v63, %v2023_v15 }
 0x2bd   :  { %v3500_v9 = vcombine.low %v2027_v42, %v2031_v47  ;;  %v3885_v40 = vsel %vm3884_vm9, %v3883_v43, %v3878_v10  ;;  %v3501_v14 = vcombine.low %v2035_v32, %v2039_v45  ;;  %v6805_v55 = vrot.slane %v6695_v39, %v9780_v54  ;;  %v6692_v32 = vpop.permute.xlu0 %6691 }
 0x2be   :  { %vm3891_vm10 = vcmask 523712   ;;  %v6328_v17 = vcombine.low %v6320_v62, %v6327_v33  ;;  %v3502_v41 = vcombine.low %v2043_v28, %v2047_v1  ;;  %v3509_v58 = vrot.slane %v3499_v50, %v8410_v36 }
 0x2bf   :  { %v3516_v8 = vrot.slane %v3500_v9, %v8410_v36  ;;  %v3523_v35 = vrot.slane %v3501_v14, %v8410_v36  ;;  %v3893_v0 = vadd.s32 4294967232, %v8383_v16  ;;  %vm3898_vm11 = vcmask 589312  }
 0x2c0   :  { %v3892_v44 = vsel %vm3891_vm10, %v3890_v6, %v3885_v40  ;;  %6745 = vperm.xlu0 %7780, %v6328_v17   ;;  %v3530_v10 = vrot.slane %v3502_v41, %v8410_v36  ;;  %v2083_v15 = vrot.slane %v9152_v20, %v8386_v18  ;;  %v2087_v62 = vrot.slane %v9152_v20, %v8389_v19  ;;  %v6698_v41 = vpop.permute.xlu1 %6697 }
 0x2c1   :  { %v3531_v63 = vcombine.low %v3509_v58, %v3516_v8  ;;  %v9855_v42 = vsub.s32 %v3893_v0, %v8380_v11  ;;  %v2091_v47 = vrot.slane %v9152_v20, %v8392_v22  ;;  %v2095_v43 = vrot.slane %v9152_v20, %v8395_v25  ;;  %v7654_v45 = vpop.f32.mrb[6].mxu1 }
 0x2c2   :  { %v2099_v6 = vrot.slane %v9152_v20, %v8398_v26  ;;  %v3532_v28 = vcombine.low %v3523_v35, %v3530_v10  ;;  %v2103_v33 = vrot.slane %v9152_v20, %v8401_v29  ;;  %v2107_v1 = vrot.slane %v9152_v20, %v8404_v30  ;;  %1127 = vst.msk [vmem:[%s10531_s3 + $0x38] sm:$0xff] %vm101_vm0, %v7654_v45  ;;  %v991_v50 = vpop.f32.mrb[7].mxu1 }
 0x2c3   :  { %v3539_v39 = vrot.slane %v3531_v63, %v8410_v36  ;;  %v3897_v9 = vrot.slane %v3770_v3, %v9855_v42  ;;  %v2111_v40 = vrot.slane %v9152_v20, %v8407_v34  ;;  %v3597_v14 = vcombine.low %v2083_v15, %v2087_v62  ;;  %1126 = vst.msk [vmem:[%s10531_s3 + $0x30] sm:$0xff] %vm101_vm0, %v991_v50 }
 0x2c4   :  { %v3598_v17 = vcombine.low %v2091_v47, %v2095_v43  ;;  %v3546_v58 = vrot.slane %v3532_v28, %v8410_v36  ;;  %v3599_v8 = vcombine.low %v2099_v6, %v2103_v33  ;;  %v10548_v35 = vrot.slane %v9750_v27, %v9694_v56 }
 0x2c5   :  { %v6800_v0 = vrot.slane %v6692_v32, %v9817_v31  ;;  %v3899_v20 = vsel %vm3898_vm11, %v3897_v9, %v3892_v44  ;;  %v3600_v10 = vcombine.low %v2107_v1, %v2111_v40  ;;  %v3607_v63 = vrot.slane %v3597_v14, %v8410_v36 }
 0x2c6   :  { %v6796_v3 = vsel %vm3877_vm8, %v10548_v35, %v9812_v59  ;;  %v3614_v15 = vrot.slane %v3598_v17, %v8410_v36  ;;  %v3547_v62 = vcombine.low %v3539_v39, %v3546_v58  ;;  %v3621_v47 = vrot.slane %v3599_v8, %v8410_v36 }
 0x2c7   :  { %v6801_v43 = vsel %vm3884_vm9, %v6800_v0, %v6796_v3  ;;  %v6810_v6 = vrot.slane %v6698_v41, %v9855_v42  ;;  %v3628_v27 = vrot.slane %v3600_v10, %v8410_v36  ;;  %v2147_v44 = vrot.slane %v9172_v4, %v8386_v18 }
 0x2c8   :  { %v3629_v45 = vcombine.low %v3607_v63, %v3614_v15  ;;  %v6806_v59 = vsel %vm3891_vm10, %v6805_v55, %v6801_v43  ;;  %3826 = vperm.xlu0 %7780, %v3547_v62   ;;  %v2151_v28 = vrot.slane %v9172_v4, %v8389_v19  ;;  %v2155_v39 = vrot.slane %v9172_v4, %v8392_v22  ;;  %v3773_v63 = vpop.permute.xlu0 %3772  ;;  %v3776_v43 = vpop.permute.xlu1 %3775 }
 0x2c9   :  { %v9897_v32 = vsel %vm3898_vm11, %v6810_v6, %v6806_v59  ;;  %v2159_v33 = vrot.slane %v9172_v4, %v8395_v25  ;;  %v3630_v1 = vcombine.low %v3621_v47, %v3628_v27  ;;  %v2163_v55 = vrot.slane %v9172_v4, %v8398_v26 }
 0x2ca   :  { %v3637_v50 = vrot.slane %v3629_v45, %v8410_v36  ;;  %v2167_v9 = vrot.slane %v9172_v4, %v8401_v29  ;;  %v2171_v40 = vrot.slane %v9172_v4, %v8404_v30  ;;  %v2175_v14 = vrot.slane %v9172_v4, %v8407_v34 }
 0x2cb   :  { %v3695_v17 = vcombine.low %v2147_v44, %v2151_v28  ;;  %v3696_v41 = vcombine.low %v2155_v39, %v2159_v33  ;;  %v3644_v58 = vrot.slane %v3630_v1, %v8410_v36  ;;  %v3900_v35 = vadd.s32 4294967224, %v8383_v16 }
 0x2cc   :  { %v3697_v8 = vcombine.low %v2163_v55, %v2167_v9  ;;  %vm3905_vm12 = vcmask 654912   ;;  %v3698_v3 = vcombine.low %v2171_v40, %v2175_v14  ;;  %v3907_v15 = vadd.s32 4294967216, %v8383_v16 }
 0x2cd   :  { %v3705_v0 = vrot.slane %v3695_v17, %v8410_v36  ;;  %v3712_v10 = vrot.slane %v3696_v41, %v8410_v36  ;;  %v3645_v62 = vcombine.low %v3637_v50, %v3644_v58  ;;  %v9921_v4 = vsub.s32 %v3900_v35, %v8380_v11 }
 0x2ce   :  { %v3719_v47 = vrot.slane %v3697_v8, %v8410_v36  ;;  %vm3912_vm13 = vcmask 720512   ;;  %v3726_v6 = vrot.slane %v3698_v3, %v8410_v36  ;;  %v9925_v45 = vsub.s32 %v3907_v15, %v8380_v11 }
 0x2cf   :  { %v3727_v27 = vcombine.low %v3705_v0, %v3712_v10  ;;  %v4883_v59 = vrot.slane %v9371_v23, %v8386_v18  ;;  %3832 = vperm.xlu0 %7780, %v3645_v62   ;;  %v3904_v44 = vrot.slane %v3773_v63, %v9921_v4  ;;  %v4887_v28 = vrot.slane %v9371_v23, %v8389_v19 }
 0x2d0   :  { %v4891_v39 = vrot.slane %v9371_v23, %v8392_v22  ;;  %v4895_v33 = vrot.slane %v9371_v23, %v8395_v25  ;;  %v3728_v1 = vcombine.low %v3719_v47, %v3726_v6  ;;  %v3911_v55 = vrot.slane %v3776_v43, %v9925_v45  ;;  %v3779_v47 = vpop.permute.xlu0 %3778 }
 0x2d1   :  { %v3735_v50 = vrot.slane %v3727_v27, %v8410_v36  ;;  %v4899_v9 = vrot.slane %v9371_v23, %v8398_v26  ;;  %v3906_v40 = vsel %vm3905_vm12, %v3904_v44, %v3899_v20  ;;  %v4903_v14 = vrot.slane %v9371_v23, %v8401_v29 }
 0x2d2   :  { %v4907_v17 = vrot.slane %v9371_v23, %v8404_v30  ;;  %v4911_v41 = vrot.slane %v9371_v23, %v8407_v34  ;;  %v3742_v58 = vrot.slane %v3728_v1, %v8410_v36  ;;  %v3913_v8 = vsel %vm3912_vm13, %v3911_v55, %v3906_v40 }
 0x2d3   :  { %v6329_v35 = vcombine.low %v4883_v59, %v4887_v28  ;;  %v6330_v3 = vcombine.low %v4891_v39, %v4895_v33  ;;  %v6331_v0 = vcombine.low %v4899_v9, %v4903_v14  ;;  %v3914_v63 = vadd.s32 4294967208, %v8383_v16  ;;  %v3782_v59 = vpop.permute.xlu1 %3781 }
 0x2d4   :  { %v6332_v10 = vcombine.low %v4907_v17, %v4911_v41  ;;  %vm3919_vm14 = vcmask 786112   ;;  %v3743_v20 = vcombine.low %v3735_v50, %v3742_v58  ;;  %v3921_v43 = vadd.s32 4294967200, %v8383_v16 }
 0x2d5   :  { %v6339_v15 = vrot.slane %v6329_v35, %v8410_v36  ;;  %v6346_v62 = vrot.slane %v6330_v3, %v8410_v36  ;;  %v6353_v23 = vrot.slane %v6331_v0, %v8410_v36  ;;  %v9956_v27 = vsub.s32 %v3914_v63, %v8380_v11 }
 0x2d6   :  { %v6360_v6 = vrot.slane %v6332_v10, %v8410_v36  ;;  %vm3926_vm15 = vcmask 851712   ;;  %3838 = vperm.xlu0 %7780, %v3743_v20   ;;  %v9959_v28 = vsub.s32 %v3921_v43, %v8380_v11  ;;  %v4915_v39 = vrot.slane %v9443_v13, %v8386_v18  ;;  %v7657_v1 = vpop.f32.mrb[8].mxu1 }
 0x2d7   :  { %v6361_v44 = vcombine.low %v6339_v15, %v6346_v62  ;;  %v4919_v33 = vrot.slane %v9443_v13, %v8389_v19  ;;  %v3918_v55 = vrot.slane %v3779_v47, %v9956_v27  ;;  %v4923_v9 = vrot.slane %v9443_v13, %v8392_v22  ;;  %1129 = vst.msk [vmem:[%s10531_s3 + $0x48] sm:$0xff] %vm101_vm0, %v7657_v1  ;;  %v1001_v14 = vpop.f32.mrb[9].mxu1  ;;  %v3785_v1 = vpop.permute.xlu0 %3784 }
 0x2d8   :  { %v6362_v50 = vcombine.low %v6353_v23, %v6360_v6  ;;  %v4927_v40 = vrot.slane %v9443_v13, %v8395_v25  ;;  %v3925_v41 = vrot.slane %v3782_v59, %v9959_v28  ;;  %v4931_v58 = vrot.slane %v9443_v13, %v8398_v26  ;;  %1128 = vst.msk [vmem:[%s10531_s3 + $0x40] sm:$0xff] %vm101_vm0, %v1001_v14 }
 0x2d9   :  { %v6369_v17 = vrot.slane %v6361_v44, %v8410_v36  ;;  %v4935_v35 = vrot.slane %v9443_v13, %v8401_v29  ;;  %v3920_v0 = vsel %vm3919_vm14, %v3918_v55, %v3913_v8  ;;  %v4939_v10 = vrot.slane %v9443_v13, %v8404_v30 }
 0x2da   :  { %v6376_v3 = vrot.slane %v6362_v50, %v8410_v36  ;;  %v4943_v63 = vrot.slane %v9443_v13, %v8407_v34  ;;  %v3927_v20 = vsel %vm3926_vm15, %v3925_v41, %v3920_v0  ;;  %v6378_v15 = vcombine.low %v4915_v39, %v4919_v33  ;;  %v3788_v33 = vpop.permute.xlu1 %3787 }
 0x2db   :  { %v6379_v62 = vcombine.low %v4923_v9, %v4927_v40  ;;  %v6380_v47 = vcombine.low %v4931_v58, %v4935_v35  ;;  %v3928_v6 = vadd.s32 4294967192, %v8383_v16  ;;  %vm3933_vm1 = vcmask 917312  }
 0x2dc   :  { %v6377_v43 = vcombine.low %v6369_v17, %v6376_v3  ;;  %v6381_v23 = vcombine.low %v4939_v10, %v4943_v63  ;;  %v6388_v59 = vrot.slane %v6378_v15, %v8410_v36  ;;  %v3935_v50 = vadd.s32 4294967184, %v8383_v16 }
 0x2dd   :  { %v6395_v8 = vrot.slane %v6379_v62, %v8410_v36  ;;  %v6402_v44 = vrot.slane %v6380_v47, %v8410_v36  ;;  %v9998_v39 = vsub.s32 %v3928_v6, %v8380_v11  ;;  %vm3940_vm2 = vcmask 982912  }
 0x2de   :  { %6748 = vperm.xlu0 %7780, %v6377_v43   ;;  %v6409_v13 = vrot.slane %v6381_v23, %v8410_v36  ;;  %v7204_v55 = vadd.f32 %v9593_v53, %v9636_v21  ;;  %v10003_v40 = vsub.s32 %v3935_v50, %v8380_v11  ;;  %v4947_v14 = vrot.slane %v9396_v61, %v8386_v18 }
 0x2df   :  { %v6410_v9 = vcombine.low %v6388_v59, %v6395_v8  ;;  %v4951_v17 = vrot.slane %v9396_v61, %v8389_v19  ;;  %v3932_v58 = vrot.slane %v3785_v1, %v9998_v39  ;;  %v4955_v35 = vrot.slane %v9396_v61, %v8392_v22 }
 0x2e0   :  { %v6411_v41 = vcombine.low %v6402_v44, %v6409_v13  ;;  %7265 = vadd.xlane.f32.xlu1 %v7204_v55  ;;  %v4959_v53 = vrot.slane %v9396_v61, %v8395_v25  ;;  %v3939_v3 = vrot.slane %v3788_v33, %v10003_v40  ;;  %v4963_v0 = vrot.slane %v9396_v61, %v8398_v26  ;;  %v3791_v55 = vpop.permute.xlu0 %3790 }
 0x2e1   :  { %v6418_v21 = vrot.slane %v6410_v9, %v8410_v36  ;;  %v4967_v10 = vrot.slane %v9396_v61, %v8401_v29  ;;  %v3934_v15 = vsel %vm3933_vm1, %v3932_v58, %v3927_v20  ;;  %v4971_v62 = vrot.slane %v9396_v61, %v8404_v30  ;;  %v7660_v43 = vpop.f32.mrb[10].mxu1 }
 0x2e2   :  { %v6425_v63 = vrot.slane %v6411_v41, %v8410_v36  ;;  %v4975_v47 = vrot.slane %v9396_v61, %v8407_v34  ;;  %v6427_v23 = vcombine.low %v4947_v14, %v4951_v17  ;;  %v6428_v6 = vcombine.low %v4955_v35, %v4959_v53  ;;  %1131 = vst.msk [vmem:[%s10531_s3 + $0x58] sm:$0xff] %vm101_vm0, %v7660_v43  ;;  %v1011_v8 = vpop.f32.mrb[11].mxu1 }
 0x2e3   :  { %v6429_v59 = vcombine.low %v4963_v0, %v4967_v10  ;;  %v3941_v1 = vsel %vm3940_vm2, %v3939_v3, %v3934_v15  ;;  %v3942_v50 = vadd.s32 4294967176, %v8383_v16  ;;  %1130 = vst.msk [vmem:[%s10531_s3 + $0x50] sm:$0xff] %vm101_vm0, %v1011_v8  ;;  %vm3947_vm3 = vcmask 1048512  }
 0x2e4   :  { %v6426_v44 = vcombine.low %v6418_v21, %v6425_v63  ;;  %v6430_v20 = vcombine.low %v4971_v62, %v4975_v47  ;;  %v6437_v61 = vrot.slane %v6427_v23, %v8410_v36  ;;  %v6444_v13 = vrot.slane %v6428_v6, %v8410_v36 }
 0x2e5   :  { %v6451_v33 = vrot.slane %v6429_v59, %v8410_v36  ;;  %v10041_v14 = vsub.s32 %v3942_v50, %v8380_v11  ;;  %v4979_v16 = vrot.slane %v9477_v51, %v8386_v18  ;;  %v4983_v17 = vrot.slane %v9477_v51, %v8389_v19 }
 0x2e6   :  { %6751 = vperm.xlu0 %7780, %v6426_v44   ;;  %v6458_v9 = vrot.slane %v6430_v20, %v8410_v36  ;;  %v6459_v41 = vcombine.low %v6437_v61, %v6444_v13  ;;  %v4987_v58 = vrot.slane %v9477_v51, %v8392_v22  ;;  %v4991_v35 = vrot.slane %v9477_v51, %v8395_v25 }
 0x2e7   :  { %v4995_v53 = vrot.slane %v9477_v51, %v8398_v26  ;;  %v3946_v11 = vrot.slane %v3791_v55, %v10041_v14  ;;  %v4999_v3 = vrot.slane %v9477_v51, %v8401_v29  ;;  %v5003_v0 = vrot.slane %v9477_v51, %v8404_v30 }
 0x2e8   :  { %v6460_v21 = vcombine.low %v6451_v33, %v6458_v9  ;;  %v6467_v10 = vrot.slane %v6459_v41, %v8410_v36  ;;  %v5007_v63 = vrot.slane %v9477_v51, %v8407_v34  ;;  %v6476_v15 = vcombine.low %v4979_v16, %v4983_v17 }
 0x2e9   :  { %v6477_v62 = vcombine.low %v4987_v58, %v4991_v35  ;;  %v10063_v43 = vsel %vm3947_vm3, %v3946_v11, %v3941_v1  ;;  %v6478_v23 = vcombine.low %v4995_v53, %v4999_v3  ;;  %v5011_v50 = vrot.slane %v9417_v46, %v8386_v18 }
 0x2ea   :  { %v6474_v47 = vrot.slane %v6460_v21, %v8410_v36  ;;  %v6479_v6 = vcombine.low %v5003_v0, %v5007_v63  ;;  %v6486_v59 = vrot.slane %v6476_v15, %v8410_v36  ;;  %v5015_v13 = vrot.slane %v9417_v46, %v8389_v19 }
 0x2eb   :  { %v6493_v8 = vrot.slane %v6477_v62, %v8410_v36  ;;  %v6500_v20 = vrot.slane %v6478_v23, %v8410_v36  ;;  %v5019_v33 = vrot.slane %v9417_v46, %v8392_v22  ;;  %v5023_v55 = vrot.slane %v9417_v46, %v8395_v25 }
 0x2ec   :  { %v6475_v44 = vcombine.low %v6467_v10, %v6474_v47  ;;  %v6507_v51 = vrot.slane %v6479_v6, %v8410_v36  ;;  %v7663_v1 = vpop.f32.mrb[12].mxu1  ;;  %v5027_v9 = vrot.slane %v9417_v46, %v8398_v26  ;;  %v5031_v16 = vrot.slane %v9417_v46, %v8401_v29 }
 0x2ed   :  { %v6508_v61 = vcombine.low %v6486_v59, %v6493_v8  ;;  %1133 = vst.msk [vmem:[%s10531_s3 + $0x68] sm:$0xff] %vm101_vm0, %v7663_v1  ;;  %v1021_v17 = vpop.f32.mrb[13].mxu1  ;;  %v5035_v35 = vrot.slane %v9417_v46, %v8404_v30  ;;  %v5039_v53 = vrot.slane %v9417_v46, %v8407_v34  ;;  %v6525_v21 = vcombine.low %v5011_v50, %v5015_v13 }
 0x2ee   :  { %6754 = vperm.xlu0 %7780, %v6475_v44   ;;  %v6509_v41 = vcombine.low %v6500_v20, %v6507_v51  ;;  %1132 = vst.msk [vmem:[%s10531_s3 + $0x60] sm:$0xff] %vm101_vm0, %v1021_v17  ;;  %v6526_v11 = vcombine.low %v5019_v33, %v5023_v55  ;;  %v6527_v3 = vcombine.low %v5027_v9, %v5031_v16 }
 0x2ef   :  { %v6516_v58 = vrot.slane %v6508_v61, %v8410_v36  ;;  %v5043_v0 = vrot.slane %v9510_v60, %v8386_v18  ;;  %v6528_v63 = vcombine.low %v5035_v35, %v5039_v53  ;;  %v5047_v15 = vrot.slane %v9510_v60, %v8389_v19 }
 0x2f0   :  { %v6523_v10 = vrot.slane %v6509_v41, %v8410_v36  ;;  %v5051_v46 = vrot.slane %v9510_v60, %v8392_v22  ;;  %v6535_v62 = vrot.slane %v6525_v21, %v8410_v36  ;;  %v6542_v47 = vrot.slane %v6526_v11, %v8410_v36  ;;  %v10126_v11 = vpop.permute.xlu0 %3796 }
 0x2f1   :  { %v6549_v23 = vrot.slane %v6527_v3, %v8410_v36  ;;  %v5055_v6 = vrot.slane %v9510_v60, %v8395_v25  ;;  %v6556_v8 = vrot.slane %v6528_v63, %v8410_v36  ;;  %v5059_v44 = vrot.slane %v9510_v60, %v8398_v26 }
 0x2f2   :  { %v6524_v59 = vcombine.low %v6516_v58, %v6523_v10  ;;  %v5063_v20 = vrot.slane %v9510_v60, %v8401_v29  ;;  %v6557_v50 = vcombine.low %v6535_v62, %v6542_v47  ;;  %v5067_v51 = vrot.slane %v9510_v60, %v8404_v30 }
 0x2f3   :  { %v5071_v61 = vrot.slane %v9510_v60, %v8407_v34  ;;  %v6574_v13 = vcombine.low %v5043_v0, %v5047_v15  ;;  %v6558_v1 = vcombine.low %v6549_v23, %v6556_v8  ;;  %v6575_v33 = vcombine.low %v5051_v46, %v5055_v6 }
 0x2f4   :  { %6757 = vperm.xlu0 %7780, %v6524_v59   ;;  %v6576_v55 = vcombine.low %v5059_v44, %v5063_v20  ;;  %v5075_v9 = vrot.slane %v9439_v49, %v8386_v18  ;;  %v6565_v16 = vrot.slane %v6557_v50, %v8410_v36  ;;  %v5079_v58 = vrot.slane %v9439_v49, %v8389_v19 }
 0x2f5   :  { %v6577_v17 = vcombine.low %v5067_v51, %v5071_v61  ;;  %v6584_v41 = vrot.slane %v6574_v13, %v8410_v36  ;;  %v6572_v35 = vrot.slane %v6558_v1, %v8410_v36  ;;  %v6591_v60 = vrot.slane %v6575_v33, %v8410_v36 }
 0x2f6   :  { %v6598_v53 = vrot.slane %v6576_v55, %v8410_v36  ;;  %v5083_v21 = vrot.slane %v9439_v49, %v8392_v22  ;;  %v5087_v0 = vrot.slane %v9439_v49, %v8395_v25  ;;  %v5091_v10 = vrot.slane %v9439_v49, %v8398_v26 }
 0x2f7   :  { %v6605_v3 = vrot.slane %v6577_v17, %v8410_v36  ;;  %v5095_v63 = vrot.slane %v9439_v49, %v8401_v29  ;;  %v7666_v15 = vpop.f32.mrb[14].mxu1  ;;  %v6573_v46 = vcombine.low %v6565_v16, %v6572_v35  ;;  %v6606_v62 = vcombine.low %v6584_v41, %v6591_v60 }
 0x2f8   :  { %v5099_v47 = vrot.slane %v9439_v49, %v8404_v30  ;;  %v5103_v23 = vrot.slane %v9439_v49, %v8407_v34  ;;  %1135 = vst.msk [vmem:[%s10531_s3 + $0x78] sm:$0xff] %vm101_vm0, %v7666_v15  ;;  %v1031_v6 = vpop.f32.mrb[15].mxu1  ;;  %v6623_v8 = vcombine.low %v5075_v9, %v5079_v58  ;;  %v6624_v44 = vcombine.low %v5083_v21, %v5087_v0  ;;  %v10156_v9 = vpop.permute.xlu0 %6724 }
 0x2f9   :  { %v6607_v59 = vcombine.low %v6598_v53, %v6605_v3  ;;  %v6625_v20 = vcombine.low %v5091_v10, %v5095_v63  ;;  %1134 = vst.msk [vmem:[%s10531_s3 + $0x70] sm:$0xff] %vm101_vm0, %v1031_v6  ;;  %6760 = vperm.xlu0 %7780, %v6573_v46   ;;  %v6614_v50 = vrot.slane %v6606_v62, %v8410_v36 }
 0x2fa   :  { %v6626_v51 = vcombine.low %v5099_v47, %v5103_v23  ;;  %v4371_v49 = vrot.slane %v8823_v48, %v8386_v18  ;;  %v4375_v61 = vrot.slane %v8823_v48, %v8389_v19  ;;  %v6633_v1 = vrot.slane %v6623_v8, %v8410_v36 }
 0x2fb   :  { %v6621_v13 = vrot.slane %v6607_v59, %v8410_v36  ;;  %v6640_v33 = vrot.slane %v6624_v44, %v8410_v36  ;;  %v6647_v55 = vrot.slane %v6625_v20, %v8410_v36  ;;  %v4379_v17 = vrot.slane %v8823_v48, %v8392_v22 }
 0x2fc   :  { %v6654_v16 = vrot.slane %v6626_v51, %v8410_v36  ;;  %v4383_v41 = vrot.slane %v8823_v48, %v8395_v25  ;;  %v4387_v58 = vrot.slane %v8823_v48, %v8398_v26  ;;  %v4391_v53 = vrot.slane %v8823_v48, %v8401_v29  ;;  %v10186_v51 = vpop.permute.xlu0 %6721 }
 0x2fd   :  { %v6622_v35 = vcombine.low %v6614_v50, %v6621_v13  ;;  %v6655_v60 = vcombine.low %v6633_v1, %v6640_v33  ;;  %v4395_v21 = vrot.slane %v8823_v48, %v8404_v30  ;;  %v4399_v0 = vrot.slane %v8823_v48, %v8407_v34 }
 0x2fe   :  { %v6656_v3 = vcombine.low %v6647_v55, %v6654_v16  ;;  %v5545_v10 = vcombine.low %v4371_v49, %v4375_v61  ;;  %v5546_v63 = vcombine.low %v4379_v17, %v4383_v41  ;;  %v5547_v46 = vcombine.low %v4387_v58, %v4391_v53 }
 0x2ff   :  { %6763 = vperm.xlu0 %7780, %v6622_v35   ;;  %v6663_v15 = vrot.slane %v6655_v60, %v8410_v36  ;;  %v4403_v62 = vrot.slane %v9208_v24, %v8386_v18  ;;  %v4407_v47 = vrot.slane %v9208_v24, %v8389_v19  ;;  %v5548_v6 = vcombine.low %v4395_v21, %v4399_v0 }
 0x300   :  { %v6670_v23 = vrot.slane %v6656_v3, %v8410_v36  ;;  %v5555_v59 = vrot.slane %v5545_v10, %v8410_v36  ;;  %v5562_v8 = vrot.slane %v5546_v63, %v8410_v36  ;;  %v5569_v48 = vrot.slane %v5547_v46, %v8410_v36 }
 0x301   :  { %v4411_v44 = vrot.slane %v9208_v24, %v8392_v22  ;;  %v4415_v20 = vrot.slane %v9208_v24, %v8395_v25  ;;  %v4419_v50 = vrot.slane %v9208_v24, %v8398_v26  ;;  %v5576_v61 = vrot.slane %v5548_v6, %v8410_v36 }
 0x302   :  { %v6671_v49 = vcombine.low %v6663_v15, %v6670_v23  ;;  %v5577_v13 = vcombine.low %v5555_v59, %v5562_v8  ;;  %v4423_v1 = vrot.slane %v9208_v24, %v8401_v29  ;;  %v7669_v33 = vpop.f32.mrb[16].mxu1  ;;  %v4427_v55 = vrot.slane %v9208_v24, %v8404_v30  ;;  %v10221_v8 = vpop.permute.xlu0 %3802 }
 0x303   :  { %v4431_v16 = vrot.slane %v9208_v24, %v8407_v34  ;;  %v5594_v17 = vcombine.low %v4403_v62, %v4407_v47  ;;  %v5595_v41 = vcombine.low %v4411_v44, %v4415_v20  ;;  %1137 = vst.msk [vmem:[%s10531_s3 + $0x88] sm:$0xff] %vm101_vm0, %v7669_v33  ;;  %v1041_v58 = vpop.f32.mrb[17].mxu1  ;;  %v5578_v35 = vcombine.low %v5569_v48, %v5576_v61 }
 0x304   :  { %6766 = vperm.xlu0 %7780, %v6671_v49   ;;  %v5585_v60 = vrot.slane %v5577_v13, %v8410_v36  ;;  %v5596_v53 = vcombine.low %v4419_v50, %v4423_v1  ;;  %v4435_v21 = vrot.slane %v9198_v57, %v8386_v18  ;;  %1136 = vst.msk [vmem:[%s10531_s3 + $0x80] sm:$0xff] %vm101_vm0, %v1041_v58 }
 0x305   :  { %v5597_v24 = vcombine.low %v4427_v55, %v4431_v16  ;;  %v5604_v3 = vrot.slane %v5594_v17, %v8410_v36  ;;  %v5611_v0 = vrot.slane %v5595_v41, %v8410_v36  ;;  %v4439_v10 = vrot.slane %v9198_v57, %v8389_v19 }
 0x306   :  { %v5592_v63 = vrot.slane %v5578_v35, %v8410_v36  ;;  %v5618_v15 = vrot.slane %v5596_v53, %v8410_v36  ;;  %v4443_v46 = vrot.slane %v9198_v57, %v8392_v22  ;;  %v4447_v62 = vrot.slane %v9198_v57, %v8395_v25 }
 0x307   :  { %v5625_v47 = vrot.slane %v5597_v24, %v8410_v36  ;;  %v5626_v23 = vcombine.low %v5604_v3, %v5611_v0  ;;  %v4451_v6 = vrot.slane %v9198_v57, %v8398_v26  ;;  %v4455_v59 = vrot.slane %v9198_v57, %v8401_v29 }
 0x308   :  { %v5593_v48 = vcombine.low %v5585_v60, %v5592_v63  ;;  %v4459_v44 = vrot.slane %v9198_v57, %v8404_v30  ;;  %v4463_v20 = vrot.slane %v9198_v57, %v8407_v34  ;;  %v5643_v50 = vcombine.low %v4435_v21, %v4439_v10 }
 0x309   :  { %v5627_v49 = vcombine.low %v5618_v15, %v5625_v47  ;;  %v5634_v61 = vrot.slane %v5626_v23, %v8410_v36  ;;  %v5644_v13 = vcombine.low %v4443_v46, %v4447_v62  ;;  %v5645_v1 = vcombine.low %v4451_v6, %v4455_v59  ;;  %v10249_v15 = vpop.permute.xlu0 %6730 }
 0x30a   :  { %6700 = vperm.xlu1 %7779, %v5593_v48   ;;  %v5646_v33 = vcombine.low %v4459_v44, %v4463_v20  ;;  %v5653_v55 = vrot.slane %v5643_v50, %v8410_v36  ;;  %v4467_v16 = vrot.slane %v9242_v7, %v8386_v18  ;;  %v4471_v17 = vrot.slane %v9242_v7, %v8389_v19 }
 0x30b   :  { %v5641_v41 = vrot.slane %v5627_v49, %v8410_v36  ;;  %v5660_v57 = vrot.slane %v5644_v13, %v8410_v36  ;;  %v5667_v58 = vrot.slane %v5645_v1, %v8410_v36  ;;  %v4475_v35 = vrot.slane %v9242_v7, %v8392_v22 }
 0x30c   :  { %v5674_v60 = vrot.slane %v5646_v33, %v8410_v36  ;;  %v4479_v53 = vrot.slane %v9242_v7, %v8395_v25  ;;  %v4483_v21 = vrot.slane %v9242_v7, %v8398_v26  ;;  %v4487_v24 = vrot.slane %v9242_v7, %v8401_v29 }
 0x30d   :  { %v5642_v3 = vcombine.low %v5634_v61, %v5641_v41  ;;  %v5675_v0 = vcombine.low %v5653_v55, %v5660_v57  ;;  %v4491_v10 = vrot.slane %v9242_v7, %v8404_v30  ;;  %v4495_v63 = vrot.slane %v9242_v7, %v8407_v34  ;;  %v7672_v46 = vpop.f32.mrb[18].mxu1 }
 0x30e   :  { %v5676_v62 = vcombine.low %v5667_v58, %v5674_v60  ;;  %v5692_v47 = vcombine.low %v4467_v16, %v4471_v17  ;;  %v5693_v23 = vcombine.low %v4475_v35, %v4479_v53  ;;  %v5694_v6 = vcombine.low %v4483_v21, %v4487_v24  ;;  %1139 = vst.msk [vmem:[%s10531_s3 + $0x98] sm:$0xff] %vm101_vm0, %v7672_v46  ;;  %v1051_v59 = vpop.f32.mrb[19].mxu1  ;;  %v10281_v24 = vpop.permute.xlu0 %6727 }
 0x30f   :  { %6703 = vperm.xlu1 %7779, %v5642_v3   ;;  %v5683_v48 = vrot.slane %v5675_v0, %v8410_v36  ;;  %v5695_v44 = vcombine.low %v4491_v10, %v4495_v63  ;;  %v4499_v7 = vrot.slane %v9232_v52, %v8386_v18  ;;  %v4503_v20 = vrot.slane %v9232_v52, %v8389_v19  ;;  %v10549_v10 = vld [vmem:[#allocation10_spill] sm:$0xff] }
 0x310   :  { %1138 = vst.msk [vmem:[%s10531_s3 + $0x90] sm:$0xff] %vm101_vm0, %v1051_v59  ;;  %v5690_v50 = vrot.slane %v5676_v62, %v8410_v36  ;;  %v5702_v49 = vrot.slane %v5692_v47, %v8410_v36  ;;  %v5709_v61 = vrot.slane %v5693_v23, %v8410_v36  ;;  %v5716_v13 = vrot.slane %v5694_v6, %v8410_v36 }
 0x311   :  { %v5723_v1 = vrot.slane %v5695_v44, %v8410_v36  ;;  %v4507_v33 = vrot.slane %v9232_v52, %v8392_v22  ;;  %v4511_v55 = vrot.slane %v9232_v52, %v8395_v25  ;;  %v4515_v16 = vrot.slane %v9232_v52, %v8398_v26 }
 0x312   :  { %v5691_v17 = vcombine.low %v5683_v48, %v5690_v50  ;;  %v5724_v41 = vcombine.low %v5702_v49, %v5709_v61  ;;  %v4519_v57 = vrot.slane %v9232_v52, %v8401_v29  ;;  %v4523_v58 = vrot.slane %v9232_v52, %v8404_v30  ;;  %v10301_v61 = vpop.permute.xlu1 %3793 }
 0x313   :  { %v5725_v35 = vcombine.low %v5716_v13, %v5723_v1  ;;  %v4527_v60 = vrot.slane %v9232_v52, %v8407_v34  ;;  %v5741_v53 = vcombine.low %v4499_v7, %v4503_v20  ;;  %v5742_v21 = vcombine.low %v4507_v33, %v4511_v55 }
 0x314   :  { %6706 = vperm.xlu1 %7779, %v5691_v17   ;;  %v5732_v3 = vrot.slane %v5724_v41, %v8410_v36  ;;  %v5743_v0 = vcombine.low %v4515_v16, %v4519_v57  ;;  %v4531_v63 = vrot.slane %v10549_v10, %v8386_v18  ;;  %v4535_v46 = vrot.slane %v10549_v10, %v8389_v19 }
 0x315   :  { %v5739_v62 = vrot.slane %v5725_v35, %v8410_v36  ;;  %v5744_v47 = vcombine.low %v4523_v58, %v4527_v60  ;;  %v5751_v23 = vrot.slane %v5741_v53, %v8410_v36  ;;  %v5758_v52 = vrot.slane %v5742_v21, %v8410_v36  ;;  %v10550_v58 = vld [vmem:[#allocation9_spill] sm:$0xff]  ;;  %v10310_v60 = vpop.permute.xlu0 %3808 }
 0x316   :  { %v5765_v6 = vrot.slane %v5743_v0, %v8410_v36  ;;  %v4539_v59 = vrot.slane %v10549_v10, %v8392_v22  ;;  %v4543_v48 = vrot.slane %v10549_v10, %v8395_v25  ;;  %v4547_v44 = vrot.slane %v10549_v10, %v8398_v26 }
 0x317   :  { %v5740_v7 = vcombine.low %v5732_v3, %v5739_v62  ;;  %v5772_v20 = vrot.slane %v5744_v47, %v8410_v36  ;;  %v5773_v50 = vcombine.low %v5751_v23, %v5758_v52  ;;  %v4551_v49 = vrot.slane %v10549_v10, %v8401_v29 }
 0x318   :  { %v4555_v13 = vrot.slane %v10549_v10, %v8404_v30  ;;  %v4559_v1 = vrot.slane %v10549_v10, %v8407_v34  ;;  %v5790_v33 = vcombine.low %v4531_v63, %v4535_v46  ;;  %v5791_v55 = vcombine.low %v4539_v59, %v4543_v48  ;;  %v7675_v16 = vpop.f32.mrb[20].mxu1 }
 0x319   :  { %6709 = vperm.xlu1 %7779, %v5740_v7   ;;  %v5774_v17 = vcombine.low %v5765_v6, %v5772_v20  ;;  %v5781_v41 = vrot.slane %v5773_v50, %v8410_v36  ;;  %v5792_v57 = vcombine.low %v4547_v44, %v4551_v49  ;;  %v4563_v35 = vrot.slane %v10550_v58, %v8386_v18  ;;  %v1061_v53 = vpop.f32.mrb[21].mxu1 }
 0x31a   :  { %1141 = vst.msk [vmem:[%s10531_s3 + $0xa8] sm:$0xff] %vm101_vm0, %v7675_v16  ;;  %v5793_v21 = vcombine.low %v4555_v13, %v4559_v1  ;;  %v5800_v3 = vrot.slane %v5790_v33, %v8410_v36  ;;  %v5807_v0 = vrot.slane %v5791_v55, %v8410_v36  ;;  %v4567_v10 = vrot.slane %v10550_v58, %v8389_v19  ;;  %v6734_v1 = vpop.permute.xlu0 %6733 }
 0x31b   :  { %1140 = vst.msk [vmem:[%s10531_s3 + $0xa0] sm:$0xff] %vm101_vm0, %v1061_v53  ;;  %v5788_v18 = vrot.slane %v5774_v17, %v8410_v36  ;;  %v5814_v63 = vrot.slane %v5792_v57, %v8410_v36  ;;  %v4571_v46 = vrot.slane %v10550_v58, %v8392_v22  ;;  %v4575_v62 = vrot.slane %v10550_v58, %v8395_v25 }
 0x31c   :  { %v5821_v47 = vrot.slane %v5793_v21, %v8410_v36  ;;  %v5822_v23 = vcombine.low %v5800_v3, %v5807_v0  ;;  %v4579_v19 = vrot.slane %v10550_v58, %v8398_v26  ;;  %v4583_v52 = vrot.slane %v10550_v58, %v8401_v29  ;;  %v7678_v6 = vpop.f32.mrb[22].mxu1 }
 0x31d   :  { %v5789_v59 = vcombine.low %v5781_v41, %v5788_v18  ;;  %v4587_v48 = vrot.slane %v10550_v58, %v8404_v30  ;;  %v4591_v22 = vrot.slane %v10550_v58, %v8407_v34  ;;  %v5839_v44 = vcombine.low %v4563_v35, %v4567_v10  ;;  %1143 = vst.msk [vmem:[%s10531_s3 + $0xb8] sm:$0xff] %vm101_vm0, %v7678_v6  ;;  %v1071_v25 = vpop.f32.mrb[23].mxu1  ;;  %v10348_v30 = vpop.permute.xlu1 %3799 }
 0x31e   :  { %v5823_v7 = vcombine.low %v5814_v63, %v5821_v47  ;;  %v5830_v26 = vrot.slane %v5822_v23, %v8410_v36  ;;  %v5840_v20 = vcombine.low %v4571_v46, %v4575_v62  ;;  %v5841_v29 = vcombine.low %v4579_v19, %v4583_v52  ;;  %1142 = vst.msk [vmem:[%s10531_s3 + $0xb0] sm:$0xff] %vm101_vm0, %v1071_v25  ;;  %v3815_v62 = vpop.permute.xlu0 %3814 }
 0x31f   :  { %6712 = vperm.xlu1 %7779, %v5789_v59   ;;  %v5842_v34 = vcombine.low %v4587_v48, %v4591_v22  ;;  %v5849_v50 = vrot.slane %v5839_v44, %v8410_v36  ;;  %v6854_v49 = vrot.slane %v10156_v9, %v9435_v2  ;;  %v6850_v13 = vrot.slane %v10186_v51, %v9495_v38 }
 0x320   :  { %v5837_v33 = vrot.slane %v5823_v7, %v8410_v36  ;;  %v5856_v55 = vrot.slane %v5840_v20, %v8410_v36  ;;  %v5863_v16 = vrot.slane %v5841_v29, %v8410_v36  ;;  %v7681_v17 = vpop.f32.mrb[24].mxu1  ;;  %v6859_v21 = vrot.slane %v10281_v24, %v9642_v12 }
 0x321   :  { %v5870_v41 = vrot.slane %v5842_v34, %v8410_v36  ;;  %v6855_v57 = vsel %vm3849_vm4, %v6854_v49, %v6850_v13  ;;  %1145 = vst.msk [vmem:[%s10531_s3 + $0xc8] sm:$0xff] %vm101_vm0, %v7681_v17  ;;  %v1081_v9 = vpop.f32.mrb[25].mxu1  ;;  %v6737_v53 = vpop.permute.xlu1 %6736  ;;  %v6864_v0 = vrot.slane %v10249_v15, %v9559_v5  ;;  %v6869_v46 = vrot.slane %v6734_v1, %v9726_v37 }
 0x322   :  { %v5838_v58 = vcombine.low %v5830_v26, %v5837_v33  ;;  %v5871_v51 = vcombine.low %v5849_v50, %v5856_v55  ;;  %1144 = vst.msk [vmem:[%s10531_s3 + $0xc0] sm:$0xff] %vm101_vm0, %v1081_v9  ;;  %v6860_v63 = vsel %vm3856_vm5, %v6859_v21, %v6855_v57  ;;  %v6874_v47 = vrot.slane %v6737_v53, %v9694_v56 }
 0x323   :  { %v5872_v35 = vcombine.low %v5863_v16, %v5870_v41  ;;  %v6865_v23 = vsel %vm3863_vm6, %v6864_v0, %v6860_v63  ;;  %v3952_v49 = vrot.slane %v10301_v61, %v9495_v38  ;;  %v3956_v13 = vrot.slane %v10126_v11, %v9435_v2 }
 0x324   :  { %6715 = vperm.xlu1 %7779, %v5838_v58   ;;  %v5879_v3 = vrot.slane %v5871_v51, %v8410_v36  ;;  %v7684_v10 = vpop.f32.mrb[26].mxu1  ;;  %v6870_v19 = vsel %vm3870_vm7, %v6869_v46, %v6865_v23  ;;  %v3961_v33 = vrot.slane %v10348_v30, %v9642_v12  ;;  %v3966_v16 = vrot.slane %v10221_v8, %v9559_v5 }
 0x325   :  { %v5886_v18 = vrot.slane %v5872_v35, %v8410_v36  ;;  %1147 = vst.msk [vmem:[%s10531_s3 + $0xd8] sm:$0xff] %vm101_vm0, %v7684_v10  ;;  %v1091_v24 = vpop.f32.mrb[27].mxu1  ;;  %v6875_v52 = vsel %vm3877_vm8, %v6874_v47, %v6870_v19  ;;  %v3806_v20 = vpop.permute.xlu1 %3805  ;;  %v3957_v55 = vsel %vm3849_vm4, %v3956_v13, %v3952_v49  ;;  %v3976_v9 = vrot.slane %v10310_v60, %v9694_v56 }
 0x326   :  { %1146 = vst.msk [vmem:[%s10531_s3 + $0xd0] sm:$0xff] %vm101_vm0, %v1091_v24  ;;  %v3971_v17 = vrot.slane %v3806_v20, %v9726_v37  ;;  %v3962_v2 = vsel %vm3856_vm5, %v3961_v33, %v3957_v55  ;;  %v3986_v37 = vrot.slane %v3815_v62, %v9780_v54 }
 0x327   :  { %v5887_v15 = vcombine.low %v5879_v3, %v5886_v18  ;;  %v3967_v11 = vsel %vm3863_vm6, %v3966_v16, %v3962_v2 }
 0x328   :  { %v7687_v6 = vpop.f32.mrb[28].mxu1  ;;  %v3972_v61 = vsel %vm3870_vm7, %v3971_v17, %v3967_v11 }
 0x329   :  { %6718 = vperm.xlu1 %7779, %v5887_v15   ;;  %1149 = vst.msk [vmem:[%s10531_s3 + $0xe8] sm:$0xff] %vm101_vm0, %v7687_v6  ;;  %v1101_v59 = vpop.f32.mrb[29].mxu1  ;;  %v3812_v1 = vpop.permute.xlu1 %3811  ;;  %v3977_v5 = vsel %vm3877_vm8, %v3976_v9, %v3972_v61 }
 0x32a   :  { %1148 = vst.msk [vmem:[%s10531_s3 + $0xe0] sm:$0xff] %vm101_vm0, %v1101_v59  ;;  %v3981_v8 = vrot.slane %v3812_v1, %v9817_v31 }
 0x32b   :  { %v6743_v48 = vpop.permute.xlu0 %6742 }
 0x32c   :  { %v7690_v22 = vpop.f32.mrb[30].mxu1  ;;  %v6884_v26 = vrot.slane %v6743_v48, %v9780_v54  ;;  %v3982_v56 = vsel %vm3884_vm9, %v3981_v8, %v3977_v5  ;;  %v10551_v48 = vlaneseq }
 0x32d   :  { %1151 = vst.msk [vmem:[%s10531_s3 + $0xf8] sm:$0xff] %vm101_vm0, %v7690_v22  ;;  %v1111_v44 = vpop.f32.mrb[31].mxu1  ;;  %v3818_v57 = vpop.permute.xlu1 %3817  ;;  %v3987_v60 = vsel %vm3891_vm10, %v3986_v37, %v3982_v56 }
 0x32e   :  { %1150 = vst.msk [vmem:[%s10531_s3 + $0xf0] sm:$0xff] %vm101_vm0, %v1111_v44  ;;  %v3991_v35 = vrot.slane %v3818_v57, %v9855_v42  ;;  %s7856_s3 = smov [#allocation2]   ;;  %vm10451_vm0 = vcmp.lt.s32.totalorder %v10551_v48, 256 }
 0x32f   :  { %s7285_s1 = sshll.u32 %s7856_s3, 4  ;;  %s7286_s1 = int_to_ptr.vmem [resolvable:$true] %s7285_s1 }
 0x330   :  { %v3992_v53 = vsel %vm3898_vm11, %v3991_v35, %v3987_v60  ;;  %s7783_s9 = scalar_lea.vmem %s7286_s1, 32  ;;  %p7788_p1 = scmp.lt.s32.totalorder %s7286_s1, %s7286_s1 }
 0x331   :  { %v6740_v25 = vpop.permute.xlu0 %6739  ;;  %v3824_v30 = vpop.permute.xlu1 %3823  ;;  %p7784_p0 = scmp.ne.s32.totalorder %s7286_s1, %s7783_s9  ;;  %p7789_p2 = scmp.lt.s32.totalorder %s7783_s9, %s7783_s9 }
 0x332   :  { %v6879_v7 = vrot.slane %v6740_v25, %v9817_v31  ;;  %v4001_v54 = vrot.slane %v3824_v30, %v9925_v45 }
 0x333   :  { %p7790_p3 = por %p7789_p2, %p7788_p1 }
 0x334   :  { %v6880_v29 = vsel %vm3884_vm9, %v6879_v7, %v6875_v52 }
 0x335   :  { %v6885_v34 = vsel %vm3891_vm10, %v6884_v26, %v6880_v29  ;;  %v3830_v21 = vpop.permute.xlu1 %3829  ;;  %p7791_p4 = pnand %p7790_p3, %p7784_p0 }
 0x336   :  { %v4011_v46 = vrot.slane %v3830_v21, %v9959_v28 }
 0x339   :  { %v3836_v62 = vpop.permute.xlu1 %3835 }
 0x33a   :  { %v3821_v50 = vpop.permute.xlu0 %3820  ;;  %v4021_v47 = vrot.slane %v3836_v62, %v10003_v40 }
 0x33b   :  { %v3996_v58 = vrot.slane %v3821_v50, %v9921_v4 }
 0x33d   :  { %v3997_v3 = vsel %vm3905_vm12, %v3996_v58, %v3992_v53 }
 0x33e   :  { %v4002_v10 = vsel %vm3912_vm13, %v4001_v54, %v3997_v3 }
 0x33f   :  { %v6746_v41 = vpop.permute.xlu0 %6745 }
 0x340   :  { %v6889_v38 = vrot.slane %v6746_v41, %v9855_v42 }
 0x342   :  { %v10424_v12 = vsel %vm3898_vm11, %v6889_v38, %v6885_v34 }
 0x347   :  { %v3827_v51 = vpop.permute.xlu0 %3826 }
 0x348   :  { %v4006_v0 = vrot.slane %v3827_v51, %v9956_v27 }
 0x34a   :  { %v4007_v18 = vsel %vm3919_vm14, %v4006_v0, %v4002_v10 }
 0x34b   :  { %v4012_v42 = vsel %vm3926_vm15, %v4011_v46, %v4007_v18 }
 0x34e   :  { %v3833_v31 = vpop.permute.xlu0 %3832 }
 0x34f   :  { %v4016_v63 = vrot.slane %v3833_v31, %v9998_v39 }
 0x351   :  { %v4017_v24 = vsel %vm3933_vm1, %v4016_v63, %v4012_v42 }
 0x352   :  { %v4022_v19 = vsel %vm3940_vm2, %v4021_v47, %v4017_v24 }
 0x355   :  { %v3839_v23 = vpop.permute.xlu0 %3838 }
 0x356   :  { %v4026_v15 = vrot.slane %v3839_v23, %v10041_v14 }
 0x358   :  { %v4027_v52 = vsel %vm3947_vm3, %v4026_v15, %v4022_v19 }
 0x359   :  { %v4028_v6 = vcombine.low %v10063_v43, %v4027_v52 }
 0x35b   :  { %v4035_v59 = vrot.slane %v4028_v6, %v8410_v36 }
 0x35d   :  { %v4042_v44 = vrot.slane %v4035_v59, %v8410_v36 }
 0x35f   :  { %4047 = vst.msk [vmem:[#allocation2] sm:$0x3] %vm10451_vm0, %v4042_v44 }
 0x360   :  { %7794 = shalt.err (!%p7791_p4)
}
 0x361   :  { %s7795_s12 = scalar_lea.hbm %s10532_s4, 32 }
 0x362   :  { %p7796_p5 = scmp.ne.s32.totalorder %s10532_s4, %s7795_s12  ;;  %p7799_p6 = scmp.lt.u32.totalorder %s7795_s12, %s10532_s4 }
 0x364   :  { %p7801_p7 = pnand %p7799_p6, %p7796_p5 }
 0x366   :  { %7804 = shalt.err (!%p7801_p7)
}
 0x367   :  { %7288 = dma.vmem_to_hbm [thread:$0]  %s7286_s1, 32, %s10532_s4, [#allocation3]   ;;  %v6749_v50 = vpop.permute.xlu0 %6748  ;;  %vm7275_vm4 = vcmask 0  }
 0x368   :  { %v6894_v38 = vrot.slane %v6749_v50, %v9921_v4  ;;  %s7857_s19 = smov [#allocation4]   ;;  %s7858_s2 = smov [#allocation6]  }
 0x369   :  { %s7295_s20 = sshll.u32 %s7857_s19, 4  ;;  %s7305_s21 = sshll.u32 %s7858_s2, 4  ;;  %s7296_s20 = int_to_ptr.vmem [resolvable:$true] %s7295_s20  ;;  %s7306_s21 = int_to_ptr.vmem [resolvable:$true] %s7305_s21 }
 0x36a   :  { %v6895_v58 = vsel %vm3905_vm12, %v6894_v38, %v10424_v12  ;;  %s7805_s22 = scalar_lea.vmem %s7296_s20, 32  ;;  %p7810_p9 = scmp.lt.s32.totalorder %s7296_s20, %s7296_s20 }
 0x36b   :  { %v6752_v49 = vpop.permute.xlu0 %6751  ;;  %p7806_p8 = scmp.ne.s32.totalorder %s7296_s20, %s7805_s22  ;;  %p7811_p10 = scmp.lt.s32.totalorder %s7805_s22, %s7805_s22 }
 0x36c   :  { %v6899_v11 = vrot.slane %v6752_v49, %v9925_v45 }
 0x36d   :  { %v7266_v43 = vpop.xlane.xlu1 %7265  ;;  %p7812_p11 = por %p7811_p10, %p7810_p9 }
 0x36e   :  { %v7267_v25 = vrot.slane %v7266_v43, 4  ;;  %v6900_v35 = vsel %vm3912_vm13, %v6899_v11, %v6895_v58 }
 0x36f   :  { %v6755_v1 = vpop.permute.xlu0 %6754  ;;  %p7813_p12 = pnand %p7812_p11, %p7806_p8 }
 0x370   :  { %v7268_v7 = vadd.f32 %v7267_v25, %v7266_v43  ;;  %v6904_v5 = vrot.slane %v6755_v1, %v9956_v27 }
 0x372   :  { %v7269_v26 = vrot.slane %v7268_v7, 2 }
 0x373   :  { %v6758_v55 = vpop.permute.xlu0 %6757 }
 0x374   :  { %v7270_v20 = vadd.f32 %v7269_v26, %v7268_v7  ;;  %v6909_v30 = vrot.slane %v6758_v55, %v9959_v28 }
 0x376   :  { %v7271_v29 = vrot.slane %v7270_v20, 1 }
 0x378   :  { %v7272_v34 = vadd.f32 %v7271_v29, %v7270_v20  ;;  %v6761_v17 = vpop.permute.xlu0 %6760 }
 0x379   :  { %v6914_v51 = vrot.slane %v6761_v17, %v9998_v39 }
 0x37a   :  { %7771 = vpush %v7272_v34 }
 0x37e   :  { %v6764_v57 = vpop.permute.xlu0 %6763 }
 0x383   :  { %v6767_v56 = vpop.permute.xlu0 %6766 }
 0x384   :  { %v6924_v3 = vrot.slane %v6767_v56, %v10041_v14 }
 0x389   :  { %v6701_v13 = vpop.permute.xlu1 %6700 }
 0x38a   :  { %v6815_v2 = vrot.slane %v6701_v13, %v9921_v4 }
 0x38c   :  { %v6816_v4 = vsel %vm3905_vm12, %v6815_v2, %v9897_v32 }
 0x38e   :  { %v6704_v33 = vpop.permute.xlu1 %6703 }
 0x38f   :  { %v6820_v61 = vrot.slane %v6704_v33, %v9925_v45 }
 0x391   :  { %v6821_v53 = vsel %vm3912_vm13, %v6820_v61, %v6816_v4 }
 0x393   :  { %v6707_v16 = vpop.permute.xlu1 %6706 }
 0x394   :  { %v6825_v37 = vrot.slane %v6707_v16, %v9956_v27  ;;  %v6919_v27 = vrot.slane %v6764_v57, %v10003_v40 }
 0x396   :  { %v6826_v12 = vsel %vm3919_vm14, %v6825_v37, %v6821_v53 }
 0x398   :  { %v6710_v41 = vpop.permute.xlu1 %6709 }
 0x399   :  { %v6830_v60 = vrot.slane %v6710_v41, %v9959_v28  ;;  %v6905_v28 = vsel %vm3919_vm14, %v6904_v5, %v6900_v35 }
 0x39a   :  { %v6910_v0 = vsel %vm3926_vm15, %v6909_v30, %v6905_v28 }
 0x39b   :  { %v6831_v32 = vsel %vm3926_vm15, %v6830_v60, %v6826_v12 }
 0x39e   :  { %v6713_v9 = vpop.permute.xlu1 %6712 }
 0x39f   :  { %v6835_v45 = vrot.slane %v6713_v9, %v9998_v39  ;;  %v6915_v39 = vsel %vm3933_vm1, %v6914_v51, %v6910_v0 }
 0x3a1   :  { %v6836_v31 = vsel %vm3933_vm1, %v6835_v45, %v6831_v32 }
 0x3a3   :  { %v6716_v8 = vpop.permute.xlu1 %6715 }
 0x3a4   :  { %v6840_v21 = vrot.slane %v6716_v8, %v10003_v40  ;;  %v6920_v40 = vsel %vm3940_vm2, %v6919_v27, %v6915_v39 }
 0x3a5   :  { %v6925_v63 = vsel %vm3947_vm3, %v6924_v3, %v6920_v40 }
 0x3a6   :  { %v6841_v18 = vsel %vm3940_vm2, %v6840_v21, %v6836_v31 }
 0x3a8   :  { %v6719_v54 = vpop.permute.xlu1 %6718 }
 0x3a9   :  { %v6845_v10 = vrot.slane %v6719_v54, %v10041_v14 }
 0x3ab   :  { %s7772_s4 = spop %7771  ;;  %v6846_v46 = vsel %vm3947_vm3, %v6845_v10, %v6841_v18 }
 0x3ac   :  { %v7274_v62 = vstv %s7772_s4  ;;  %v6926_v42 = vcombine.low %v6846_v46, %v6925_v63 }
 0x3ad   :  { %7276 = vst.msk [vmem:[#allocation6] sm:$0x1] %vm7275_vm4, %v7274_v62 }
 0x3ae   :  { %v6933_v24 = vrot.slane %v6926_v42, %v8410_v36 }
 0x3b0   :  { %v6940_v14 = vrot.slane %v6933_v24, %v8410_v36 }
 0x3b2   :  { %6942 = vst.msk [vmem:[#allocation4] sm:$0x3] %vm10451_vm0, %v6940_v14 }
 0x3b3   :  { %7816 = shalt.err (!%p7813_p12)
}
 0x3b4   :  { %s7817_s25 = scalar_lea.hbm %s10533_s5, 32 }
 0x3b5   :  { %p7818_p13 = scmp.ne.s32.totalorder %s10533_s5, %s7817_s25  ;;  %p7821_p0 = scmp.lt.u32.totalorder %s7817_s25, %s10533_s5 }
 0x3b7   :  { %p7823_p1 = pnand %p7821_p0, %p7818_p13 }
 0x3b9   :  { %7826 = shalt.err (!%p7823_p1)
}
 0x3ba   :  { %7298 = dma.vmem_to_hbm [thread:$0]  %s7296_s20, 32, %s10533_s5, [#allocation5]  }
 0x3bb   :  { %s7827_s7 = scalar_lea.vmem %s7306_s21, 16  ;;  %s7831_s8 = scalar_lea.vmem %s7306_s21, 32 }
 0x3bc   :  { %p7828_p2 = scmp.ne.s32.totalorder %s7306_s21, %s7827_s7  ;;  %p7832_p3 = scmp.lt.s32.totalorder %s7306_s21, %s7306_s21 }
 0x3bd   :  { %p7833_p4 = scmp.lt.s32.totalorder %s7831_s8, %s7827_s7 }
 0x3bf   :  { %p7834_p5 = por %p7833_p4, %p7832_p3 }
 0x3c1   :  { %p7835_p6 = pnand %p7834_p5, %p7828_p2 }
 0x3c3   :  { %7838 = shalt.err (!%p7835_p6)
}
 0x3c4   :  { %s7839_s9 = scalar_lea.hbm %s10534_s6, 16 }
 0x3c5   :  { %p7840_p7 = scmp.ne.s32.totalorder %s10534_s6, %s7839_s9  ;;  %p7843_p8 = scmp.lt.u32.totalorder %s7839_s9, %s10534_s6 }
 0x3c7   :  { %p7845_p9 = pnand %p7843_p8, %p7840_p7 }
 0x3c9   :  { %7848 = shalt.err (!%p7845_p9)
}
 0x3ca   :  { %7308 = dma.vmem_to_hbm [thread:$0]  %s7306_s21, 16, %s10534_s6, [#allocation5]  }
 0x3cb   :  { %7849 = dma.done.wait [#allocation3], 32  }
 0x3cc   :  { %7850 = vsyncadd [#allocation3], 4294967264 }
 0x3cd   :  { %7851 = dma.done.wait [#allocation5], 48  }
 0x3ce   :  { %7852 = vsyncadd [#allocation5], 4294967248 }
 0x3cf   :  { %7320 = vsyncpa [#allocation3], 1 }
 0x3d0   :  { %7321 = vsyncpa [#allocation5], 1 }

</bundles_post_ra>
